<compile_context>
chip_gen: v5e
topology: v5e:2x2
jax: 0.10.0
libtpu: 0.0.40
codegen_flags: <defaults>
</compile_context>

<pallas_src>
import functools
import math

import jax
import jax.numpy as jnp
from jax.experimental import pallas as pl
from jax.experimental.pallas import tpu as pltpu

EPS = 1e-5                      # PyTorch LayerNorm default eps
BF16 = jnp.bfloat16
_INV_SQRT2 = 1.0 / math.sqrt(2.0)


# ----------------------------- in-kernel helpers -----------------------------
def _layernorm(x, gamma, beta):
    # two-pass statistics (matches PyTorch LN numerics more closely)
    mu = jnp.mean(x, axis=-1, keepdims=True)
    xc = x - mu
    var = jnp.mean(xc * xc, axis=-1, keepdims=True)
    return xc * jax.lax.rsqrt(var + EPS) * gamma + beta


def _erf(x):
    # Abramowitz & Stegun 7.1.26, |error| <= 1.5e-7.  Uses only exp / mul / add /
    # where so it lowers on the VPU/EUP without relying on an erf primitive.
    a1, a2, a3, a4, a5 = (0.254829592, -0.284496736, 1.421413741,
                          -1.453152027, 1.061405429)
    p = 0.3275911
    ax = jnp.abs(x)
    t = 1.0 / (1.0 + p * ax)
    poly = ((((a5 * t + a4) * t + a3) * t + a2) * t + a1) * t
    y = 1.0 - poly * jnp.exp(-(ax * ax))
    return jnp.where(x < 0.0, -y, y)


def _gelu_exact(x):
    # nn.GELU() default is the exact erf formulation.
    return 0.5 * x * (1.0 + _erf(x * _INV_SQRT2))


# --------------------------------- kernel ------------------------------------
def encoder_block_kernel(x_ref, vd_ref, vf_ref, wq_ref, wk_ref, wv_ref, wo_ref,
                         w1_ref, w2_ref, wr_ref, o_ref, *, num_heads, seq_len):
    f32 = jnp.float32
    M, D = x_ref.shape                       # M = Bt * S rows (batch-major)
    F = o_ref.shape[-1]
    S = seq_len
    Bt = M // S
    H = num_heads
    dh = D // H

    x = x_ref[...].astype(f32)               # (M, D)

    # packed per-channel vectors
    vd = vd_ref[...]                         # (8, D)
    vf = vf_ref[...]                         # (8, F)
    g1, b1 = vd[0:1], vd[1:2]
    bq, bk, bv, bo = vd[2:3], vd[3:4], vd[4:5], vd[5:6]
    g2, b2 = vd[6:7], vd[7:8]
    cb1, cb2, rbias, gfin, bfin = vf[0:1], vf[1:2], vf[2:3], vf[3:4], vf[4:5]

    # ---------------- pre-norm multi-head self-attention ---------------------
    # Wq / bq already carry the 1/sqrt(dh) scale (folded in the wrapper).
    xn = _layernorm(x, g1, b1).astype(BF16)
    q = jnp.dot(xn, wq_ref[...], preferred_element_type=f32) + bq
    k = jnp.dot(xn, wk_ref[...], preferred_element_type=f32) + bk
    v = jnp.dot(xn, wv_ref[...], preferred_element_type=f32) + bv
    qb, kb, vb = q.astype(BF16), k.astype(BF16), v.astype(BF16)   # cast once

    # Softmax never mixes batch elements: loop over the Bt sequences stacked in M.
    # Per-head context is accumulated straight into the WO projection (registers
    # only; no (S, D) VMEM scratch, no masked narrow stores).
    attn_rows = []
    for bt in range(Bt):
        rows = slice(bt * S, (bt + 1) * S)
        acc = jnp.zeros((S, D), f32)
        for h in range(H):
            cols = slice(h * dh, (h + 1) * dh)
            s = jax.lax.dot_general(
                qb[rows, cols], kb[rows, cols],
                dimension_numbers=(((1,), (1,)), ((), ())),
                preferred_element_type=f32)                        # (S, S)
            s = s - jnp.max(s, axis=-1, keepdims=True)
            p = jnp.exp(s)
            p = p * pl.reciprocal(jnp.sum(p, axis=-1, keepdims=True), approx=True)
            ctx = jnp.dot(p.astype(BF16), vb[rows, cols],
                          preferred_element_type=f32)              # (S, dh)
            acc = acc + jnp.dot(ctx.astype(BF16), wo_ref[h],
                                preferred_element_type=f32)        # (S, D)
        attn_rows.append(acc)
    attn = attn_rows[0] if Bt == 1 else jnp.concatenate(attn_rows, axis=0)
    x1 = x + attn + bo                        # residual after attention

    # ---------------- pre-norm CNN pre-network -------------------------------
    # Conv1d(k=3, pad=1) = w[0]*x[s-1] + w[1]*x[s] + w[2]*x[s+1]: the shifted copies
    # live in registers (pltpu.roll on the XLU) with a per-sequence boundary mask
    # (also kills roll wrap-around and batch-tile crossings); each tap is one matmul.
    seq_pos = jax.lax.broadcasted_iota(jnp.int32, (M, 1), 0) % S
    not_first = seq_pos != 0
    not_last = seq_pos != (S - 1)

    def taps(a):                              # a: (M, C) f32
        prev = jnp.where(not_first, pltpu.roll(a, 1, 0), 0.0)      # a[s-1], 0 at s==0
        nxt = jnp.where(not_last, pltpu.roll(a, M - 1, 0), 0.0)    # a[s+1], 0 at s==S-1
        return prev.astype(BF16), nxt.astype(BF16)

    xn2 = _layernorm(x1, g2, b2)
    p1, n1 = taps(xn2)
    c1 = (jnp.dot(p1, w1_ref[0], preferred_element_type=f32)
          + jnp.dot(xn2.astype(BF16), w1_ref[1], preferred_element_type=f32)
          + jnp.dot(n1, w1_ref[2], preferred_element_type=f32) + cb1)
    a1 = _gelu_exact(c1)                      # (M, F)

    p2, n2 = taps(a1)
    c2 = (jnp.dot(p2, w2_ref[0], preferred_element_type=f32)
          + jnp.dot(a1.astype(BF16), w2_ref[1], preferred_element_type=f32)
          + jnp.dot(n2, w2_ref[2], preferred_element_type=f32) + cb2)

    # residual_proj: Conv1d kernel-size 1 == plain matmul
    r = jnp.dot(x1.astype(BF16), wr_ref[...], preferred_element_type=f32) + rbias
    y = _layernorm(r + c2, gfin, bfin)        # (M, F) final LayerNorm over filters

    # Emit (Bt*S, F) directly (lane-contiguous block); the (B,F,S) transpose the
    # module wants is one cheap XLA transpose in the wrapper -- no eye-matmul.
    o_ref[...] = y.astype(o_ref.dtype)


# --------------------------------- wrapper -----------------------------------
def encoder_block_forward(x_bsd, params, *, num_heads, batch_tile=None):
    B, S, D = x_bsd.shape
    K, _, F = params["w1"].shape
    H = num_heads
    assert D % H == 0
    dh = D // H
    scale = 1.0 / math.sqrt(dh)
    f32 = jnp.float32

    if batch_tile is None:
        # Fold batch elements into each grid step (fills the MXU M dimension) but keep
        # >= 2 steps when possible so both v7x TensorCores are fed under "parallel".
        batch_tile = B // 2 if (B >= 2 and B % 2 == 0) else B
    assert B % batch_tile == 0
    steps = B // batch_tile
    M = batch_tile * S

    # weights in bf16 for the MXU; attention scale folded into Wq / bq; WO split per
    # head (H, dh, D); conv kernels kept per-tap (K, Cin, F).
    wq = (params["wq"] * scale).astype(BF16)
    wk = params["wk"].astype(BF16)
    wv = params["wv"].astype(BF16)
    wo = params["wo"].reshape(H, dh, D).astype(BF16)
    w1 = params["w1"].astype(BF16)                  # (3, D, F)
    w2 = params["w2"].astype(BF16)                  # (3, F, F)
    wr = params["wr"].astype(BF16)

    # pack all (1,D)/(1,F) gamma/beta/bias vectors into two arrays (fewer DMAs)
    vecs_d = jnp.concatenate(
        [params["g1"], params["b1"], params["bq"] * scale, params["bk"],
         params["bv"], params["bo"], params["g2"], params["b2"]], axis=0).astype(f32)
    vecs_f = jnp.concatenate(
        [params["cb1"], params["cb2"], params["rb"], params["gf"], params["bf"],
         jnp.zeros((3, F), f32)], axis=0).astype(f32)

    x2d = x_bsd.reshape(B * S, D)                   # rows ordered (batch, seq)
    kernel = functools.partial(encoder_block_kernel, num_heads=H, seq_len=S)

    def build(single_buffer_weights):
        def const_spec(shape):
            idx = lambda i: (0,) * len(shape)
            if single_buffer_weights:
                # constant-index weight blocks never re-DMA; single-buffering halves
                # their static VMEM footprint (matters on v7x's 64 MiB VMEM).
                return pl.BlockSpec(shape, idx, pipeline_mode=pl.Buffered(1))
            return pl.BlockSpec(shape, idx)

        in_specs = [
            pl.BlockSpec((M, D), lambda i: (i, 0)),        # x, Bt*S rows per step
            const_spec((8, D)), const_spec((8, F)),        # packed gamma/beta/bias
            const_spec((D, D)), const_spec((D, D)),        # Wq (pre-scaled), Wk
            const_spec((D, D)), const_spec((H, dh, D)),    # Wv, per-head Wo
            const_spec((K, D, F)), const_spec((K, F, F)),  # conv1 / conv2 taps
            const_spec((D, F)),                            # residual projection
        ]
        out_spec = pl.BlockSpec((M, F), lambda i: (i, 0))
        # NOTE: for large D/F/S/Bt (esp. v7x, 64 MiB VMEM) set vmem_limit_bytes and
        # add an "arbitrary" S-tiling grid axis over the conv/FFN half.
        return pl.pallas_call(
            kernel,
            out_shape=jax.ShapeDtypeStruct((B * S, F), x_bsd.dtype),
            grid=(steps,),
            in_specs=in_specs,
            out_specs=out_spec,
            compiler_params=pltpu.CompilerParams(
                dimension_semantics=("parallel",)),        # batch-tile axis -> megacore
        )

    args = (x2d, vecs_d, vecs_f, wq, wk, wv, wo, w1, w2, wr)
    try:
        out2d = build(True)(*args)
    except Exception:
        # feature guard: some jax/libtpu builds reject pipeline_mode=pl.Buffered(1);
        # fall back to default double-buffered weight blocks (identical results).
        out2d = build(False)(*args)

    # module layout is (B, n_encoder_filters, S): one cheap XLA transpose outside.
    return jnp.transpose(out2d.reshape(B, S, F), (0, 2, 1))


# --------------------------- deterministic parameters -------------------------
def init_params(key, D, F, K=3):
    ks = jax.random.split(key, 20)

    def w(k, shape, s=0.08):
        return (s * jax.random.normal(k, shape)).astype(jnp.float32)

    return dict(
        g1=(1.0 + 0.1 * jax.random.normal(ks[0], (1, D))).astype(jnp.float32),
        b1=w(ks[1], (1, D), 0.05),
        wq=w(ks[2], (D, D)), bq=w(ks[3], (1, D), 0.02),
        wk=w(ks[4], (D, D)), bk=w(ks[5], (1, D), 0.02),
        wv=w(ks[6], (D, D)), bv=w(ks[7], (1, D), 0.02),
        wo=w(ks[8], (D, D)), bo=w(ks[9], (1, D), 0.02),
        g2=(1.0 + 0.1 * jax.random.normal(ks[10], (1, D))).astype(jnp.float32),
        b2=w(ks[11], (1, D), 0.05),
        w1=w(ks[12], (K, D, F)), cb1=w(ks[13], (1, F), 0.02),
        w2=w(ks[14], (K, F, F)), cb2=w(ks[15], (1, F), 0.02),
        wr=w(ks[16], (D, F)), rb=w(ks[17], (1, F), 0.02),
        gf=(1.0 + 0.1 * jax.random.normal(ks[18], (1, F))).astype(jnp.float32),
        bf=w(ks[19], (1, F), 0.05),
    )


# ----------------------------- pure-JAX reference -----------------------------
def reference_forward(x_bsd, params, *, num_heads):
    def ln(x, g, b):
        mu = x.mean(-1, keepdims=True)
        var = ((x - mu) ** 2).mean(-1, keepdims=True)
        return (x - mu) / jnp.sqrt(var + EPS) * g + b

    B, S, D = x_bsd.shape
    H, dh = num_heads, D // num_heads
    xn = ln(x_bsd, params["g1"], params["b1"])
    q = xn @ params["wq"] + params["bq"]
    k = xn @ params["wk"] + params["bk"]
    v = xn @ params["wv"] + params["bv"]
    q = q.reshape(B, S, H, dh).transpose(0, 2, 1, 3) / math.sqrt(dh)
    k = k.reshape(B, S, H, dh).transpose(0, 2, 1, 3)
    v = v.reshape(B, S, H, dh).transpose(0, 2, 1, 3)
    p = jax.nn.softmax(q @ jnp.swapaxes(k, -1, -2), axis=-1)
    ctx = (p @ v).transpose(0, 2, 1, 3).reshape(B, S, D)
    x1 = x_bsd + ctx @ params["wo"] + params["bo"]
    xn2 = ln(x1, params["g2"], params["b2"])

    def conv1d(xc, w, b):
        Kk = w.shape[0]
        pad = Kk // 2
        xp = jnp.pad(xc, ((0, 0), (pad, pad), (0, 0)))
        acc = b
        for kk in range(Kk):
            acc = acc + xp[:, kk:kk + xc.shape[1], :] @ w[kk]
        return acc

    c1 = conv1d(xn2, params["w1"], params["cb1"])
    a1 = 0.5 * c1 * (1.0 + jax.lax.erf(c1 / math.sqrt(2.0)))   # exact GELU
    c2 = conv1d(a1, params["w2"], params["cb2"])
    out = x1 @ params["wr"] + params["rb"] + c2
    out = ln(out, params["gf"], params["bf"])
    return jnp.transpose(out, (0, 2, 1))           # (B, n_encoder_filters, S)


if __name__ == "__main__":
    B, S, D, H, F = 4, 16, 32, 4, 16   # batch, seq, embed_dim, heads, n_encoder_filters
    key = jax.random.PRNGKey(0)
    kx, kp = jax.random.split(key)
    x = jax.random.normal(kx, (B, S, D), dtype=jnp.float32)
    params = init_params(kp, D, F)

    out = jax.block_until_ready(encoder_block_forward(x, params, num_heads=H))
    assert out.shape == (B, F, S)

    ref = reference_forward(x, params, num_heads=H)
    # bf16 MXU operands vs. pure-f32 reference: aggregate relative error (tight, catches
    # structural bugs) plus a loose elementwise bound.
    rel_err = float(jnp.linalg.norm(out - ref) / jnp.linalg.norm(ref))
    if not (rel_err < 3e-2 and bool(jnp.allclose(out, ref, atol=5e-2, rtol=5e-2))):
        raise AssertionError(
            f"Pallas kernel disagrees with JAX reference (rel_err={rel_err:.4f})")
    print("KERNEL_OK")
</pallas_src>

<mosaic_0001>
module attributes {stable_mosaic.version = 11 : i64} {
  func.func @encoder_block_kernel(%arg0: i32, %arg1: memref<32x32xf32, #tpu.memory_space<vmem>>, %arg2: memref<8x32xf32, #tpu.memory_space<vmem>>, %arg3: memref<8x16xf32, #tpu.memory_space<vmem>>, %arg4: memref<32x32xbf16, #tpu.memory_space<vmem>>, %arg5: memref<32x32xbf16, #tpu.memory_space<vmem>>, %arg6: memref<32x32xbf16, #tpu.memory_space<vmem>>, %arg7: memref<4x8x32xbf16, #tpu.memory_space<vmem>>, %arg8: memref<3x32x16xbf16, #tpu.memory_space<vmem>>, %arg9: memref<3x16x16xbf16, #tpu.memory_space<vmem>>, %arg10: memref<32x16xbf16, #tpu.memory_space<vmem>>, %arg11: memref<32x16xf32, #tpu.memory_space<vmem>>) attributes {dimension_semantics = [#tpu.dimension_semantics<parallel>], iteration_bounds = array<i64: 2>, scalar_prefetch = 0 : i64, scratch_operands = 0 : i64, tpu.core_type = #tpu.core_type<tc>, window_params = [{transform_indices = @transform_0, window_bounds = array<i64: 32, 32>}, {pipeline_mode = #tpu.pipeline_mode<synchronous>, transform_indices = @transform_1, window_bounds = array<i64: 8, 32>}, {pipeline_mode = #tpu.pipeline_mode<synchronous>, transform_indices = @transform_2, window_bounds = array<i64: 8, 16>}, {pipeline_mode = #tpu.pipeline_mode<synchronous>, transform_indices = @transform_3, window_bounds = array<i64: 32, 32>}, {pipeline_mode = #tpu.pipeline_mode<synchronous>, transform_indices = @transform_4, window_bounds = array<i64: 32, 32>}, {pipeline_mode = #tpu.pipeline_mode<synchronous>, transform_indices = @transform_5, window_bounds = array<i64: 32, 32>}, {pipeline_mode = #tpu.pipeline_mode<synchronous>, transform_indices = @transform_6, window_bounds = array<i64: 4, 8, 32>}, {pipeline_mode = #tpu.pipeline_mode<synchronous>, transform_indices = @transform_7, window_bounds = array<i64: 3, 32, 16>}, {pipeline_mode = #tpu.pipeline_mode<synchronous>, transform_indices = @transform_8, window_bounds = array<i64: 3, 16, 16>}, {pipeline_mode = #tpu.pipeline_mode<synchronous>, transform_indices = @transform_9, window_bounds = array<i64: 32, 16>}, {transform_indices = @transform_10, window_bounds = array<i64: 32, 16>}]} {
    %c0 = arith.constant 0 : index
    %c0_0 = arith.constant 0 : index
    %0 = vector.load %arg1[%c0, %c0_0] : memref<32x32xf32, #tpu.memory_space<vmem>>, vector<32x32xf32>
    %c0_1 = arith.constant 0 : index
    %c0_2 = arith.constant 0 : index
    %1 = vector.load %arg2[%c0_1, %c0_2] : memref<8x32xf32, #tpu.memory_space<vmem>>, vector<8x32xf32>
    %c0_3 = arith.constant 0 : index
    %c0_4 = arith.constant 0 : index
    %2 = vector.load %arg3[%c0_3, %c0_4] : memref<8x16xf32, #tpu.memory_space<vmem>>, vector<8x16xf32>
    %3 = vector.extract_strided_slice %1 {offsets = [0, 0], sizes = [1, 32], strides = [1, 1]} : vector<8x32xf32> to vector<1x32xf32>
    %4 = vector.extract_strided_slice %1 {offsets = [1, 0], sizes = [1, 32], strides = [1, 1]} : vector<8x32xf32> to vector<1x32xf32>
    %5 = vector.extract_strided_slice %1 {offsets = [2, 0], sizes = [1, 32], strides = [1, 1]} : vector<8x32xf32> to vector<1x32xf32>
    %6 = vector.extract_strided_slice %1 {offsets = [3, 0], sizes = [1, 32], strides = [1, 1]} : vector<8x32xf32> to vector<1x32xf32>
    %7 = vector.extract_strided_slice %1 {offsets = [4, 0], sizes = [1, 32], strides = [1, 1]} : vector<8x32xf32> to vector<1x32xf32>
    %8 = vector.extract_strided_slice %1 {offsets = [5, 0], sizes = [1, 32], strides = [1, 1]} : vector<8x32xf32> to vector<1x32xf32>
    %9 = vector.extract_strided_slice %1 {offsets = [6, 0], sizes = [1, 32], strides = [1, 1]} : vector<8x32xf32> to vector<1x32xf32>
    %10 = vector.extract_strided_slice %1 {offsets = [7, 0], sizes = [1, 32], strides = [1, 1]} : vector<8x32xf32> to vector<1x32xf32>
    %11 = vector.extract_strided_slice %2 {offsets = [0, 0], sizes = [1, 16], strides = [1, 1]} : vector<8x16xf32> to vector<1x16xf32>
    %12 = vector.extract_strided_slice %2 {offsets = [1, 0], sizes = [1, 16], strides = [1, 1]} : vector<8x16xf32> to vector<1x16xf32>
    %13 = vector.extract_strided_slice %2 {offsets = [2, 0], sizes = [1, 16], strides = [1, 1]} : vector<8x16xf32> to vector<1x16xf32>
    %14 = vector.extract_strided_slice %2 {offsets = [3, 0], sizes = [1, 16], strides = [1, 1]} : vector<8x16xf32> to vector<1x16xf32>
    %15 = vector.extract_strided_slice %2 {offsets = [4, 0], sizes = [1, 16], strides = [1, 1]} : vector<8x16xf32> to vector<1x16xf32>
    %cst = arith.constant dense<0.000000e+00> : vector<32xf32>
    %16 = vector.multi_reduction <add>, %0, %cst [1] : vector<32x32xf32> to vector<32xf32>
    %17 = vector.shape_cast %16 : vector<32xf32> to vector<32x1xf32>
    %cst_5 = arith.constant 3.200000e+01 : f32
    %18 = vector.broadcast %cst_5 : f32 to vector<32x1xf32>
    %19 = arith.divf %17, %18 : vector<32x1xf32>
    %20 = vector.broadcast %19 : vector<32x1xf32> to vector<32x32xf32>
    %21 = arith.subf %0, %20 : vector<32x32xf32>
    %22 = arith.mulf %21, %21 : vector<32x32xf32>
    %cst_6 = arith.constant dense<0.000000e+00> : vector<32xf32>
    %23 = vector.multi_reduction <add>, %22, %cst_6 [1] : vector<32x32xf32> to vector<32xf32>
    %24 = vector.shape_cast %23 : vector<32xf32> to vector<32x1xf32>
    %cst_7 = arith.constant 3.200000e+01 : f32
    %25 = vector.broadcast %cst_7 : f32 to vector<32x1xf32>
    %26 = arith.divf %24, %25 : vector<32x1xf32>
    %cst_8 = arith.constant 9.99999974E-6 : f32
    %27 = vector.broadcast %cst_8 : f32 to vector<32x1xf32>
    %28 = arith.addf %26, %27 : vector<32x1xf32>
    %29 = math.rsqrt %28 : vector<32x1xf32>
    %30 = vector.broadcast %29 : vector<32x1xf32> to vector<32x32xf32>
    %31 = arith.mulf %21, %30 : vector<32x32xf32>
    %32 = vector.broadcast %3 : vector<1x32xf32> to vector<32x32xf32>
    %33 = arith.mulf %31, %32 : vector<32x32xf32>
    %34 = vector.broadcast %4 : vector<1x32xf32> to vector<32x32xf32>
    %35 = arith.addf %33, %34 : vector<32x32xf32>
    %36 = arith.truncf %35 : vector<32x32xf32> to vector<32x32xbf16>
    %c0_9 = arith.constant 0 : index
    %c0_10 = arith.constant 0 : index
    %37 = vector.load %arg4[%c0_9, %c0_10] : memref<32x32xbf16, #tpu.memory_space<vmem>>, vector<32x32xbf16>
    %cst_11 = arith.constant dense<0.000000e+00> : vector<32x32xf32>
    %38 = tpu.matmul %36, %37, %cst_11 {dimension_numbers = #tpu.dot_dimension_numbers<[1], [0], [0], [1], [0, 0, 1, 1], [], []>} : vector<32x32xbf16>, vector<32x32xbf16>, vector<32x32xf32> -> vector<32x32xf32>
    %39 = vector.broadcast %5 : vector<1x32xf32> to vector<32x32xf32>
    %40 = arith.addf %38, %39 : vector<32x32xf32>
    %c0_12 = arith.constant 0 : index
    %c0_13 = arith.constant 0 : index
    %41 = vector.load %arg5[%c0_12, %c0_13] : memref<32x32xbf16, #tpu.memory_space<vmem>>, vector<32x32xbf16>
    %cst_14 = arith.constant dense<0.000000e+00> : vector<32x32xf32>
    %42 = tpu.matmul %36, %41, %cst_14 {dimension_numbers = #tpu.dot_dimension_numbers<[1], [0], [0], [1], [0, 0, 1, 1], [], []>} : vector<32x32xbf16>, vector<32x32xbf16>, vector<32x32xf32> -> vector<32x32xf32>
    %43 = vector.broadcast %6 : vector<1x32xf32> to vector<32x32xf32>
    %44 = arith.addf %42, %43 : vector<32x32xf32>
    %c0_15 = arith.constant 0 : index
    %c0_16 = arith.constant 0 : index
    %45 = vector.load %arg6[%c0_15, %c0_16] : memref<32x32xbf16, #tpu.memory_space<vmem>>, vector<32x32xbf16>
    %cst_17 = arith.constant dense<0.000000e+00> : vector<32x32xf32>
    %46 = tpu.matmul %36, %45, %cst_17 {dimension_numbers = #tpu.dot_dimension_numbers<[1], [0], [0], [1], [0, 0, 1, 1], [], []>} : vector<32x32xbf16>, vector<32x32xbf16>, vector<32x32xf32> -> vector<32x32xf32>
    %47 = vector.broadcast %7 : vector<1x32xf32> to vector<32x32xf32>
    %48 = arith.addf %46, %47 : vector<32x32xf32>
    %49 = arith.truncf %40 : vector<32x32xf32> to vector<32x32xbf16>
    %50 = arith.truncf %44 : vector<32x32xf32> to vector<32x32xbf16>
    %51 = arith.truncf %48 : vector<32x32xf32> to vector<32x32xbf16>
    %cst_18 = arith.constant 0.000000e+00 : f32
    %52 = vector.broadcast %cst_18 : f32 to vector<16x32xf32>
    %53 = vector.extract_strided_slice %49 {offsets = [0, 0], sizes = [16, 8], strides = [1, 1]} : vector<32x32xbf16> to vector<16x8xbf16>
    %54 = vector.extract_strided_slice %50 {offsets = [0, 0], sizes = [16, 8], strides = [1, 1]} : vector<32x32xbf16> to vector<16x8xbf16>
    %cst_19 = arith.constant dense<0.000000e+00> : vector<16x16xf32>
    %55 = tpu.matmul %53, %54, %cst_19 {dimension_numbers = #tpu.dot_dimension_numbers<[1], [1], [0], [0], [0, 0, 1, 0], [], []>} : vector<16x8xbf16>, vector<16x8xbf16>, vector<16x16xf32> -> vector<16x16xf32>
    %cst_20 = arith.constant dense<0xFF800000> : vector<16xf32>
    %56 = vector.multi_reduction <maximumf>, %55, %cst_20 [1] : vector<16x16xf32> to vector<16xf32>
    %57 = vector.shape_cast %56 : vector<16xf32> to vector<16x1xf32>
    %58 = vector.broadcast %57 : vector<16x1xf32> to vector<16x16xf32>
    %59 = arith.subf %55, %58 : vector<16x16xf32>
    %60 = math.exp %59 : vector<16x16xf32>
    %cst_21 = arith.constant dense<0.000000e+00> : vector<16xf32>
    %61 = vector.multi_reduction <add>, %60, %cst_21 [1] : vector<16x16xf32> to vector<16xf32>
    %62 = vector.shape_cast %61 : vector<16xf32> to vector<16x1xf32>
    %63 = tpu.reciprocal %62 {approx = true} : vector<16x1xf32> -> vector<16x1xf32>
    %64 = vector.broadcast %63 : vector<16x1xf32> to vector<16x16xf32>
    %65 = arith.mulf %60, %64 : vector<16x16xf32>
    %66 = arith.truncf %65 : vector<16x16xf32> to vector<16x16xbf16>
    %67 = vector.extract_strided_slice %51 {offsets = [0, 0], sizes = [16, 8], strides = [1, 1]} : vector<32x32xbf16> to vector<16x8xbf16>
    %cst_22 = arith.constant dense<0.000000e+00> : vector<16x8xf32>
    %68 = tpu.matmul %66, %67, %cst_22 {dimension_numbers = #tpu.dot_dimension_numbers<[1], [0], [0], [1], [0, 0, 1, 1], [], []>} : vector<16x16xbf16>, vector<16x8xbf16>, vector<16x8xf32> -> vector<16x8xf32>
    %69 = arith.truncf %68 : vector<16x8xf32> to vector<16x8xbf16>
    %c0_23 = arith.constant 0 : index
    %c0_24 = arith.constant 0 : index
    %c0_25 = arith.constant 0 : index
    %70 = vector.load %arg7[%c0_23, %c0_24, %c0_25] : memref<4x8x32xbf16, #tpu.memory_space<vmem>>, vector<1x8x32xbf16>
    %71 = vector.shape_cast %70 : vector<1x8x32xbf16> to vector<8x32xbf16>
    %cst_26 = arith.constant dense<0.000000e+00> : vector<16x32xf32>
    %72 = tpu.matmul %69, %71, %cst_26 {dimension_numbers = #tpu.dot_dimension_numbers<[1], [0], [0], [1], [0, 0, 1, 1], [], []>} : vector<16x8xbf16>, vector<8x32xbf16>, vector<16x32xf32> -> vector<16x32xf32>
    %73 = arith.addf %52, %72 : vector<16x32xf32>
    %74 = vector.extract_strided_slice %49 {offsets = [0, 8], sizes = [16, 8], strides = [1, 1]} : vector<32x32xbf16> to vector<16x8xbf16>
    %75 = vector.extract_strided_slice %50 {offsets = [0, 8], sizes = [16, 8], strides = [1, 1]} : vector<32x32xbf16> to vector<16x8xbf16>
    %cst_27 = arith.constant dense<0.000000e+00> : vector<16x16xf32>
    %76 = tpu.matmul %74, %75, %cst_27 {dimension_numbers = #tpu.dot_dimension_numbers<[1], [1], [0], [0], [0, 0, 1, 0], [], []>} : vector<16x8xbf16>, vector<16x8xbf16>, vector<16x16xf32> -> vector<16x16xf32>
    %cst_28 = arith.constant dense<0xFF800000> : vector<16xf32>
    %77 = vector.multi_reduction <maximumf>, %76, %cst_28 [1] : vector<16x16xf32> to vector<16xf32>
    %78 = vector.shape_cast %77 : vector<16xf32> to vector<16x1xf32>
    %79 = vector.broadcast %78 : vector<16x1xf32> to vector<16x16xf32>
    %80 = arith.subf %76, %79 : vector<16x16xf32>
    %81 = math.exp %80 : vector<16x16xf32>
    %cst_29 = arith.constant dense<0.000000e+00> : vector<16xf32>
    %82 = vector.multi_reduction <add>, %81, %cst_29 [1] : vector<16x16xf32> to vector<16xf32>
    %83 = vector.shape_cast %82 : vector<16xf32> to vector<16x1xf32>
    %84 = tpu.reciprocal %83 {approx = true} : vector<16x1xf32> -> vector<16x1xf32>
    %85 = vector.broadcast %84 : vector<16x1xf32> to vector<16x16xf32>
    %86 = arith.mulf %81, %85 : vector<16x16xf32>
    %87 = arith.truncf %86 : vector<16x16xf32> to vector<16x16xbf16>
    %88 = vector.extract_strided_slice %51 {offsets = [0, 8], sizes = [16, 8], strides = [1, 1]} : vector<32x32xbf16> to vector<16x8xbf16>
    %cst_30 = arith.constant dense<0.000000e+00> : vector<16x8xf32>
    %89 = tpu.matmul %87, %88, %cst_30 {dimension_numbers = #tpu.dot_dimension_numbers<[1], [0], [0], [1], [0, 0, 1, 1], [], []>} : vector<16x16xbf16>, vector<16x8xbf16>, vector<16x8xf32> -> vector<16x8xf32>
    %90 = arith.truncf %89 : vector<16x8xf32> to vector<16x8xbf16>
    %c1 = arith.constant 1 : index
    %c0_31 = arith.constant 0 : index
    %c0_32 = arith.constant 0 : index
    %91 = vector.load %arg7[%c1, %c0_31, %c0_32] : memref<4x8x32xbf16, #tpu.memory_space<vmem>>, vector<1x8x32xbf16>
    %92 = vector.shape_cast %91 : vector<1x8x32xbf16> to vector<8x32xbf16>
    %cst_33 = arith.constant dense<0.000000e+00> : vector<16x32xf32>
    %93 = tpu.matmul %90, %92, %cst_33 {dimension_numbers = #tpu.dot_dimension_numbers<[1], [0], [0], [1], [0, 0, 1, 1], [], []>} : vector<16x8xbf16>, vector<8x32xbf16>, vector<16x32xf32> -> vector<16x32xf32>
    %94 = arith.addf %73, %93 : vector<16x32xf32>
    %95 = vector.extract_strided_slice %49 {offsets = [0, 16], sizes = [16, 8], strides = [1, 1]} : vector<32x32xbf16> to vector<16x8xbf16>
    %96 = vector.extract_strided_slice %50 {offsets = [0, 16], sizes = [16, 8], strides = [1, 1]} : vector<32x32xbf16> to vector<16x8xbf16>
    %cst_34 = arith.constant dense<0.000000e+00> : vector<16x16xf32>
    %97 = tpu.matmul %95, %96, %cst_34 {dimension_numbers = #tpu.dot_dimension_numbers<[1], [1], [0], [0], [0, 0, 1, 0], [], []>} : vector<16x8xbf16>, vector<16x8xbf16>, vector<16x16xf32> -> vector<16x16xf32>
    %cst_35 = arith.constant dense<0xFF800000> : vector<16xf32>
    %98 = vector.multi_reduction <maximumf>, %97, %cst_35 [1] : vector<16x16xf32> to vector<16xf32>
    %99 = vector.shape_cast %98 : vector<16xf32> to vector<16x1xf32>
    %100 = vector.broadcast %99 : vector<16x1xf32> to vector<16x16xf32>
    %101 = arith.subf %97, %100 : vector<16x16xf32>
    %102 = math.exp %101 : vector<16x16xf32>
    %cst_36 = arith.constant dense<0.000000e+00> : vector<16xf32>
    %103 = vector.multi_reduction <add>, %102, %cst_36 [1] : vector<16x16xf32> to vector<16xf32>
    %104 = vector.shape_cast %103 : vector<16xf32> to vector<16x1xf32>
    %105 = tpu.reciprocal %104 {approx = true} : vector<16x1xf32> -> vector<16x1xf32>
    %106 = vector.broadcast %105 : vector<16x1xf32> to vector<16x16xf32>
    %107 = arith.mulf %102, %106 : vector<16x16xf32>
    %108 = arith.truncf %107 : vector<16x16xf32> to vector<16x16xbf16>
    %109 = vector.extract_strided_slice %51 {offsets = [0, 16], sizes = [16, 8], strides = [1, 1]} : vector<32x32xbf16> to vector<16x8xbf16>
    %cst_37 = arith.constant dense<0.000000e+00> : vector<16x8xf32>
    %110 = tpu.matmul %108, %109, %cst_37 {dimension_numbers = #tpu.dot_dimension_numbers<[1], [0], [0], [1], [0, 0, 1, 1], [], []>} : vector<16x16xbf16>, vector<16x8xbf16>, vector<16x8xf32> -> vector<16x8xf32>
    %111 = arith.truncf %110 : vector<16x8xf32> to vector<16x8xbf16>
    %c2 = arith.constant 2 : index
    %c0_38 = arith.constant 0 : index
    %c0_39 = arith.constant 0 : index
    %112 = vector.load %arg7[%c2, %c0_38, %c0_39] : memref<4x8x32xbf16, #tpu.memory_space<vmem>>, vector<1x8x32xbf16>
    %113 = vector.shape_cast %112 : vector<1x8x32xbf16> to vector<8x32xbf16>
    %cst_40 = arith.constant dense<0.000000e+00> : vector<16x32xf32>
    %114 = tpu.matmul %111, %113, %cst_40 {dimension_numbers = #tpu.dot_dimension_numbers<[1], [0], [0], [1], [0, 0, 1, 1], [], []>} : vector<16x8xbf16>, vector<8x32xbf16>, vector<16x32xf32> -> vector<16x32xf32>
    %115 = arith.addf %94, %114 : vector<16x32xf32>
    %116 = vector.extract_strided_slice %49 {offsets = [0, 24], sizes = [16, 8], strides = [1, 1]} : vector<32x32xbf16> to vector<16x8xbf16>
    %117 = vector.extract_strided_slice %50 {offsets = [0, 24], sizes = [16, 8], strides = [1, 1]} : vector<32x32xbf16> to vector<16x8xbf16>
    %cst_41 = arith.constant dense<0.000000e+00> : vector<16x16xf32>
    %118 = tpu.matmul %116, %117, %cst_41 {dimension_numbers = #tpu.dot_dimension_numbers<[1], [1], [0], [0], [0, 0, 1, 0], [], []>} : vector<16x8xbf16>, vector<16x8xbf16>, vector<16x16xf32> -> vector<16x16xf32>
    %cst_42 = arith.constant dense<0xFF800000> : vector<16xf32>
    %119 = vector.multi_reduction <maximumf>, %118, %cst_42 [1] : vector<16x16xf32> to vector<16xf32>
    %120 = vector.shape_cast %119 : vector<16xf32> to vector<16x1xf32>
    %121 = vector.broadcast %120 : vector<16x1xf32> to vector<16x16xf32>
    %122 = arith.subf %118, %121 : vector<16x16xf32>
    %123 = math.exp %122 : vector<16x16xf32>
    %cst_43 = arith.constant dense<0.000000e+00> : vector<16xf32>
    %124 = vector.multi_reduction <add>, %123, %cst_43 [1] : vector<16x16xf32> to vector<16xf32>
    %125 = vector.shape_cast %124 : vector<16xf32> to vector<16x1xf32>
    %126 = tpu.reciprocal %125 {approx = true} : vector<16x1xf32> -> vector<16x1xf32>
    %127 = vector.broadcast %126 : vector<16x1xf32> to vector<16x16xf32>
    %128 = arith.mulf %123, %127 : vector<16x16xf32>
    %129 = arith.truncf %128 : vector<16x16xf32> to vector<16x16xbf16>
    %130 = vector.extract_strided_slice %51 {offsets = [0, 24], sizes = [16, 8], strides = [1, 1]} : vector<32x32xbf16> to vector<16x8xbf16>
    %cst_44 = arith.constant dense<0.000000e+00> : vector<16x8xf32>
    %131 = tpu.matmul %129, %130, %cst_44 {dimension_numbers = #tpu.dot_dimension_numbers<[1], [0], [0], [1], [0, 0, 1, 1], [], []>} : vector<16x16xbf16>, vector<16x8xbf16>, vector<16x8xf32> -> vector<16x8xf32>
    %132 = arith.truncf %131 : vector<16x8xf32> to vector<16x8xbf16>
    %c3 = arith.constant 3 : index
    %c0_45 = arith.constant 0 : index
    %c0_46 = arith.constant 0 : index
    %133 = vector.load %arg7[%c3, %c0_45, %c0_46] : memref<4x8x32xbf16, #tpu.memory_space<vmem>>, vector<1x8x32xbf16>
    %134 = vector.shape_cast %133 : vector<1x8x32xbf16> to vector<8x32xbf16>
    %cst_47 = arith.constant dense<0.000000e+00> : vector<16x32xf32>
    %135 = tpu.matmul %132, %134, %cst_47 {dimension_numbers = #tpu.dot_dimension_numbers<[1], [0], [0], [1], [0, 0, 1, 1], [], []>} : vector<16x8xbf16>, vector<8x32xbf16>, vector<16x32xf32> -> vector<16x32xf32>
    %136 = arith.addf %115, %135 : vector<16x32xf32>
    %cst_48 = arith.constant 0.000000e+00 : f32
    %137 = vector.broadcast %cst_48 : f32 to vector<16x32xf32>
    %138 = vector.extract_strided_slice %49 {offsets = [16, 0], sizes = [16, 8], strides = [1, 1]} : vector<32x32xbf16> to vector<16x8xbf16>
    %139 = vector.extract_strided_slice %50 {offsets = [16, 0], sizes = [16, 8], strides = [1, 1]} : vector<32x32xbf16> to vector<16x8xbf16>
    %cst_49 = arith.constant dense<0.000000e+00> : vector<16x16xf32>
    %140 = tpu.matmul %138, %139, %cst_49 {dimension_numbers = #tpu.dot_dimension_numbers<[1], [1], [0], [0], [0, 0, 1, 0], [], []>} : vector<16x8xbf16>, vector<16x8xbf16>, vector<16x16xf32> -> vector<16x16xf32>
    %cst_50 = arith.constant dense<0xFF800000> : vector<16xf32>
    %141 = vector.multi_reduction <maximumf>, %140, %cst_50 [1] : vector<16x16xf32> to vector<16xf32>
    %142 = vector.shape_cast %141 : vector<16xf32> to vector<16x1xf32>
    %143 = vector.broadcast %142 : vector<16x1xf32> to vector<16x16xf32>
    %144 = arith.subf %140, %143 : vector<16x16xf32>
    %145 = math.exp %144 : vector<16x16xf32>
    %cst_51 = arith.constant dense<0.000000e+00> : vector<16xf32>
    %146 = vector.multi_reduction <add>, %145, %cst_51 [1] : vector<16x16xf32> to vector<16xf32>
    %147 = vector.shape_cast %146 : vector<16xf32> to vector<16x1xf32>
    %148 = tpu.reciprocal %147 {approx = true} : vector<16x1xf32> -> vector<16x1xf32>
    %149 = vector.broadcast %148 : vector<16x1xf32> to vector<16x16xf32>
    %150 = arith.mulf %145, %149 : vector<16x16xf32>
    %151 = arith.truncf %150 : vector<16x16xf32> to vector<16x16xbf16>
    %152 = vector.extract_strided_slice %51 {offsets = [16, 0], sizes = [16, 8], strides = [1, 1]} : vector<32x32xbf16> to vector<16x8xbf16>
    %cst_52 = arith.constant dense<0.000000e+00> : vector<16x8xf32>
    %153 = tpu.matmul %151, %152, %cst_52 {dimension_numbers = #tpu.dot_dimension_numbers<[1], [0], [0], [1], [0, 0, 1, 1], [], []>} : vector<16x16xbf16>, vector<16x8xbf16>, vector<16x8xf32> -> vector<16x8xf32>
    %154 = arith.truncf %153 : vector<16x8xf32> to vector<16x8xbf16>
    %c0_53 = arith.constant 0 : index
    %c0_54 = arith.constant 0 : index
    %c0_55 = arith.constant 0 : index
    %155 = vector.load %arg7[%c0_53, %c0_54, %c0_55] : memref<4x8x32xbf16, #tpu.memory_space<vmem>>, vector<1x8x32xbf16>
    %156 = vector.shape_cast %155 : vector<1x8x32xbf16> to vector<8x32xbf16>
    %cst_56 = arith.constant dense<0.000000e+00> : vector<16x32xf32>
    %157 = tpu.matmul %154, %156, %cst_56 {dimension_numbers = #tpu.dot_dimension_numbers<[1], [0], [0], [1], [0, 0, 1, 1], [], []>} : vector<16x8xbf16>, vector<8x32xbf16>, vector<16x32xf32> -> vector<16x32xf32>
    %158 = arith.addf %137, %157 : vector<16x32xf32>
    %159 = vector.extract_strided_slice %49 {offsets = [16, 8], sizes = [16, 8], strides = [1, 1]} : vector<32x32xbf16> to vector<16x8xbf16>
    %160 = vector.extract_strided_slice %50 {offsets = [16, 8], sizes = [16, 8], strides = [1, 1]} : vector<32x32xbf16> to vector<16x8xbf16>
    %cst_57 = arith.constant dense<0.000000e+00> : vector<16x16xf32>
    %161 = tpu.matmul %159, %160, %cst_57 {dimension_numbers = #tpu.dot_dimension_numbers<[1], [1], [0], [0], [0, 0, 1, 0], [], []>} : vector<16x8xbf16>, vector<16x8xbf16>, vector<16x16xf32> -> vector<16x16xf32>
    %cst_58 = arith.constant dense<0xFF800000> : vector<16xf32>
    %162 = vector.multi_reduction <maximumf>, %161, %cst_58 [1] : vector<16x16xf32> to vector<16xf32>
    %163 = vector.shape_cast %162 : vector<16xf32> to vector<16x1xf32>
    %164 = vector.broadcast %163 : vector<16x1xf32> to vector<16x16xf32>
    %165 = arith.subf %161, %164 : vector<16x16xf32>
    %166 = math.exp %165 : vector<16x16xf32>
    %cst_59 = arith.constant dense<0.000000e+00> : vector<16xf32>
    %167 = vector.multi_reduction <add>, %166, %cst_59 [1] : vector<16x16xf32> to vector<16xf32>
    %168 = vector.shape_cast %167 : vector<16xf32> to vector<16x1xf32>
    %169 = tpu.reciprocal %168 {approx = true} : vector<16x1xf32> -> vector<16x1xf32>
    %170 = vector.broadcast %169 : vector<16x1xf32> to vector<16x16xf32>
    %171 = arith.mulf %166, %170 : vector<16x16xf32>
    %172 = arith.truncf %171 : vector<16x16xf32> to vector<16x16xbf16>
    %173 = vector.extract_strided_slice %51 {offsets = [16, 8], sizes = [16, 8], strides = [1, 1]} : vector<32x32xbf16> to vector<16x8xbf16>
    %cst_60 = arith.constant dense<0.000000e+00> : vector<16x8xf32>
    %174 = tpu.matmul %172, %173, %cst_60 {dimension_numbers = #tpu.dot_dimension_numbers<[1], [0], [0], [1], [0, 0, 1, 1], [], []>} : vector<16x16xbf16>, vector<16x8xbf16>, vector<16x8xf32> -> vector<16x8xf32>
    %175 = arith.truncf %174 : vector<16x8xf32> to vector<16x8xbf16>
    %c1_61 = arith.constant 1 : index
    %c0_62 = arith.constant 0 : index
    %c0_63 = arith.constant 0 : index
    %176 = vector.load %arg7[%c1_61, %c0_62, %c0_63] : memref<4x8x32xbf16, #tpu.memory_space<vmem>>, vector<1x8x32xbf16>
    %177 = vector.shape_cast %176 : vector<1x8x32xbf16> to vector<8x32xbf16>
    %cst_64 = arith.constant dense<0.000000e+00> : vector<16x32xf32>
    %178 = tpu.matmul %175, %177, %cst_64 {dimension_numbers = #tpu.dot_dimension_numbers<[1], [0], [0], [1], [0, 0, 1, 1], [], []>} : vector<16x8xbf16>, vector<8x32xbf16>, vector<16x32xf32> -> vector<16x32xf32>
    %179 = arith.addf %158, %178 : vector<16x32xf32>
    %180 = vector.extract_strided_slice %49 {offsets = [16, 16], sizes = [16, 8], strides = [1, 1]} : vector<32x32xbf16> to vector<16x8xbf16>
    %181 = vector.extract_strided_slice %50 {offsets = [16, 16], sizes = [16, 8], strides = [1, 1]} : vector<32x32xbf16> to vector<16x8xbf16>
    %cst_65 = arith.constant dense<0.000000e+00> : vector<16x16xf32>
    %182 = tpu.matmul %180, %181, %cst_65 {dimension_numbers = #tpu.dot_dimension_numbers<[1], [1], [0], [0], [0, 0, 1, 0], [], []>} : vector<16x8xbf16>, vector<16x8xbf16>, vector<16x16xf32> -> vector<16x16xf32>
    %cst_66 = arith.constant dense<0xFF800000> : vector<16xf32>
    %183 = vector.multi_reduction <maximumf>, %182, %cst_66 [1] : vector<16x16xf32> to vector<16xf32>
    %184 = vector.shape_cast %183 : vector<16xf32> to vector<16x1xf32>
    %185 = vector.broadcast %184 : vector<16x1xf32> to vector<16x16xf32>
    %186 = arith.subf %182, %185 : vector<16x16xf32>
    %187 = math.exp %186 : vector<16x16xf32>
    %cst_67 = arith.constant dense<0.000000e+00> : vector<16xf32>
    %188 = vector.multi_reduction <add>, %187, %cst_67 [1] : vector<16x16xf32> to vector<16xf32>
    %189 = vector.shape_cast %188 : vector<16xf32> to vector<16x1xf32>
    %190 = tpu.reciprocal %189 {approx = true} : vector<16x1xf32> -> vector<16x1xf32>
    %191 = vector.broadcast %190 : vector<16x1xf32> to vector<16x16xf32>
    %192 = arith.mulf %187, %191 : vector<16x16xf32>
    %193 = arith.truncf %192 : vector<16x16xf32> to vector<16x16xbf16>
    %194 = vector.extract_strided_slice %51 {offsets = [16, 16], sizes = [16, 8], strides = [1, 1]} : vector<32x32xbf16> to vector<16x8xbf16>
    %cst_68 = arith.constant dense<0.000000e+00> : vector<16x8xf32>
    %195 = tpu.matmul %193, %194, %cst_68 {dimension_numbers = #tpu.dot_dimension_numbers<[1], [0], [0], [1], [0, 0, 1, 1], [], []>} : vector<16x16xbf16>, vector<16x8xbf16>, vector<16x8xf32> -> vector<16x8xf32>
    %196 = arith.truncf %195 : vector<16x8xf32> to vector<16x8xbf16>
    %c2_69 = arith.constant 2 : index
    %c0_70 = arith.constant 0 : index
    %c0_71 = arith.constant 0 : index
    %197 = vector.load %arg7[%c2_69, %c0_70, %c0_71] : memref<4x8x32xbf16, #tpu.memory_space<vmem>>, vector<1x8x32xbf16>
    %198 = vector.shape_cast %197 : vector<1x8x32xbf16> to vector<8x32xbf16>
    %cst_72 = arith.constant dense<0.000000e+00> : vector<16x32xf32>
    %199 = tpu.matmul %196, %198, %cst_72 {dimension_numbers = #tpu.dot_dimension_numbers<[1], [0], [0], [1], [0, 0, 1, 1], [], []>} : vector<16x8xbf16>, vector<8x32xbf16>, vector<16x32xf32> -> vector<16x32xf32>
    %200 = arith.addf %179, %199 : vector<16x32xf32>
    %201 = vector.extract_strided_slice %49 {offsets = [16, 24], sizes = [16, 8], strides = [1, 1]} : vector<32x32xbf16> to vector<16x8xbf16>
    %202 = vector.extract_strided_slice %50 {offsets = [16, 24], sizes = [16, 8], strides = [1, 1]} : vector<32x32xbf16> to vector<16x8xbf16>
    %cst_73 = arith.constant dense<0.000000e+00> : vector<16x16xf32>
    %203 = tpu.matmul %201, %202, %cst_73 {dimension_numbers = #tpu.dot_dimension_numbers<[1], [1], [0], [0], [0, 0, 1, 0], [], []>} : vector<16x8xbf16>, vector<16x8xbf16>, vector<16x16xf32> -> vector<16x16xf32>
    %cst_74 = arith.constant dense<0xFF800000> : vector<16xf32>
    %204 = vector.multi_reduction <maximumf>, %203, %cst_74 [1] : vector<16x16xf32> to vector<16xf32>
    %205 = vector.shape_cast %204 : vector<16xf32> to vector<16x1xf32>
    %206 = vector.broadcast %205 : vector<16x1xf32> to vector<16x16xf32>
    %207 = arith.subf %203, %206 : vector<16x16xf32>
    %208 = math.exp %207 : vector<16x16xf32>
    %cst_75 = arith.constant dense<0.000000e+00> : vector<16xf32>
    %209 = vector.multi_reduction <add>, %208, %cst_75 [1] : vector<16x16xf32> to vector<16xf32>
    %210 = vector.shape_cast %209 : vector<16xf32> to vector<16x1xf32>
    %211 = tpu.reciprocal %210 {approx = true} : vector<16x1xf32> -> vector<16x1xf32>
    %212 = vector.broadcast %211 : vector<16x1xf32> to vector<16x16xf32>
    %213 = arith.mulf %208, %212 : vector<16x16xf32>
    %214 = arith.truncf %213 : vector<16x16xf32> to vector<16x16xbf16>
    %215 = vector.extract_strided_slice %51 {offsets = [16, 24], sizes = [16, 8], strides = [1, 1]} : vector<32x32xbf16> to vector<16x8xbf16>
    %cst_76 = arith.constant dense<0.000000e+00> : vector<16x8xf32>
    %216 = tpu.matmul %214, %215, %cst_76 {dimension_numbers = #tpu.dot_dimension_numbers<[1], [0], [0], [1], [0, 0, 1, 1], [], []>} : vector<16x16xbf16>, vector<16x8xbf16>, vector<16x8xf32> -> vector<16x8xf32>
    %217 = arith.truncf %216 : vector<16x8xf32> to vector<16x8xbf16>
    %c3_77 = arith.constant 3 : index
    %c0_78 = arith.constant 0 : index
    %c0_79 = arith.constant 0 : index
    %218 = vector.load %arg7[%c3_77, %c0_78, %c0_79] : memref<4x8x32xbf16, #tpu.memory_space<vmem>>, vector<1x8x32xbf16>
    %219 = vector.shape_cast %218 : vector<1x8x32xbf16> to vector<8x32xbf16>
    %cst_80 = arith.constant dense<0.000000e+00> : vector<16x32xf32>
    %220 = tpu.matmul %217, %219, %cst_80 {dimension_numbers = #tpu.dot_dimension_numbers<[1], [0], [0], [1], [0, 0, 1, 1], [], []>} : vector<16x8xbf16>, vector<8x32xbf16>, vector<16x32xf32> -> vector<16x32xf32>
    %221 = arith.addf %200, %220 : vector<16x32xf32>
    %222 = tpu.concatenate %136, %221 in 0 : vector<16x32xf32>, vector<16x32xf32> -> vector<32x32xf32>
    %223 = arith.addf %0, %222 : vector<32x32xf32>
    %224 = vector.broadcast %8 : vector<1x32xf32> to vector<32x32xf32>
    %225 = arith.addf %223, %224 : vector<32x32xf32>
    %226 = tpu.iota {dimensions = array<i32: 0>} : vector<32x1xi32>
    %c16_i32 = arith.constant 16 : i32
    %c0_i32 = arith.constant 0 : i32
    %227 = arith.cmpi eq, %c16_i32, %c0_i32 : i32
    %c1_i32 = arith.constant 1 : i32
    %228 = arith.select %227, %c1_i32, %c16_i32 : i32
    %229 = vector.broadcast %228 : i32 to vector<32x1xi32>
    %230 = arith.remsi %226, %229 : vector<32x1xi32>
    %c0_i32_81 = arith.constant 0 : i32
    %231 = vector.broadcast %c0_i32_81 : i32 to vector<32x1xi32>
    %232 = arith.cmpi ne, %230, %231 : vector<32x1xi32>
    %c0_i32_82 = arith.constant 0 : i32
    %233 = vector.broadcast %c0_i32_82 : i32 to vector<32x1xi32>
    %234 = arith.cmpi slt, %230, %233 : vector<32x1xi32>
    %c0_i32_83 = arith.constant 0 : i32
    %235 = arith.cmpi slt, %228, %c0_i32_83 : i32
    %236 = vector.broadcast %235 : i1 to vector<32x1xi1>
    %237 = vector.broadcast %236 : vector<32x1xi1> to vector<32x1xi1>
    %238 = arith.xori %234, %237 : vector<32x1xi1>
    %239 = arith.andi %238, %232 : vector<32x1xi1>
    %240 = vector.broadcast %228 : i32 to vector<32x1xi32>
    %241 = arith.addi %230, %240 : vector<32x1xi32>
    %242 = arith.select %239, %241, %230 : vector<32x1xi1>, vector<32x1xi32>
    %c0_i32_84 = arith.constant 0 : i32
    %243 = vector.broadcast %c0_i32_84 : i32 to vector<32x1xi32>
    %244 = arith.cmpi ne, %242, %243 : vector<32x1xi32>
    %c15_i32 = arith.constant 15 : i32
    %245 = vector.broadcast %c15_i32 : i32 to vector<32x1xi32>
    %246 = arith.cmpi ne, %242, %245 : vector<32x1xi32>
    %cst_85 = arith.constant dense<0.000000e+00> : vector<32xf32>
    %247 = vector.multi_reduction <add>, %225, %cst_85 [1] : vector<32x32xf32> to vector<32xf32>
    %248 = vector.shape_cast %247 : vector<32xf32> to vector<32x1xf32>
    %cst_86 = arith.constant 3.200000e+01 : f32
    %249 = vector.broadcast %cst_86 : f32 to vector<32x1xf32>
    %250 = arith.divf %248, %249 : vector<32x1xf32>
    %251 = vector.broadcast %250 : vector<32x1xf32> to vector<32x32xf32>
    %252 = arith.subf %225, %251 : vector<32x32xf32>
    %253 = arith.mulf %252, %252 : vector<32x32xf32>
    %cst_87 = arith.constant dense<0.000000e+00> : vector<32xf32>
    %254 = vector.multi_reduction <add>, %253, %cst_87 [1] : vector<32x32xf32> to vector<32xf32>
    %255 = vector.shape_cast %254 : vector<32xf32> to vector<32x1xf32>
    %cst_88 = arith.constant 3.200000e+01 : f32
    %256 = vector.broadcast %cst_88 : f32 to vector<32x1xf32>
    %257 = arith.divf %255, %256 : vector<32x1xf32>
    %cst_89 = arith.constant 9.99999974E-6 : f32
    %258 = vector.broadcast %cst_89 : f32 to vector<32x1xf32>
    %259 = arith.addf %257, %258 : vector<32x1xf32>
    %260 = math.rsqrt %259 : vector<32x1xf32>
    %261 = vector.broadcast %260 : vector<32x1xf32> to vector<32x32xf32>
    %262 = arith.mulf %252, %261 : vector<32x32xf32>
    %263 = vector.broadcast %9 : vector<1x32xf32> to vector<32x32xf32>
    %264 = arith.mulf %262, %263 : vector<32x32xf32>
    %265 = vector.broadcast %10 : vector<1x32xf32> to vector<32x32xf32>
    %266 = arith.addf %264, %265 : vector<32x32xf32>
    %c1_i32_90 = arith.constant 1 : i32
    %267 = tpu.dynamic_rotate %266 by %c1_i32_90 dim 0 : vector<32x32xf32>, i32 -> vector<32x32xf32>
    %cst_91 = arith.constant 0.000000e+00 : f32
    %268 = vector.shape_cast %244 : vector<32x1xi1> to vector<32x1xi1>
    %269 = vector.broadcast %268 : vector<32x1xi1> to vector<32x32xi1>
    %270 = vector.broadcast %cst_91 : f32 to vector<32x32xf32>
    %271 = arith.select %269, %267, %270 : vector<32x32xi1>, vector<32x32xf32>
    %c31_i32 = arith.constant 31 : i32
    %272 = tpu.dynamic_rotate %266 by %c31_i32 dim 0 : vector<32x32xf32>, i32 -> vector<32x32xf32>
    %cst_92 = arith.constant 0.000000e+00 : f32
    %273 = vector.shape_cast %246 : vector<32x1xi1> to vector<32x1xi1>
    %274 = vector.broadcast %273 : vector<32x1xi1> to vector<32x32xi1>
    %275 = vector.broadcast %cst_92 : f32 to vector<32x32xf32>
    %276 = arith.select %274, %272, %275 : vector<32x32xi1>, vector<32x32xf32>
    %277 = arith.truncf %271 : vector<32x32xf32> to vector<32x32xbf16>
    %278 = arith.truncf %276 : vector<32x32xf32> to vector<32x32xbf16>
    %c0_93 = arith.constant 0 : index
    %c0_94 = arith.constant 0 : index
    %c0_95 = arith.constant 0 : index
    %279 = vector.load %arg8[%c0_93, %c0_94, %c0_95] : memref<3x32x16xbf16, #tpu.memory_space<vmem>>, vector<1x32x16xbf16>
    %280 = vector.shape_cast %279 : vector<1x32x16xbf16> to vector<32x16xbf16>
    %cst_96 = arith.constant dense<0.000000e+00> : vector<32x16xf32>
    %281 = tpu.matmul %277, %280, %cst_96 {dimension_numbers = #tpu.dot_dimension_numbers<[1], [0], [0], [1], [0, 0, 1, 1], [], []>} : vector<32x32xbf16>, vector<32x16xbf16>, vector<32x16xf32> -> vector<32x16xf32>
    %282 = arith.truncf %266 : vector<32x32xf32> to vector<32x32xbf16>
    %c1_97 = arith.constant 1 : index
    %c0_98 = arith.constant 0 : index
    %c0_99 = arith.constant 0 : index
    %283 = vector.load %arg8[%c1_97, %c0_98, %c0_99] : memref<3x32x16xbf16, #tpu.memory_space<vmem>>, vector<1x32x16xbf16>
    %284 = vector.shape_cast %283 : vector<1x32x16xbf16> to vector<32x16xbf16>
    %cst_100 = arith.constant dense<0.000000e+00> : vector<32x16xf32>
    %285 = tpu.matmul %282, %284, %cst_100 {dimension_numbers = #tpu.dot_dimension_numbers<[1], [0], [0], [1], [0, 0, 1, 1], [], []>} : vector<32x32xbf16>, vector<32x16xbf16>, vector<32x16xf32> -> vector<32x16xf32>
    %286 = arith.addf %281, %285 : vector<32x16xf32>
    %c2_101 = arith.constant 2 : index
    %c0_102 = arith.constant 0 : index
    %c0_103 = arith.constant 0 : index
    %287 = vector.load %arg8[%c2_101, %c0_102, %c0_103] : memref<3x32x16xbf16, #tpu.memory_space<vmem>>, vector<1x32x16xbf16>
    %288 = vector.shape_cast %287 : vector<1x32x16xbf16> to vector<32x16xbf16>
    %cst_104 = arith.constant dense<0.000000e+00> : vector<32x16xf32>
    %289 = tpu.matmul %278, %288, %cst_104 {dimension_numbers = #tpu.dot_dimension_numbers<[1], [0], [0], [1], [0, 0, 1, 1], [], []>} : vector<32x32xbf16>, vector<32x16xbf16>, vector<32x16xf32> -> vector<32x16xf32>
    %290 = arith.addf %286, %289 : vector<32x16xf32>
    %291 = vector.broadcast %11 : vector<1x16xf32> to vector<32x16xf32>
    %292 = arith.addf %290, %291 : vector<32x16xf32>
    %cst_105 = arith.constant 5.000000e-01 : f32
    %293 = vector.broadcast %cst_105 : f32 to vector<32x16xf32>
    %294 = arith.mulf %293, %292 : vector<32x16xf32>
    %cst_106 = arith.constant 0.707106769 : f32
    %295 = vector.broadcast %cst_106 : f32 to vector<32x16xf32>
    %296 = arith.mulf %292, %295 : vector<32x16xf32>
    %297 = math.absf %296 : vector<32x16xf32>
    %cst_107 = arith.constant 0.327591091 : f32
    %298 = vector.broadcast %cst_107 : f32 to vector<32x16xf32>
    %299 = arith.mulf %298, %297 : vector<32x16xf32>
    %cst_108 = arith.constant 1.000000e+00 : f32
    %300 = vector.broadcast %cst_108 : f32 to vector<32x16xf32>
    %301 = arith.addf %300, %299 : vector<32x16xf32>
    %cst_109 = arith.constant 1.000000e+00 : f32
    %302 = vector.broadcast %cst_109 : f32 to vector<32x16xf32>
    %303 = arith.divf %302, %301 : vector<32x16xf32>
    %cst_110 = arith.constant 1.06140542 : f32
    %304 = vector.broadcast %cst_110 : f32 to vector<32x16xf32>
    %305 = arith.mulf %304, %303 : vector<32x16xf32>
    %cst_111 = arith.constant -1.45315206 : f32
    %306 = vector.broadcast %cst_111 : f32 to vector<32x16xf32>
    %307 = arith.addf %305, %306 : vector<32x16xf32>
    %308 = arith.mulf %307, %303 : vector<32x16xf32>
    %cst_112 = arith.constant 1.42141378 : f32
    %309 = vector.broadcast %cst_112 : f32 to vector<32x16xf32>
    %310 = arith.addf %308, %309 : vector<32x16xf32>
    %311 = arith.mulf %310, %303 : vector<32x16xf32>
    %cst_113 = arith.constant -0.284496725 : f32
    %312 = vector.broadcast %cst_113 : f32 to vector<32x16xf32>
    %313 = arith.addf %311, %312 : vector<32x16xf32>
    %314 = arith.mulf %313, %303 : vector<32x16xf32>
    %cst_114 = arith.constant 0.254829586 : f32
    %315 = vector.broadcast %cst_114 : f32 to vector<32x16xf32>
    %316 = arith.addf %314, %315 : vector<32x16xf32>
    %317 = arith.mulf %316, %303 : vector<32x16xf32>
    %318 = arith.mulf %297, %297 : vector<32x16xf32>
    %cst_115 = arith.constant 0.000000e+00 : f32
    %319 = vector.broadcast %cst_115 : f32 to vector<32x16xf32>
    %320 = arith.subf %319, %318 : vector<32x16xf32>
    %321 = math.exp %320 : vector<32x16xf32>
    %322 = arith.mulf %317, %321 : vector<32x16xf32>
    %cst_116 = arith.constant 1.000000e+00 : f32
    %323 = vector.broadcast %cst_116 : f32 to vector<32x16xf32>
    %324 = arith.subf %323, %322 : vector<32x16xf32>
    %cst_117 = arith.constant 0.000000e+00 : f32
    %325 = vector.broadcast %cst_117 : f32 to vector<32x16xf32>
    %326 = arith.cmpf olt, %296, %325 : vector<32x16xf32>
    %cst_118 = arith.constant 0.000000e+00 : f32
    %327 = vector.broadcast %cst_118 : f32 to vector<32x16xf32>
    %328 = arith.subf %327, %324 : vector<32x16xf32>
    %329 = arith.select %326, %328, %324 : vector<32x16xi1>, vector<32x16xf32>
    %cst_119 = arith.constant 1.000000e+00 : f32
    %330 = vector.broadcast %cst_119 : f32 to vector<32x16xf32>
    %331 = arith.addf %330, %329 : vector<32x16xf32>
    %332 = arith.mulf %294, %331 : vector<32x16xf32>
    %c1_i32_120 = arith.constant 1 : i32
    %333 = tpu.dynamic_rotate %332 by %c1_i32_120 dim 0 : vector<32x16xf32>, i32 -> vector<32x16xf32>
    %cst_121 = arith.constant 0.000000e+00 : f32
    %334 = vector.shape_cast %244 : vector<32x1xi1> to vector<32x1xi1>
    %335 = vector.broadcast %334 : vector<32x1xi1> to vector<32x16xi1>
    %336 = vector.broadcast %cst_121 : f32 to vector<32x16xf32>
    %337 = arith.select %335, %333, %336 : vector<32x16xi1>, vector<32x16xf32>
    %c31_i32_122 = arith.constant 31 : i32
    %338 = tpu.dynamic_rotate %332 by %c31_i32_122 dim 0 : vector<32x16xf32>, i32 -> vector<32x16xf32>
    %cst_123 = arith.constant 0.000000e+00 : f32
    %339 = vector.shape_cast %246 : vector<32x1xi1> to vector<32x1xi1>
    %340 = vector.broadcast %339 : vector<32x1xi1> to vector<32x16xi1>
    %341 = vector.broadcast %cst_123 : f32 to vector<32x16xf32>
    %342 = arith.select %340, %338, %341 : vector<32x16xi1>, vector<32x16xf32>
    %343 = arith.truncf %337 : vector<32x16xf32> to vector<32x16xbf16>
    %344 = arith.truncf %342 : vector<32x16xf32> to vector<32x16xbf16>
    %c0_124 = arith.constant 0 : index
    %c0_125 = arith.constant 0 : index
    %c0_126 = arith.constant 0 : index
    %345 = vector.load %arg9[%c0_124, %c0_125, %c0_126] : memref<3x16x16xbf16, #tpu.memory_space<vmem>>, vector<1x16x16xbf16>
    %346 = vector.shape_cast %345 : vector<1x16x16xbf16> to vector<16x16xbf16>
    %cst_127 = arith.constant dense<0.000000e+00> : vector<32x16xf32>
    %347 = tpu.matmul %343, %346, %cst_127 {dimension_numbers = #tpu.dot_dimension_numbers<[1], [0], [0], [1], [0, 0, 1, 1], [], []>} : vector<32x16xbf16>, vector<16x16xbf16>, vector<32x16xf32> -> vector<32x16xf32>
    %348 = arith.truncf %332 : vector<32x16xf32> to vector<32x16xbf16>
    %c1_128 = arith.constant 1 : index
    %c0_129 = arith.constant 0 : index
    %c0_130 = arith.constant 0 : index
    %349 = vector.load %arg9[%c1_128, %c0_129, %c0_130] : memref<3x16x16xbf16, #tpu.memory_space<vmem>>, vector<1x16x16xbf16>
    %350 = vector.shape_cast %349 : vector<1x16x16xbf16> to vector<16x16xbf16>
    %cst_131 = arith.constant dense<0.000000e+00> : vector<32x16xf32>
    %351 = tpu.matmul %348, %350, %cst_131 {dimension_numbers = #tpu.dot_dimension_numbers<[1], [0], [0], [1], [0, 0, 1, 1], [], []>} : vector<32x16xbf16>, vector<16x16xbf16>, vector<32x16xf32> -> vector<32x16xf32>
    %352 = arith.addf %347, %351 : vector<32x16xf32>
    %c2_132 = arith.constant 2 : index
    %c0_133 = arith.constant 0 : index
    %c0_134 = arith.constant 0 : index
    %353 = vector.load %arg9[%c2_132, %c0_133, %c0_134] : memref<3x16x16xbf16, #tpu.memory_space<vmem>>, vector<1x16x16xbf16>
    %354 = vector.shape_cast %353 : vector<1x16x16xbf16> to vector<16x16xbf16>
    %cst_135 = arith.constant dense<0.000000e+00> : vector<32x16xf32>
    %355 = tpu.matmul %344, %354, %cst_135 {dimension_numbers = #tpu.dot_dimension_numbers<[1], [0], [0], [1], [0, 0, 1, 1], [], []>} : vector<32x16xbf16>, vector<16x16xbf16>, vector<32x16xf32> -> vector<32x16xf32>
    %356 = arith.addf %352, %355 : vector<32x16xf32>
    %357 = vector.broadcast %12 : vector<1x16xf32> to vector<32x16xf32>
    %358 = arith.addf %356, %357 : vector<32x16xf32>
    %359 = arith.truncf %225 : vector<32x32xf32> to vector<32x32xbf16>
    %c0_136 = arith.constant 0 : index
    %c0_137 = arith.constant 0 : index
    %360 = vector.load %arg10[%c0_136, %c0_137] : memref<32x16xbf16, #tpu.memory_space<vmem>>, vector<32x16xbf16>
    %cst_138 = arith.constant dense<0.000000e+00> : vector<32x16xf32>
    %361 = tpu.matmul %359, %360, %cst_138 {dimension_numbers = #tpu.dot_dimension_numbers<[1], [0], [0], [1], [0, 0, 1, 1], [], []>} : vector<32x32xbf16>, vector<32x16xbf16>, vector<32x16xf32> -> vector<32x16xf32>
    %362 = vector.broadcast %13 : vector<1x16xf32> to vector<32x16xf32>
    %363 = arith.addf %361, %362 : vector<32x16xf32>
    %364 = arith.addf %363, %358 : vector<32x16xf32>
    %cst_139 = arith.constant dense<0.000000e+00> : vector<32xf32>
    %365 = vector.multi_reduction <add>, %364, %cst_139 [1] : vector<32x16xf32> to vector<32xf32>
    %366 = vector.shape_cast %365 : vector<32xf32> to vector<32x1xf32>
    %cst_140 = arith.constant 1.600000e+01 : f32
    %367 = vector.broadcast %cst_140 : f32 to vector<32x1xf32>
    %368 = arith.divf %366, %367 : vector<32x1xf32>
    %369 = vector.broadcast %368 : vector<32x1xf32> to vector<32x16xf32>
    %370 = arith.subf %364, %369 : vector<32x16xf32>
    %371 = arith.mulf %370, %370 : vector<32x16xf32>
    %cst_141 = arith.constant dense<0.000000e+00> : vector<32xf32>
    %372 = vector.multi_reduction <add>, %371, %cst_141 [1] : vector<32x16xf32> to vector<32xf32>
    %373 = vector.shape_cast %372 : vector<32xf32> to vector<32x1xf32>
    %cst_142 = arith.constant 1.600000e+01 : f32
    %374 = vector.broadcast %cst_142 : f32 to vector<32x1xf32>
    %375 = arith.divf %373, %374 : vector<32x1xf32>
    %cst_143 = arith.constant 9.99999974E-6 : f32
    %376 = vector.broadcast %cst_143 : f32 to vector<32x1xf32>
    %377 = arith.addf %375, %376 : vector<32x1xf32>
    %378 = math.rsqrt %377 : vector<32x1xf32>
    %379 = vector.broadcast %378 : vector<32x1xf32> to vector<32x16xf32>
    %380 = arith.mulf %370, %379 : vector<32x16xf32>
    %381 = vector.broadcast %14 : vector<1x16xf32> to vector<32x16xf32>
    %382 = arith.mulf %380, %381 : vector<32x16xf32>
    %383 = vector.broadcast %15 : vector<1x16xf32> to vector<32x16xf32>
    %384 = arith.addf %382, %383 : vector<32x16xf32>
    %c0_144 = arith.constant 0 : index
    %c0_145 = arith.constant 0 : index
    %385 = vector.load %arg11[%c0_144, %c0_145] : memref<32x16xf32, #tpu.memory_space<vmem>>, vector<32x16xf32>
    tpu.vector_store %arg11[%c0_144, %c0_145], %384 {strides = array<i32>} : memref<32x16xf32, #tpu.memory_space<vmem>>, vector<32x16xf32>,
    return
  }
  func.func @transform_0(%arg0: i32) -> (i32, i32) {
    %c0_i32 = arith.constant 0 : i32
    %c0_i32_0 = arith.constant 0 : i32
    return %arg0, %c0_i32 : i32, i32
  }
  func.func @transform_1(%arg0: i32) -> (i32, i32) {
    %c0_i32 = arith.constant 0 : i32
    %c0_i32_0 = arith.constant 0 : i32
    %c0_i32_1 = arith.constant 0 : i32
    return %c0_i32, %c0_i32_0 : i32, i32
  }
  func.func @transform_2(%arg0: i32) -> (i32, i32) {
    %c0_i32 = arith.constant 0 : i32
    %c0_i32_0 = arith.constant 0 : i32
    %c0_i32_1 = arith.constant 0 : i32
    return %c0_i32, %c0_i32_0 : i32, i32
  }
  func.func @transform_3(%arg0: i32) -> (i32, i32) {
    %c0_i32 = arith.constant 0 : i32
    %c0_i32_0 = arith.constant 0 : i32
    %c0_i32_1 = arith.constant 0 : i32
    return %c0_i32, %c0_i32_0 : i32, i32
  }
  func.func @transform_4(%arg0: i32) -> (i32, i32) {
    %c0_i32 = arith.constant 0 : i32
    %c0_i32_0 = arith.constant 0 : i32
    %c0_i32_1 = arith.constant 0 : i32
    return %c0_i32, %c0_i32_0 : i32, i32
  }
  func.func @transform_5(%arg0: i32) -> (i32, i32) {
    %c0_i32 = arith.constant 0 : i32
    %c0_i32_0 = arith.constant 0 : i32
    %c0_i32_1 = arith.constant 0 : i32
    return %c0_i32, %c0_i32_0 : i32, i32
  }
  func.func @transform_6(%arg0: i32) -> (i32, i32, i32) {
    %c0_i32 = arith.constant 0 : i32
    %c0_i32_0 = arith.constant 0 : i32
    %c0_i32_1 = arith.constant 0 : i32
    %c0_i32_2 = arith.constant 0 : i32
    return %c0_i32, %c0_i32_0, %c0_i32_1 : i32, i32, i32
  }
  func.func @transform_7(%arg0: i32) -> (i32, i32, i32) {
    %c0_i32 = arith.constant 0 : i32
    %c0_i32_0 = arith.constant 0 : i32
    %c0_i32_1 = arith.constant 0 : i32
    %c0_i32_2 = arith.constant 0 : i32
    return %c0_i32, %c0_i32_0, %c0_i32_1 : i32, i32, i32
  }
  func.func @transform_8(%arg0: i32) -> (i32, i32, i32) {
    %c0_i32 = arith.constant 0 : i32
    %c0_i32_0 = arith.constant 0 : i32
    %c0_i32_1 = arith.constant 0 : i32
    %c0_i32_2 = arith.constant 0 : i32
    return %c0_i32, %c0_i32_0, %c0_i32_1 : i32, i32, i32
  }
  func.func @transform_9(%arg0: i32) -> (i32, i32) {
    %c0_i32 = arith.constant 0 : i32
    %c0_i32_0 = arith.constant 0 : i32
    %c0_i32_1 = arith.constant 0 : i32
    return %c0_i32, %c0_i32_0 : i32, i32
  }
  func.func @transform_10(%arg0: i32) -> (i32, i32) {
    %c0_i32 = arith.constant 0 : i32
    %c0_i32_0 = arith.constant 0 : i32
    return %arg0, %c0_i32 : i32, i32
  }
}

module attributes {stable_mosaic.version = 11 : i64} {
  func.func @encoder_block_kernel(%arg0: i32, %arg1: memref<32x32xf32, #tpu.memory_space<vmem>>, %arg2: memref<8x32xf32, #tpu.memory_space<vmem>>, %arg3: memref<8x16xf32, #tpu.memory_space<vmem>>, %arg4: memref<32x32xbf16, #tpu.memory_space<vmem>>, %arg5: memref<32x32xbf16, #tpu.memory_space<vmem>>, %arg6: memref<32x32xbf16, #tpu.memory_space<vmem>>, %arg7: memref<4x8x32xbf16, #tpu.memory_space<vmem>>, %arg8: memref<3x32x16xbf16, #tpu.memory_space<vmem>>, %arg9: memref<3x16x16xbf16, #tpu.memory_space<vmem>>, %arg10: memref<32x16xbf16, #tpu.memory_space<vmem>>, %arg11: memref<32x16xf32, #tpu.memory_space<vmem>>) attributes {dimension_semantics = [#tpu.dimension_semantics<parallel>], iteration_bounds = array<i64: 2>, scalar_prefetch = 0 : i64, scratch_operands = 0 : i64, tpu.core_type = #tpu.core_type<tc>, window_params = [{transform_indices = @transform_0, window_bounds = array<i64: 32, 32>}, {pipeline_mode = #tpu.pipeline_mode<synchronous>, transform_indices = @transform_1, window_bounds = array<i64: 8, 32>}, {pipeline_mode = #tpu.pipeline_mode<synchronous>, transform_indices = @transform_2, window_bounds = array<i64: 8, 16>}, {pipeline_mode = #tpu.pipeline_mode<synchronous>, transform_indices = @transform_3, window_bounds = array<i64: 32, 32>}, {pipeline_mode = #tpu.pipeline_mode<synchronous>, transform_indices = @transform_4, window_bounds = array<i64: 32, 32>}, {pipeline_mode = #tpu.pipeline_mode<synchronous>, transform_indices = @transform_5, window_bounds = array<i64: 32, 32>}, {pipeline_mode = #tpu.pipeline_mode<synchronous>, transform_indices = @transform_6, window_bounds = array<i64: 4, 8, 32>}, {pipeline_mode = #tpu.pipeline_mode<synchronous>, transform_indices = @transform_7, window_bounds = array<i64: 3, 32, 16>}, {pipeline_mode = #tpu.pipeline_mode<synchronous>, transform_indices = @transform_8, window_bounds = array<i64: 3, 16, 16>}, {pipeline_mode = #tpu.pipeline_mode<synchronous>, transform_indices = @transform_9, window_bounds = array<i64: 32, 16>}, {transform_indices = @transform_10, window_bounds = array<i64: 32, 16>}]} {
    %c0 = arith.constant 0 : index
    %c0_0 = arith.constant 0 : index
    %0 = vector.load %arg1[%c0, %c0_0] : memref<32x32xf32, #tpu.memory_space<vmem>>, vector<32x32xf32>
    %c0_1 = arith.constant 0 : index
    %c0_2 = arith.constant 0 : index
    %1 = vector.load %arg2[%c0_1, %c0_2] : memref<8x32xf32, #tpu.memory_space<vmem>>, vector<8x32xf32>
    %c0_3 = arith.constant 0 : index
    %c0_4 = arith.constant 0 : index
    %2 = vector.load %arg3[%c0_3, %c0_4] : memref<8x16xf32, #tpu.memory_space<vmem>>, vector<8x16xf32>
    %3 = vector.extract_strided_slice %1 {offsets = [0, 0], sizes = [1, 32], strides = [1, 1]} : vector<8x32xf32> to vector<1x32xf32>
    %4 = vector.extract_strided_slice %1 {offsets = [1, 0], sizes = [1, 32], strides = [1, 1]} : vector<8x32xf32> to vector<1x32xf32>
    %5 = vector.extract_strided_slice %1 {offsets = [2, 0], sizes = [1, 32], strides = [1, 1]} : vector<8x32xf32> to vector<1x32xf32>
    %6 = vector.extract_strided_slice %1 {offsets = [3, 0], sizes = [1, 32], strides = [1, 1]} : vector<8x32xf32> to vector<1x32xf32>
    %7 = vector.extract_strided_slice %1 {offsets = [4, 0], sizes = [1, 32], strides = [1, 1]} : vector<8x32xf32> to vector<1x32xf32>
    %8 = vector.extract_strided_slice %1 {offsets = [5, 0], sizes = [1, 32], strides = [1, 1]} : vector<8x32xf32> to vector<1x32xf32>
    %9 = vector.extract_strided_slice %1 {offsets = [6, 0], sizes = [1, 32], strides = [1, 1]} : vector<8x32xf32> to vector<1x32xf32>
    %10 = vector.extract_strided_slice %1 {offsets = [7, 0], sizes = [1, 32], strides = [1, 1]} : vector<8x32xf32> to vector<1x32xf32>
    %11 = vector.extract_strided_slice %2 {offsets = [0, 0], sizes = [1, 16], strides = [1, 1]} : vector<8x16xf32> to vector<1x16xf32>
    %12 = vector.extract_strided_slice %2 {offsets = [1, 0], sizes = [1, 16], strides = [1, 1]} : vector<8x16xf32> to vector<1x16xf32>
    %13 = vector.extract_strided_slice %2 {offsets = [2, 0], sizes = [1, 16], strides = [1, 1]} : vector<8x16xf32> to vector<1x16xf32>
    %14 = vector.extract_strided_slice %2 {offsets = [3, 0], sizes = [1, 16], strides = [1, 1]} : vector<8x16xf32> to vector<1x16xf32>
    %15 = vector.extract_strided_slice %2 {offsets = [4, 0], sizes = [1, 16], strides = [1, 1]} : vector<8x16xf32> to vector<1x16xf32>
    %cst = arith.constant dense<0.000000e+00> : vector<32xf32>
    %16 = vector.multi_reduction <add>, %0, %cst [1] : vector<32x32xf32> to vector<32xf32>
    %17 = vector.shape_cast %16 : vector<32xf32> to vector<32x1xf32>
    %cst_5 = arith.constant 3.200000e+01 : f32
    %18 = vector.broadcast %cst_5 : f32 to vector<32x1xf32>
    %19 = arith.divf %17, %18 : vector<32x1xf32>
    %20 = vector.broadcast %19 : vector<32x1xf32> to vector<32x32xf32>
    %21 = arith.subf %0, %20 : vector<32x32xf32>
    %22 = arith.mulf %21, %21 : vector<32x32xf32>
    %cst_6 = arith.constant dense<0.000000e+00> : vector<32xf32>
    %23 = vector.multi_reduction <add>, %22, %cst_6 [1] : vector<32x32xf32> to vector<32xf32>
    %24 = vector.shape_cast %23 : vector<32xf32> to vector<32x1xf32>
    %cst_7 = arith.constant 3.200000e+01 : f32
    %25 = vector.broadcast %cst_7 : f32 to vector<32x1xf32>
    %26 = arith.divf %24, %25 : vector<32x1xf32>
    %cst_8 = arith.constant 9.99999974E-6 : f32
    %27 = vector.broadcast %cst_8 : f32 to vector<32x1xf32>
    %28 = arith.addf %26, %27 : vector<32x1xf32>
    %29 = math.rsqrt %28 : vector<32x1xf32>
    %30 = vector.broadcast %29 : vector<32x1xf32> to vector<32x32xf32>
    %31 = arith.mulf %21, %30 : vector<32x32xf32>
    %32 = vector.broadcast %3 : vector<1x32xf32> to vector<32x32xf32>
    %33 = arith.mulf %31, %32 : vector<32x32xf32>
    %34 = vector.broadcast %4 : vector<1x32xf32> to vector<32x32xf32>
    %35 = arith.addf %33, %34 : vector<32x32xf32>
    %36 = arith.truncf %35 : vector<32x32xf32> to vector<32x32xbf16>
    %c0_9 = arith.constant 0 : index
    %c0_10 = arith.constant 0 : index
    %37 = vector.load %arg4[%c0_9, %c0_10] : memref<32x32xbf16, #tpu.memory_space<vmem>>, vector<32x32xbf16>
    %cst_11 = arith.constant dense<0.000000e+00> : vector<32x32xf32>
    %38 = tpu.matmul %36, %37, %cst_11 {dimension_numbers = #tpu.dot_dimension_numbers<[1], [0], [0], [1], [0, 0, 1, 1], [], []>} : vector<32x32xbf16>, vector<32x32xbf16>, vector<32x32xf32> -> vector<32x32xf32>
    %39 = vector.broadcast %5 : vector<1x32xf32> to vector<32x32xf32>
    %40 = arith.addf %38, %39 : vector<32x32xf32>
    %c0_12 = arith.constant 0 : index
    %c0_13 = arith.constant 0 : index
    %41 = vector.load %arg5[%c0_12, %c0_13] : memref<32x32xbf16, #tpu.memory_space<vmem>>, vector<32x32xbf16>
    %cst_14 = arith.constant dense<0.000000e+00> : vector<32x32xf32>
    %42 = tpu.matmul %36, %41, %cst_14 {dimension_numbers = #tpu.dot_dimension_numbers<[1], [0], [0], [1], [0, 0, 1, 1], [], []>} : vector<32x32xbf16>, vector<32x32xbf16>, vector<32x32xf32> -> vector<32x32xf32>
    %43 = vector.broadcast %6 : vector<1x32xf32> to vector<32x32xf32>
    %44 = arith.addf %42, %43 : vector<32x32xf32>
    %c0_15 = arith.constant 0 : index
    %c0_16 = arith.constant 0 : index
    %45 = vector.load %arg6[%c0_15, %c0_16] : memref<32x32xbf16, #tpu.memory_space<vmem>>, vector<32x32xbf16>
    %cst_17 = arith.constant dense<0.000000e+00> : vector<32x32xf32>
    %46 = tpu.matmul %36, %45, %cst_17 {dimension_numbers = #tpu.dot_dimension_numbers<[1], [0], [0], [1], [0, 0, 1, 1], [], []>} : vector<32x32xbf16>, vector<32x32xbf16>, vector<32x32xf32> -> vector<32x32xf32>
    %47 = vector.broadcast %7 : vector<1x32xf32> to vector<32x32xf32>
    %48 = arith.addf %46, %47 : vector<32x32xf32>
    %49 = arith.truncf %40 : vector<32x32xf32> to vector<32x32xbf16>
    %50 = arith.truncf %44 : vector<32x32xf32> to vector<32x32xbf16>
    %51 = arith.truncf %48 : vector<32x32xf32> to vector<32x32xbf16>
    %cst_18 = arith.constant 0.000000e+00 : f32
    %52 = vector.broadcast %cst_18 : f32 to vector<16x32xf32>
    %53 = vector.extract_strided_slice %49 {offsets = [0, 0], sizes = [16, 8], strides = [1, 1]} : vector<32x32xbf16> to vector<16x8xbf16>
    %54 = vector.extract_strided_slice %50 {offsets = [0, 0], sizes = [16, 8], strides = [1, 1]} : vector<32x32xbf16> to vector<16x8xbf16>
    %cst_19 = arith.constant dense<0.000000e+00> : vector<16x16xf32>
    %55 = tpu.matmul %53, %54, %cst_19 {dimension_numbers = #tpu.dot_dimension_numbers<[1], [1], [0], [0], [0, 0, 1, 0], [], []>} : vector<16x8xbf16>, vector<16x8xbf16>, vector<16x16xf32> -> vector<16x16xf32>
    %cst_20 = arith.constant dense<0xFF800000> : vector<16xf32>
    %56 = vector.multi_reduction <maximumf>, %55, %cst_20 [1] : vector<16x16xf32> to vector<16xf32>
    %57 = vector.shape_cast %56 : vector<16xf32> to vector<16x1xf32>
    %58 = vector.broadcast %57 : vector<16x1xf32> to vector<16x16xf32>
    %59 = arith.subf %55, %58 : vector<16x16xf32>
    %60 = math.exp %59 : vector<16x16xf32>
    %cst_21 = arith.constant dense<0.000000e+00> : vector<16xf32>
    %61 = vector.multi_reduction <add>, %60, %cst_21 [1] : vector<16x16xf32> to vector<16xf32>
    %62 = vector.shape_cast %61 : vector<16xf32> to vector<16x1xf32>
    %63 = tpu.reciprocal %62 {approx = true} : vector<16x1xf32> -> vector<16x1xf32>
    %64 = vector.broadcast %63 : vector<16x1xf32> to vector<16x16xf32>
    %65 = arith.mulf %60, %64 : vector<16x16xf32>
    %66 = arith.truncf %65 : vector<16x16xf32> to vector<16x16xbf16>
    %67 = vector.extract_strided_slice %51 {offsets = [0, 0], sizes = [16, 8], strides = [1, 1]} : vector<32x32xbf16> to vector<16x8xbf16>
    %cst_22 = arith.constant dense<0.000000e+00> : vector<16x8xf32>
    %68 = tpu.matmul %66, %67, %cst_22 {dimension_numbers = #tpu.dot_dimension_numbers<[1], [0], [0], [1], [0, 0, 1, 1], [], []>} : vector<16x16xbf16>, vector<16x8xbf16>, vector<16x8xf32> -> vector<16x8xf32>
    %69 = arith.truncf %68 : vector<16x8xf32> to vector<16x8xbf16>
    %c0_23 = arith.constant 0 : index
    %c0_24 = arith.constant 0 : index
    %c0_25 = arith.constant 0 : index
    %70 = vector.load %arg7[%c0_23, %c0_24, %c0_25] : memref<4x8x32xbf16, #tpu.memory_space<vmem>>, vector<1x8x32xbf16>
    %71 = vector.shape_cast %70 : vector<1x8x32xbf16> to vector<8x32xbf16>
    %cst_26 = arith.constant dense<0.000000e+00> : vector<16x32xf32>
    %72 = tpu.matmul %69, %71, %cst_26 {dimension_numbers = #tpu.dot_dimension_numbers<[1], [0], [0], [1], [0, 0, 1, 1], [], []>} : vector<16x8xbf16>, vector<8x32xbf16>, vector<16x32xf32> -> vector<16x32xf32>
    %73 = arith.addf %52, %72 : vector<16x32xf32>
    %74 = vector.extract_strided_slice %49 {offsets = [0, 8], sizes = [16, 8], strides = [1, 1]} : vector<32x32xbf16> to vector<16x8xbf16>
    %75 = vector.extract_strided_slice %50 {offsets = [0, 8], sizes = [16, 8], strides = [1, 1]} : vector<32x32xbf16> to vector<16x8xbf16>
    %cst_27 = arith.constant dense<0.000000e+00> : vector<16x16xf32>
    %76 = tpu.matmul %74, %75, %cst_27 {dimension_numbers = #tpu.dot_dimension_numbers<[1], [1], [0], [0], [0, 0, 1, 0], [], []>} : vector<16x8xbf16>, vector<16x8xbf16>, vector<16x16xf32> -> vector<16x16xf32>
    %cst_28 = arith.constant dense<0xFF800000> : vector<16xf32>
    %77 = vector.multi_reduction <maximumf>, %76, %cst_28 [1] : vector<16x16xf32> to vector<16xf32>
    %78 = vector.shape_cast %77 : vector<16xf32> to vector<16x1xf32>
    %79 = vector.broadcast %78 : vector<16x1xf32> to vector<16x16xf32>
    %80 = arith.subf %76, %79 : vector<16x16xf32>
    %81 = math.exp %80 : vector<16x16xf32>
    %cst_29 = arith.constant dense<0.000000e+00> : vector<16xf32>
    %82 = vector.multi_reduction <add>, %81, %cst_29 [1] : vector<16x16xf32> to vector<16xf32>
    %83 = vector.shape_cast %82 : vector<16xf32> to vector<16x1xf32>
    %84 = tpu.reciprocal %83 {approx = true} : vector<16x1xf32> -> vector<16x1xf32>
    %85 = vector.broadcast %84 : vector<16x1xf32> to vector<16x16xf32>
    %86 = arith.mulf %81, %85 : vector<16x16xf32>
    %87 = arith.truncf %86 : vector<16x16xf32> to vector<16x16xbf16>
    %88 = vector.extract_strided_slice %51 {offsets = [0, 8], sizes = [16, 8], strides = [1, 1]} : vector<32x32xbf16> to vector<16x8xbf16>
    %cst_30 = arith.constant dense<0.000000e+00> : vector<16x8xf32>
    %89 = tpu.matmul %87, %88, %cst_30 {dimension_numbers = #tpu.dot_dimension_numbers<[1], [0], [0], [1], [0, 0, 1, 1], [], []>} : vector<16x16xbf16>, vector<16x8xbf16>, vector<16x8xf32> -> vector<16x8xf32>
    %90 = arith.truncf %89 : vector<16x8xf32> to vector<16x8xbf16>
    %c1 = arith.constant 1 : index
    %c0_31 = arith.constant 0 : index
    %c0_32 = arith.constant 0 : index
    %91 = vector.load %arg7[%c1, %c0_31, %c0_32] : memref<4x8x32xbf16, #tpu.memory_space<vmem>>, vector<1x8x32xbf16>
    %92 = vector.shape_cast %91 : vector<1x8x32xbf16> to vector<8x32xbf16>
    %cst_33 = arith.constant dense<0.000000e+00> : vector<16x32xf32>
    %93 = tpu.matmul %90, %92, %cst_33 {dimension_numbers = #tpu.dot_dimension_numbers<[1], [0], [0], [1], [0, 0, 1, 1], [], []>} : vector<16x8xbf16>, vector<8x32xbf16>, vector<16x32xf32> -> vector<16x32xf32>
    %94 = arith.addf %73, %93 : vector<16x32xf32>
    %95 = vector.extract_strided_slice %49 {offsets = [0, 16], sizes = [16, 8], strides = [1, 1]} : vector<32x32xbf16> to vector<16x8xbf16>
    %96 = vector.extract_strided_slice %50 {offsets = [0, 16], sizes = [16, 8], strides = [1, 1]} : vector<32x32xbf16> to vector<16x8xbf16>
    %cst_34 = arith.constant dense<0.000000e+00> : vector<16x16xf32>
    %97 = tpu.matmul %95, %96, %cst_34 {dimension_numbers = #tpu.dot_dimension_numbers<[1], [1], [0], [0], [0, 0, 1, 0], [], []>} : vector<16x8xbf16>, vector<16x8xbf16>, vector<16x16xf32> -> vector<16x16xf32>
    %cst_35 = arith.constant dense<0xFF800000> : vector<16xf32>
    %98 = vector.multi_reduction <maximumf>, %97, %cst_35 [1] : vector<16x16xf32> to vector<16xf32>
    %99 = vector.shape_cast %98 : vector<16xf32> to vector<16x1xf32>
    %100 = vector.broadcast %99 : vector<16x1xf32> to vector<16x16xf32>
    %101 = arith.subf %97, %100 : vector<16x16xf32>
    %102 = math.exp %101 : vector<16x16xf32>
    %cst_36 = arith.constant dense<0.000000e+00> : vector<16xf32>
    %103 = vector.multi_reduction <add>, %102, %cst_36 [1] : vector<16x16xf32> to vector<16xf32>
    %104 = vector.shape_cast %103 : vector<16xf32> to vector<16x1xf32>
    %105 = tpu.reciprocal %104 {approx = true} : vector<16x1xf32> -> vector<16x1xf32>
    %106 = vector.broadcast %105 : vector<16x1xf32> to vector<16x16xf32>
    %107 = arith.mulf %102, %106 : vector<16x16xf32>
    %108 = arith.truncf %107 : vector<16x16xf32> to vector<16x16xbf16>
    %109 = vector.extract_strided_slice %51 {offsets = [0, 16], sizes = [16, 8], strides = [1, 1]} : vector<32x32xbf16> to vector<16x8xbf16>
    %cst_37 = arith.constant dense<0.000000e+00> : vector<16x8xf32>
    %110 = tpu.matmul %108, %109, %cst_37 {dimension_numbers = #tpu.dot_dimension_numbers<[1], [0], [0], [1], [0, 0, 1, 1], [], []>} : vector<16x16xbf16>, vector<16x8xbf16>, vector<16x8xf32> -> vector<16x8xf32>
    %111 = arith.truncf %110 : vector<16x8xf32> to vector<16x8xbf16>
    %c2 = arith.constant 2 : index
    %c0_38 = arith.constant 0 : index
    %c0_39 = arith.constant 0 : index
    %112 = vector.load %arg7[%c2, %c0_38, %c0_39] : memref<4x8x32xbf16, #tpu.memory_space<vmem>>, vector<1x8x32xbf16>
    %113 = vector.shape_cast %112 : vector<1x8x32xbf16> to vector<8x32xbf16>
    %cst_40 = arith.constant dense<0.000000e+00> : vector<16x32xf32>
    %114 = tpu.matmul %111, %113, %cst_40 {dimension_numbers = #tpu.dot_dimension_numbers<[1], [0], [0], [1], [0, 0, 1, 1], [], []>} : vector<16x8xbf16>, vector<8x32xbf16>, vector<16x32xf32> -> vector<16x32xf32>
    %115 = arith.addf %94, %114 : vector<16x32xf32>
    %116 = vector.extract_strided_slice %49 {offsets = [0, 24], sizes = [16, 8], strides = [1, 1]} : vector<32x32xbf16> to vector<16x8xbf16>
    %117 = vector.extract_strided_slice %50 {offsets = [0, 24], sizes = [16, 8], strides = [1, 1]} : vector<32x32xbf16> to vector<16x8xbf16>
    %cst_41 = arith.constant dense<0.000000e+00> : vector<16x16xf32>
    %118 = tpu.matmul %116, %117, %cst_41 {dimension_numbers = #tpu.dot_dimension_numbers<[1], [1], [0], [0], [0, 0, 1, 0], [], []>} : vector<16x8xbf16>, vector<16x8xbf16>, vector<16x16xf32> -> vector<16x16xf32>
    %cst_42 = arith.constant dense<0xFF800000> : vector<16xf32>
    %119 = vector.multi_reduction <maximumf>, %118, %cst_42 [1] : vector<16x16xf32> to vector<16xf32>
    %120 = vector.shape_cast %119 : vector<16xf32> to vector<16x1xf32>
    %121 = vector.broadcast %120 : vector<16x1xf32> to vector<16x16xf32>
    %122 = arith.subf %118, %121 : vector<16x16xf32>
    %123 = math.exp %122 : vector<16x16xf32>
    %cst_43 = arith.constant dense<0.000000e+00> : vector<16xf32>
    %124 = vector.multi_reduction <add>, %123, %cst_43 [1] : vector<16x16xf32> to vector<16xf32>
    %125 = vector.shape_cast %124 : vector<16xf32> to vector<16x1xf32>
    %126 = tpu.reciprocal %125 {approx = true} : vector<16x1xf32> -> vector<16x1xf32>
    %127 = vector.broadcast %126 : vector<16x1xf32> to vector<16x16xf32>
    %128 = arith.mulf %123, %127 : vector<16x16xf32>
    %129 = arith.truncf %128 : vector<16x16xf32> to vector<16x16xbf16>
    %130 = vector.extract_strided_slice %51 {offsets = [0, 24], sizes = [16, 8], strides = [1, 1]} : vector<32x32xbf16> to vector<16x8xbf16>
    %cst_44 = arith.constant dense<0.000000e+00> : vector<16x8xf32>
    %131 = tpu.matmul %129, %130, %cst_44 {dimension_numbers = #tpu.dot_dimension_numbers<[1], [0], [0], [1], [0, 0, 1, 1], [], []>} : vector<16x16xbf16>, vector<16x8xbf16>, vector<16x8xf32> -> vector<16x8xf32>
    %132 = arith.truncf %131 : vector<16x8xf32> to vector<16x8xbf16>
    %c3 = arith.constant 3 : index
    %c0_45 = arith.constant 0 : index
    %c0_46 = arith.constant 0 : index
    %133 = vector.load %arg7[%c3, %c0_45, %c0_46] : memref<4x8x32xbf16, #tpu.memory_space<vmem>>, vector<1x8x32xbf16>
    %134 = vector.shape_cast %133 : vector<1x8x32xbf16> to vector<8x32xbf16>
    %cst_47 = arith.constant dense<0.000000e+00> : vector<16x32xf32>
    %135 = tpu.matmul %132, %134, %cst_47 {dimension_numbers = #tpu.dot_dimension_numbers<[1], [0], [0], [1], [0, 0, 1, 1], [], []>} : vector<16x8xbf16>, vector<8x32xbf16>, vector<16x32xf32> -> vector<16x32xf32>
    %136 = arith.addf %115, %135 : vector<16x32xf32>
    %cst_48 = arith.constant 0.000000e+00 : f32
    %137 = vector.broadcast %cst_48 : f32 to vector<16x32xf32>
    %138 = vector.extract_strided_slice %49 {offsets = [16, 0], sizes = [16, 8], strides = [1, 1]} : vector<32x32xbf16> to vector<16x8xbf16>
    %139 = vector.extract_strided_slice %50 {offsets = [16, 0], sizes = [16, 8], strides = [1, 1]} : vector<32x32xbf16> to vector<16x8xbf16>
    %cst_49 = arith.constant dense<0.000000e+00> : vector<16x16xf32>
    %140 = tpu.matmul %138, %139, %cst_49 {dimension_numbers = #tpu.dot_dimension_numbers<[1], [1], [0], [0], [0, 0, 1, 0], [], []>} : vector<16x8xbf16>, vector<16x8xbf16>, vector<16x16xf32> -> vector<16x16xf32>
    %cst_50 = arith.constant dense<0xFF800000> : vector<16xf32>
    %141 = vector.multi_reduction <maximumf>, %140, %cst_50 [1] : vector<16x16xf32> to vector<16xf32>
    %142 = vector.shape_cast %141 : vector<16xf32> to vector<16x1xf32>
    %143 = vector.broadcast %142 : vector<16x1xf32> to vector<16x16xf32>
    %144 = arith.subf %140, %143 : vector<16x16xf32>
    %145 = math.exp %144 : vector<16x16xf32>
    %cst_51 = arith.constant dense<0.000000e+00> : vector<16xf32>
    %146 = vector.multi_reduction <add>, %145, %cst_51 [1] : vector<16x16xf32> to vector<16xf32>
    %147 = vector.shape_cast %146 : vector<16xf32> to vector<16x1xf32>
    %148 = tpu.reciprocal %147 {approx = true} : vector<16x1xf32> -> vector<16x1xf32>
    %149 = vector.broadcast %148 : vector<16x1xf32> to vector<16x16xf32>
    %150 = arith.mulf %145, %149 : vector<16x16xf32>
    %151 = arith.truncf %150 : vector<16x16xf32> to vector<16x16xbf16>
    %152 = vector.extract_strided_slice %51 {offsets = [16, 0], sizes = [16, 8], strides = [1, 1]} : vector<32x32xbf16> to vector<16x8xbf16>
    %cst_52 = arith.constant dense<0.000000e+00> : vector<16x8xf32>
    %153 = tpu.matmul %151, %152, %cst_52 {dimension_numbers = #tpu.dot_dimension_numbers<[1], [0], [0], [1], [0, 0, 1, 1], [], []>} : vector<16x16xbf16>, vector<16x8xbf16>, vector<16x8xf32> -> vector<16x8xf32>
    %154 = arith.truncf %153 : vector<16x8xf32> to vector<16x8xbf16>
    %c0_53 = arith.constant 0 : index
    %c0_54 = arith.constant 0 : index
    %c0_55 = arith.constant 0 : index
    %155 = vector.load %arg7[%c0_53, %c0_54, %c0_55] : memref<4x8x32xbf16, #tpu.memory_space<vmem>>, vector<1x8x32xbf16>
    %156 = vector.shape_cast %155 : vector<1x8x32xbf16> to vector<8x32xbf16>
    %cst_56 = arith.constant dense<0.000000e+00> : vector<16x32xf32>
    %157 = tpu.matmul %154, %156, %cst_56 {dimension_numbers = #tpu.dot_dimension_numbers<[1], [0], [0], [1], [0, 0, 1, 1], [], []>} : vector<16x8xbf16>, vector<8x32xbf16>, vector<16x32xf32> -> vector<16x32xf32>
    %158 = arith.addf %137, %157 : vector<16x32xf32>
    %159 = vector.extract_strided_slice %49 {offsets = [16, 8], sizes = [16, 8], strides = [1, 1]} : vector<32x32xbf16> to vector<16x8xbf16>
    %160 = vector.extract_strided_slice %50 {offsets = [16, 8], sizes = [16, 8], strides = [1, 1]} : vector<32x32xbf16> to vector<16x8xbf16>
    %cst_57 = arith.constant dense<0.000000e+00> : vector<16x16xf32>
    %161 = tpu.matmul %159, %160, %cst_57 {dimension_numbers = #tpu.dot_dimension_numbers<[1], [1], [0], [0], [0, 0, 1, 0], [], []>} : vector<16x8xbf16>, vector<16x8xbf16>, vector<16x16xf32> -> vector<16x16xf32>
    %cst_58 = arith.constant dense<0xFF800000> : vector<16xf32>
    %162 = vector.multi_reduction <maximumf>, %161, %cst_58 [1] : vector<16x16xf32> to vector<16xf32>
    %163 = vector.shape_cast %162 : vector<16xf32> to vector<16x1xf32>
    %164 = vector.broadcast %163 : vector<16x1xf32> to vector<16x16xf32>
    %165 = arith.subf %161, %164 : vector<16x16xf32>
    %166 = math.exp %165 : vector<16x16xf32>
    %cst_59 = arith.constant dense<0.000000e+00> : vector<16xf32>
    %167 = vector.multi_reduction <add>, %166, %cst_59 [1] : vector<16x16xf32> to vector<16xf32>
    %168 = vector.shape_cast %167 : vector<16xf32> to vector<16x1xf32>
    %169 = tpu.reciprocal %168 {approx = true} : vector<16x1xf32> -> vector<16x1xf32>
    %170 = vector.broadcast %169 : vector<16x1xf32> to vector<16x16xf32>
    %171 = arith.mulf %166, %170 : vector<16x16xf32>
    %172 = arith.truncf %171 : vector<16x16xf32> to vector<16x16xbf16>
    %173 = vector.extract_strided_slice %51 {offsets = [16, 8], sizes = [16, 8], strides = [1, 1]} : vector<32x32xbf16> to vector<16x8xbf16>
    %cst_60 = arith.constant dense<0.000000e+00> : vector<16x8xf32>
    %174 = tpu.matmul %172, %173, %cst_60 {dimension_numbers = #tpu.dot_dimension_numbers<[1], [0], [0], [1], [0, 0, 1, 1], [], []>} : vector<16x16xbf16>, vector<16x8xbf16>, vector<16x8xf32> -> vector<16x8xf32>
    %175 = arith.truncf %174 : vector<16x8xf32> to vector<16x8xbf16>
    %c1_61 = arith.constant 1 : index
    %c0_62 = arith.constant 0 : index
    %c0_63 = arith.constant 0 : index
    %176 = vector.load %arg7[%c1_61, %c0_62, %c0_63] : memref<4x8x32xbf16, #tpu.memory_space<vmem>>, vector<1x8x32xbf16>
    %177 = vector.shape_cast %176 : vector<1x8x32xbf16> to vector<8x32xbf16>
    %cst_64 = arith.constant dense<0.000000e+00> : vector<16x32xf32>
    %178 = tpu.matmul %175, %177, %cst_64 {dimension_numbers = #tpu.dot_dimension_numbers<[1], [0], [0], [1], [0, 0, 1, 1], [], []>} : vector<16x8xbf16>, vector<8x32xbf16>, vector<16x32xf32> -> vector<16x32xf32>
    %179 = arith.addf %158, %178 : vector<16x32xf32>
    %180 = vector.extract_strided_slice %49 {offsets = [16, 16], sizes = [16, 8], strides = [1, 1]} : vector<32x32xbf16> to vector<16x8xbf16>
    %181 = vector.extract_strided_slice %50 {offsets = [16, 16], sizes = [16, 8], strides = [1, 1]} : vector<32x32xbf16> to vector<16x8xbf16>
    %cst_65 = arith.constant dense<0.000000e+00> : vector<16x16xf32>
    %182 = tpu.matmul %180, %181, %cst_65 {dimension_numbers = #tpu.dot_dimension_numbers<[1], [1], [0], [0], [0, 0, 1, 0], [], []>} : vector<16x8xbf16>, vector<16x8xbf16>, vector<16x16xf32> -> vector<16x16xf32>
    %cst_66 = arith.constant dense<0xFF800000> : vector<16xf32>
    %183 = vector.multi_reduction <maximumf>, %182, %cst_66 [1] : vector<16x16xf32> to vector<16xf32>
    %184 = vector.shape_cast %183 : vector<16xf32> to vector<16x1xf32>
    %185 = vector.broadcast %184 : vector<16x1xf32> to vector<16x16xf32>
    %186 = arith.subf %182, %185 : vector<16x16xf32>
    %187 = math.exp %186 : vector<16x16xf32>
    %cst_67 = arith.constant dense<0.000000e+00> : vector<16xf32>
    %188 = vector.multi_reduction <add>, %187, %cst_67 [1] : vector<16x16xf32> to vector<16xf32>
    %189 = vector.shape_cast %188 : vector<16xf32> to vector<16x1xf32>
    %190 = tpu.reciprocal %189 {approx = true} : vector<16x1xf32> -> vector<16x1xf32>
    %191 = vector.broadcast %190 : vector<16x1xf32> to vector<16x16xf32>
    %192 = arith.mulf %187, %191 : vector<16x16xf32>
    %193 = arith.truncf %192 : vector<16x16xf32> to vector<16x16xbf16>
    %194 = vector.extract_strided_slice %51 {offsets = [16, 16], sizes = [16, 8], strides = [1, 1]} : vector<32x32xbf16> to vector<16x8xbf16>
    %cst_68 = arith.constant dense<0.000000e+00> : vector<16x8xf32>
    %195 = tpu.matmul %193, %194, %cst_68 {dimension_numbers = #tpu.dot_dimension_numbers<[1], [0], [0], [1], [0, 0, 1, 1], [], []>} : vector<16x16xbf16>, vector<16x8xbf16>, vector<16x8xf32> -> vector<16x8xf32>
    %196 = arith.truncf %195 : vector<16x8xf32> to vector<16x8xbf16>
    %c2_69 = arith.constant 2 : index
    %c0_70 = arith.constant 0 : index
    %c0_71 = arith.constant 0 : index
    %197 = vector.load %arg7[%c2_69, %c0_70, %c0_71] : memref<4x8x32xbf16, #tpu.memory_space<vmem>>, vector<1x8x32xbf16>
    %198 = vector.shape_cast %197 : vector<1x8x32xbf16> to vector<8x32xbf16>
    %cst_72 = arith.constant dense<0.000000e+00> : vector<16x32xf32>
    %199 = tpu.matmul %196, %198, %cst_72 {dimension_numbers = #tpu.dot_dimension_numbers<[1], [0], [0], [1], [0, 0, 1, 1], [], []>} : vector<16x8xbf16>, vector<8x32xbf16>, vector<16x32xf32> -> vector<16x32xf32>
    %200 = arith.addf %179, %199 : vector<16x32xf32>
    %201 = vector.extract_strided_slice %49 {offsets = [16, 24], sizes = [16, 8], strides = [1, 1]} : vector<32x32xbf16> to vector<16x8xbf16>
    %202 = vector.extract_strided_slice %50 {offsets = [16, 24], sizes = [16, 8], strides = [1, 1]} : vector<32x32xbf16> to vector<16x8xbf16>
    %cst_73 = arith.constant dense<0.000000e+00> : vector<16x16xf32>
    %203 = tpu.matmul %201, %202, %cst_73 {dimension_numbers = #tpu.dot_dimension_numbers<[1], [1], [0], [0], [0, 0, 1, 0], [], []>} : vector<16x8xbf16>, vector<16x8xbf16>, vector<16x16xf32> -> vector<16x16xf32>
    %cst_74 = arith.constant dense<0xFF800000> : vector<16xf32>
    %204 = vector.multi_reduction <maximumf>, %203, %cst_74 [1] : vector<16x16xf32> to vector<16xf32>
    %205 = vector.shape_cast %204 : vector<16xf32> to vector<16x1xf32>
    %206 = vector.broadcast %205 : vector<16x1xf32> to vector<16x16xf32>
    %207 = arith.subf %203, %206 : vector<16x16xf32>
    %208 = math.exp %207 : vector<16x16xf32>
    %cst_75 = arith.constant dense<0.000000e+00> : vector<16xf32>
    %209 = vector.multi_reduction <add>, %208, %cst_75 [1] : vector<16x16xf32> to vector<16xf32>
    %210 = vector.shape_cast %209 : vector<16xf32> to vector<16x1xf32>
    %211 = tpu.reciprocal %210 {approx = true} : vector<16x1xf32> -> vector<16x1xf32>
    %212 = vector.broadcast %211 : vector<16x1xf32> to vector<16x16xf32>
    %213 = arith.mulf %208, %212 : vector<16x16xf32>
    %214 = arith.truncf %213 : vector<16x16xf32> to vector<16x16xbf16>
    %215 = vector.extract_strided_slice %51 {offsets = [16, 24], sizes = [16, 8], strides = [1, 1]} : vector<32x32xbf16> to vector<16x8xbf16>
    %cst_76 = arith.constant dense<0.000000e+00> : vector<16x8xf32>
    %216 = tpu.matmul %214, %215, %cst_76 {dimension_numbers = #tpu.dot_dimension_numbers<[1], [0], [0], [1], [0, 0, 1, 1], [], []>} : vector<16x16xbf16>, vector<16x8xbf16>, vector<16x8xf32> -> vector<16x8xf32>
    %217 = arith.truncf %216 : vector<16x8xf32> to vector<16x8xbf16>
    %c3_77 = arith.constant 3 : index
    %c0_78 = arith.constant 0 : index
    %c0_79 = arith.constant 0 : index
    %218 = vector.load %arg7[%c3_77, %c0_78, %c0_79] : memref<4x8x32xbf16, #tpu.memory_space<vmem>>, vector<1x8x32xbf16>
    %219 = vector.shape_cast %218 : vector<1x8x32xbf16> to vector<8x32xbf16>
    %cst_80 = arith.constant dense<0.000000e+00> : vector<16x32xf32>
    %220 = tpu.matmul %217, %219, %cst_80 {dimension_numbers = #tpu.dot_dimension_numbers<[1], [0], [0], [1], [0, 0, 1, 1], [], []>} : vector<16x8xbf16>, vector<8x32xbf16>, vector<16x32xf32> -> vector<16x32xf32>
    %221 = arith.addf %200, %220 : vector<16x32xf32>
    %222 = tpu.concatenate %136, %221 in 0 : vector<16x32xf32>, vector<16x32xf32> -> vector<32x32xf32>
    %223 = arith.addf %0, %222 : vector<32x32xf32>
    %224 = vector.broadcast %8 : vector<1x32xf32> to vector<32x32xf32>
    %225 = arith.addf %223, %224 : vector<32x32xf32>
    %226 = tpu.iota {dimensions = array<i32: 0>} : vector<32x1xi32>
    %c16_i32 = arith.constant 16 : i32
    %c0_i32 = arith.constant 0 : i32
    %227 = arith.cmpi eq, %c16_i32, %c0_i32 : i32
    %c1_i32 = arith.constant 1 : i32
    %228 = arith.select %227, %c1_i32, %c16_i32 : i32
    %229 = vector.broadcast %228 : i32 to vector<32x1xi32>
    %230 = arith.remsi %226, %229 : vector<32x1xi32>
    %c0_i32_81 = arith.constant 0 : i32
    %231 = vector.broadcast %c0_i32_81 : i32 to vector<32x1xi32>
    %232 = arith.cmpi ne, %230, %231 : vector<32x1xi32>
    %c0_i32_82 = arith.constant 0 : i32
    %233 = vector.broadcast %c0_i32_82 : i32 to vector<32x1xi32>
    %234 = arith.cmpi slt, %230, %233 : vector<32x1xi32>
    %c0_i32_83 = arith.constant 0 : i32
    %235 = arith.cmpi slt, %228, %c0_i32_83 : i32
    %236 = vector.broadcast %235 : i1 to vector<32x1xi1>
    %237 = vector.broadcast %236 : vector<32x1xi1> to vector<32x1xi1>
    %238 = arith.xori %234, %237 : vector<32x1xi1>
    %239 = arith.andi %238, %232 : vector<32x1xi1>
    %240 = vector.broadcast %228 : i32 to vector<32x1xi32>
    %241 = arith.addi %230, %240 : vector<32x1xi32>
    %242 = arith.select %239, %241, %230 : vector<32x1xi1>, vector<32x1xi32>
    %c0_i32_84 = arith.constant 0 : i32
    %243 = vector.broadcast %c0_i32_84 : i32 to vector<32x1xi32>
    %244 = arith.cmpi ne, %242, %243 : vector<32x1xi32>
    %c15_i32 = arith.constant 15 : i32
    %245 = vector.broadcast %c15_i32 : i32 to vector<32x1xi32>
    %246 = arith.cmpi ne, %242, %245 : vector<32x1xi32>
    %cst_85 = arith.constant dense<0.000000e+00> : vector<32xf32>
    %247 = vector.multi_reduction <add>, %225, %cst_85 [1] : vector<32x32xf32> to vector<32xf32>
    %248 = vector.shape_cast %247 : vector<32xf32> to vector<32x1xf32>
    %cst_86 = arith.constant 3.200000e+01 : f32
    %249 = vector.broadcast %cst_86 : f32 to vector<32x1xf32>
    %250 = arith.divf %248, %249 : vector<32x1xf32>
    %251 = vector.broadcast %250 : vector<32x1xf32> to vector<32x32xf32>
    %252 = arith.subf %225, %251 : vector<32x32xf32>
    %253 = arith.mulf %252, %252 : vector<32x32xf32>
    %cst_87 = arith.constant dense<0.000000e+00> : vector<32xf32>
    %254 = vector.multi_reduction <add>, %253, %cst_87 [1] : vector<32x32xf32> to vector<32xf32>
    %255 = vector.shape_cast %254 : vector<32xf32> to vector<32x1xf32>
    %cst_88 = arith.constant 3.200000e+01 : f32
    %256 = vector.broadcast %cst_88 : f32 to vector<32x1xf32>
    %257 = arith.divf %255, %256 : vector<32x1xf32>
    %cst_89 = arith.constant 9.99999974E-6 : f32
    %258 = vector.broadcast %cst_89 : f32 to vector<32x1xf32>
    %259 = arith.addf %257, %258 : vector<32x1xf32>
    %260 = math.rsqrt %259 : vector<32x1xf32>
    %261 = vector.broadcast %260 : vector<32x1xf32> to vector<32x32xf32>
    %262 = arith.mulf %252, %261 : vector<32x32xf32>
    %263 = vector.broadcast %9 : vector<1x32xf32> to vector<32x32xf32>
    %264 = arith.mulf %262, %263 : vector<32x32xf32>
    %265 = vector.broadcast %10 : vector<1x32xf32> to vector<32x32xf32>
    %266 = arith.addf %264, %265 : vector<32x32xf32>
    %c1_i32_90 = arith.constant 1 : i32
    %267 = tpu.dynamic_rotate %266 by %c1_i32_90 dim 0 : vector<32x32xf32>, i32 -> vector<32x32xf32>
    %cst_91 = arith.constant 0.000000e+00 : f32
    %268 = vector.shape_cast %244 : vector<32x1xi1> to vector<32x1xi1>
    %269 = vector.broadcast %268 : vector<32x1xi1> to vector<32x32xi1>
    %270 = vector.broadcast %cst_91 : f32 to vector<32x32xf32>
    %271 = arith.select %269, %267, %270 : vector<32x32xi1>, vector<32x32xf32>
    %c31_i32 = arith.constant 31 : i32
    %272 = tpu.dynamic_rotate %266 by %c31_i32 dim 0 : vector<32x32xf32>, i32 -> vector<32x32xf32>
    %cst_92 = arith.constant 0.000000e+00 : f32
    %273 = vector.shape_cast %246 : vector<32x1xi1> to vector<32x1xi1>
    %274 = vector.broadcast %273 : vector<32x1xi1> to vector<32x32xi1>
    %275 = vector.broadcast %cst_92 : f32 to vector<32x32xf32>
    %276 = arith.select %274, %272, %275 : vector<32x32xi1>, vector<32x32xf32>
    %277 = arith.truncf %271 : vector<32x32xf32> to vector<32x32xbf16>
    %278 = arith.truncf %276 : vector<32x32xf32> to vector<32x32xbf16>
    %c0_93 = arith.constant 0 : index
    %c0_94 = arith.constant 0 : index
    %c0_95 = arith.constant 0 : index
    %279 = vector.load %arg8[%c0_93, %c0_94, %c0_95] : memref<3x32x16xbf16, #tpu.memory_space<vmem>>, vector<1x32x16xbf16>
    %280 = vector.shape_cast %279 : vector<1x32x16xbf16> to vector<32x16xbf16>
    %cst_96 = arith.constant dense<0.000000e+00> : vector<32x16xf32>
    %281 = tpu.matmul %277, %280, %cst_96 {dimension_numbers = #tpu.dot_dimension_numbers<[1], [0], [0], [1], [0, 0, 1, 1], [], []>} : vector<32x32xbf16>, vector<32x16xbf16>, vector<32x16xf32> -> vector<32x16xf32>
    %282 = arith.truncf %266 : vector<32x32xf32> to vector<32x32xbf16>
    %c1_97 = arith.constant 1 : index
    %c0_98 = arith.constant 0 : index
    %c0_99 = arith.constant 0 : index
    %283 = vector.load %arg8[%c1_97, %c0_98, %c0_99] : memref<3x32x16xbf16, #tpu.memory_space<vmem>>, vector<1x32x16xbf16>
    %284 = vector.shape_cast %283 : vector<1x32x16xbf16> to vector<32x16xbf16>
    %cst_100 = arith.constant dense<0.000000e+00> : vector<32x16xf32>
    %285 = tpu.matmul %282, %284, %cst_100 {dimension_numbers = #tpu.dot_dimension_numbers<[1], [0], [0], [1], [0, 0, 1, 1], [], []>} : vector<32x32xbf16>, vector<32x16xbf16>, vector<32x16xf32> -> vector<32x16xf32>
    %286 = arith.addf %281, %285 : vector<32x16xf32>
    %c2_101 = arith.constant 2 : index
    %c0_102 = arith.constant 0 : index
    %c0_103 = arith.constant 0 : index
    %287 = vector.load %arg8[%c2_101, %c0_102, %c0_103] : memref<3x32x16xbf16, #tpu.memory_space<vmem>>, vector<1x32x16xbf16>
    %288 = vector.shape_cast %287 : vector<1x32x16xbf16> to vector<32x16xbf16>
    %cst_104 = arith.constant dense<0.000000e+00> : vector<32x16xf32>
    %289 = tpu.matmul %278, %288, %cst_104 {dimension_numbers = #tpu.dot_dimension_numbers<[1], [0], [0], [1], [0, 0, 1, 1], [], []>} : vector<32x32xbf16>, vector<32x16xbf16>, vector<32x16xf32> -> vector<32x16xf32>
    %290 = arith.addf %286, %289 : vector<32x16xf32>
    %291 = vector.broadcast %11 : vector<1x16xf32> to vector<32x16xf32>
    %292 = arith.addf %290, %291 : vector<32x16xf32>
    %cst_105 = arith.constant 5.000000e-01 : f32
    %293 = vector.broadcast %cst_105 : f32 to vector<32x16xf32>
    %294 = arith.mulf %293, %292 : vector<32x16xf32>
    %cst_106 = arith.constant 0.707106769 : f32
    %295 = vector.broadcast %cst_106 : f32 to vector<32x16xf32>
    %296 = arith.mulf %292, %295 : vector<32x16xf32>
    %297 = math.absf %296 : vector<32x16xf32>
    %cst_107 = arith.constant 0.327591091 : f32
    %298 = vector.broadcast %cst_107 : f32 to vector<32x16xf32>
    %299 = arith.mulf %298, %297 : vector<32x16xf32>
    %cst_108 = arith.constant 1.000000e+00 : f32
    %300 = vector.broadcast %cst_108 : f32 to vector<32x16xf32>
    %301 = arith.addf %300, %299 : vector<32x16xf32>
    %cst_109 = arith.constant 1.000000e+00 : f32
    %302 = vector.broadcast %cst_109 : f32 to vector<32x16xf32>
    %303 = arith.divf %302, %301 : vector<32x16xf32>
    %cst_110 = arith.constant 1.06140542 : f32
    %304 = vector.broadcast %cst_110 : f32 to vector<32x16xf32>
    %305 = arith.mulf %304, %303 : vector<32x16xf32>
    %cst_111 = arith.constant -1.45315206 : f32
    %306 = vector.broadcast %cst_111 : f32 to vector<32x16xf32>
    %307 = arith.addf %305, %306 : vector<32x16xf32>
    %308 = arith.mulf %307, %303 : vector<32x16xf32>
    %cst_112 = arith.constant 1.42141378 : f32
    %309 = vector.broadcast %cst_112 : f32 to vector<32x16xf32>
    %310 = arith.addf %308, %309 : vector<32x16xf32>
    %311 = arith.mulf %310, %303 : vector<32x16xf32>
    %cst_113 = arith.constant -0.284496725 : f32
    %312 = vector.broadcast %cst_113 : f32 to vector<32x16xf32>
    %313 = arith.addf %311, %312 : vector<32x16xf32>
    %314 = arith.mulf %313, %303 : vector<32x16xf32>
    %cst_114 = arith.constant 0.254829586 : f32
    %315 = vector.broadcast %cst_114 : f32 to vector<32x16xf32>
    %316 = arith.addf %314, %315 : vector<32x16xf32>
    %317 = arith.mulf %316, %303 : vector<32x16xf32>
    %318 = arith.mulf %297, %297 : vector<32x16xf32>
    %cst_115 = arith.constant 0.000000e+00 : f32
    %319 = vector.broadcast %cst_115 : f32 to vector<32x16xf32>
    %320 = arith.subf %319, %318 : vector<32x16xf32>
    %321 = math.exp %320 : vector<32x16xf32>
    %322 = arith.mulf %317, %321 : vector<32x16xf32>
    %cst_116 = arith.constant 1.000000e+00 : f32
    %323 = vector.broadcast %cst_116 : f32 to vector<32x16xf32>
    %324 = arith.subf %323, %322 : vector<32x16xf32>
    %cst_117 = arith.constant 0.000000e+00 : f32
    %325 = vector.broadcast %cst_117 : f32 to vector<32x16xf32>
    %326 = arith.cmpf olt, %296, %325 : vector<32x16xf32>
    %cst_118 = arith.constant 0.000000e+00 : f32
    %327 = vector.broadcast %cst_118 : f32 to vector<32x16xf32>
    %328 = arith.subf %327, %324 : vector<32x16xf32>
    %329 = arith.select %326, %328, %324 : vector<32x16xi1>, vector<32x16xf32>
    %cst_119 = arith.constant 1.000000e+00 : f32
    %330 = vector.broadcast %cst_119 : f32 to vector<32x16xf32>
    %331 = arith.addf %330, %329 : vector<32x16xf32>
    %332 = arith.mulf %294, %331 : vector<32x16xf32>
    %c1_i32_120 = arith.constant 1 : i32
    %333 = tpu.dynamic_rotate %332 by %c1_i32_120 dim 0 : vector<32x16xf32>, i32 -> vector<32x16xf32>
    %cst_121 = arith.constant 0.000000e+00 : f32
    %334 = vector.shape_cast %244 : vector<32x1xi1> to vector<32x1xi1>
    %335 = vector.broadcast %334 : vector<32x1xi1> to vector<32x16xi1>
    %336 = vector.broadcast %cst_121 : f32 to vector<32x16xf32>
    %337 = arith.select %335, %333, %336 : vector<32x16xi1>, vector<32x16xf32>
    %c31_i32_122 = arith.constant 31 : i32
    %338 = tpu.dynamic_rotate %332 by %c31_i32_122 dim 0 : vector<32x16xf32>, i32 -> vector<32x16xf32>
    %cst_123 = arith.constant 0.000000e+00 : f32
    %339 = vector.shape_cast %246 : vector<32x1xi1> to vector<32x1xi1>
    %340 = vector.broadcast %339 : vector<32x1xi1> to vector<32x16xi1>
    %341 = vector.broadcast %cst_123 : f32 to vector<32x16xf32>
    %342 = arith.select %340, %338, %341 : vector<32x16xi1>, vector<32x16xf32>
    %343 = arith.truncf %337 : vector<32x16xf32> to vector<32x16xbf16>
    %344 = arith.truncf %342 : vector<32x16xf32> to vector<32x16xbf16>
    %c0_124 = arith.constant 0 : index
    %c0_125 = arith.constant 0 : index
    %c0_126 = arith.constant 0 : index
    %345 = vector.load %arg9[%c0_124, %c0_125, %c0_126] : memref<3x16x16xbf16, #tpu.memory_space<vmem>>, vector<1x16x16xbf16>
    %346 = vector.shape_cast %345 : vector<1x16x16xbf16> to vector<16x16xbf16>
    %cst_127 = arith.constant dense<0.000000e+00> : vector<32x16xf32>
    %347 = tpu.matmul %343, %346, %cst_127 {dimension_numbers = #tpu.dot_dimension_numbers<[1], [0], [0], [1], [0, 0, 1, 1], [], []>} : vector<32x16xbf16>, vector<16x16xbf16>, vector<32x16xf32> -> vector<32x16xf32>
    %348 = arith.truncf %332 : vector<32x16xf32> to vector<32x16xbf16>
    %c1_128 = arith.constant 1 : index
    %c0_129 = arith.constant 0 : index
    %c0_130 = arith.constant 0 : index
    %349 = vector.load %arg9[%c1_128, %c0_129, %c0_130] : memref<3x16x16xbf16, #tpu.memory_space<vmem>>, vector<1x16x16xbf16>
    %350 = vector.shape_cast %349 : vector<1x16x16xbf16> to vector<16x16xbf16>
    %cst_131 = arith.constant dense<0.000000e+00> : vector<32x16xf32>
    %351 = tpu.matmul %348, %350, %cst_131 {dimension_numbers = #tpu.dot_dimension_numbers<[1], [0], [0], [1], [0, 0, 1, 1], [], []>} : vector<32x16xbf16>, vector<16x16xbf16>, vector<32x16xf32> -> vector<32x16xf32>
    %352 = arith.addf %347, %351 : vector<32x16xf32>
    %c2_132 = arith.constant 2 : index
    %c0_133 = arith.constant 0 : index
    %c0_134 = arith.constant 0 : index
    %353 = vector.load %arg9[%c2_132, %c0_133, %c0_134] : memref<3x16x16xbf16, #tpu.memory_space<vmem>>, vector<1x16x16xbf16>
    %354 = vector.shape_cast %353 : vector<1x16x16xbf16> to vector<16x16xbf16>
    %cst_135 = arith.constant dense<0.000000e+00> : vector<32x16xf32>
    %355 = tpu.matmul %344, %354, %cst_135 {dimension_numbers = #tpu.dot_dimension_numbers<[1], [0], [0], [1], [0, 0, 1, 1], [], []>} : vector<32x16xbf16>, vector<16x16xbf16>, vector<32x16xf32> -> vector<32x16xf32>
    %356 = arith.addf %352, %355 : vector<32x16xf32>
    %357 = vector.broadcast %12 : vector<1x16xf32> to vector<32x16xf32>
    %358 = arith.addf %356, %357 : vector<32x16xf32>
    %359 = arith.truncf %225 : vector<32x32xf32> to vector<32x32xbf16>
    %c0_136 = arith.constant 0 : index
    %c0_137 = arith.constant 0 : index
    %360 = vector.load %arg10[%c0_136, %c0_137] : memref<32x16xbf16, #tpu.memory_space<vmem>>, vector<32x16xbf16>
    %cst_138 = arith.constant dense<0.000000e+00> : vector<32x16xf32>
    %361 = tpu.matmul %359, %360, %cst_138 {dimension_numbers = #tpu.dot_dimension_numbers<[1], [0], [0], [1], [0, 0, 1, 1], [], []>} : vector<32x32xbf16>, vector<32x16xbf16>, vector<32x16xf32> -> vector<32x16xf32>
    %362 = vector.broadcast %13 : vector<1x16xf32> to vector<32x16xf32>
    %363 = arith.addf %361, %362 : vector<32x16xf32>
    %364 = arith.addf %363, %358 : vector<32x16xf32>
    %cst_139 = arith.constant dense<0.000000e+00> : vector<32xf32>
    %365 = vector.multi_reduction <add>, %364, %cst_139 [1] : vector<32x16xf32> to vector<32xf32>
    %366 = vector.shape_cast %365 : vector<32xf32> to vector<32x1xf32>
    %cst_140 = arith.constant 1.600000e+01 : f32
    %367 = vector.broadcast %cst_140 : f32 to vector<32x1xf32>
    %368 = arith.divf %366, %367 : vector<32x1xf32>
    %369 = vector.broadcast %368 : vector<32x1xf32> to vector<32x16xf32>
    %370 = arith.subf %364, %369 : vector<32x16xf32>
    %371 = arith.mulf %370, %370 : vector<32x16xf32>
    %cst_141 = arith.constant dense<0.000000e+00> : vector<32xf32>
    %372 = vector.multi_reduction <add>, %371, %cst_141 [1] : vector<32x16xf32> to vector<32xf32>
    %373 = vector.shape_cast %372 : vector<32xf32> to vector<32x1xf32>
    %cst_142 = arith.constant 1.600000e+01 : f32
    %374 = vector.broadcast %cst_142 : f32 to vector<32x1xf32>
    %375 = arith.divf %373, %374 : vector<32x1xf32>
    %cst_143 = arith.constant 9.99999974E-6 : f32
    %376 = vector.broadcast %cst_143 : f32 to vector<32x1xf32>
    %377 = arith.addf %375, %376 : vector<32x1xf32>
    %378 = math.rsqrt %377 : vector<32x1xf32>
    %379 = vector.broadcast %378 : vector<32x1xf32> to vector<32x16xf32>
    %380 = arith.mulf %370, %379 : vector<32x16xf32>
    %381 = vector.broadcast %14 : vector<1x16xf32> to vector<32x16xf32>
    %382 = arith.mulf %380, %381 : vector<32x16xf32>
    %383 = vector.broadcast %15 : vector<1x16xf32> to vector<32x16xf32>
    %384 = arith.addf %382, %383 : vector<32x16xf32>
    %c0_144 = arith.constant 0 : index
    %c0_145 = arith.constant 0 : index
    %385 = vector.load %arg11[%c0_144, %c0_145] : memref<32x16xf32, #tpu.memory_space<vmem>>, vector<32x16xf32>
    tpu.vector_store %arg11[%c0_144, %c0_145], %384 {strides = array<i32>} : memref<32x16xf32, #tpu.memory_space<vmem>>, vector<32x16xf32>,
    return
  }
  func.func @transform_0(%arg0: i32) -> (i32, i32) {
    %c0_i32 = arith.constant 0 : i32
    %c0_i32_0 = arith.constant 0 : i32
    return %arg0, %c0_i32 : i32, i32
  }
  func.func @transform_1(%arg0: i32) -> (i32, i32) {
    %c0_i32 = arith.constant 0 : i32
    %c0_i32_0 = arith.constant 0 : i32
    %c0_i32_1 = arith.constant 0 : i32
    return %c0_i32, %c0_i32_0 : i32, i32
  }
  func.func @transform_2(%arg0: i32) -> (i32, i32) {
    %c0_i32 = arith.constant 0 : i32
    %c0_i32_0 = arith.constant 0 : i32
    %c0_i32_1 = arith.constant 0 : i32
    return %c0_i32, %c0_i32_0 : i32, i32
  }
  func.func @transform_3(%arg0: i32) -> (i32, i32) {
    %c0_i32 = arith.constant 0 : i32
    %c0_i32_0 = arith.constant 0 : i32
    %c0_i32_1 = arith.constant 0 : i32
    return %c0_i32, %c0_i32_0 : i32, i32
  }
  func.func @transform_4(%arg0: i32) -> (i32, i32) {
    %c0_i32 = arith.constant 0 : i32
    %c0_i32_0 = arith.constant 0 : i32
    %c0_i32_1 = arith.constant 0 : i32
    return %c0_i32, %c0_i32_0 : i32, i32
  }
  func.func @transform_5(%arg0: i32) -> (i32, i32) {
    %c0_i32 = arith.constant 0 : i32
    %c0_i32_0 = arith.constant 0 : i32
    %c0_i32_1 = arith.constant 0 : i32
    return %c0_i32, %c0_i32_0 : i32, i32
  }
  func.func @transform_6(%arg0: i32) -> (i32, i32, i32) {
    %c0_i32 = arith.constant 0 : i32
    %c0_i32_0 = arith.constant 0 : i32
    %c0_i32_1 = arith.constant 0 : i32
    %c0_i32_2 = arith.constant 0 : i32
    return %c0_i32, %c0_i32_0, %c0_i32_1 : i32, i32, i32
  }
  func.func @transform_7(%arg0: i32) -> (i32, i32, i32) {
    %c0_i32 = arith.constant 0 : i32
    %c0_i32_0 = arith.constant 0 : i32
    %c0_i32_1 = arith.constant 0 : i32
    %c0_i32_2 = arith.constant 0 : i32
    return %c0_i32, %c0_i32_0, %c0_i32_1 : i32, i32, i32
  }
  func.func @transform_8(%arg0: i32) -> (i32, i32, i32) {
    %c0_i32 = arith.constant 0 : i32
    %c0_i32_0 = arith.constant 0 : i32
    %c0_i32_1 = arith.constant 0 : i32
    %c0_i32_2 = arith.constant 0 : i32
    return %c0_i32, %c0_i32_0, %c0_i32_1 : i32, i32, i32
  }
  func.func @transform_9(%arg0: i32) -> (i32, i32) {
    %c0_i32 = arith.constant 0 : i32
    %c0_i32_0 = arith.constant 0 : i32
    %c0_i32_1 = arith.constant 0 : i32
    return %c0_i32, %c0_i32_0 : i32, i32
  }
  func.func @transform_10(%arg0: i32) -> (i32, i32) {
    %c0_i32 = arith.constant 0 : i32
    %c0_i32_0 = arith.constant 0 : i32
    return %arg0, %c0_i32 : i32, i32
  }
}

</mosaic_0001>

<bundles_post_ra>
// kernel: tpu_custom_call.1
= control target key start
LH: loop header
LB: loop body
LE: loop exit
PB: predicated region body
PF: predicated region fallthrough
CT: control target
= control target key end

     0   :  { %s2545_s13 = smov 0   ;;  %s3129_s0 = inlined_call_operand.vmem [shape: f32[64,32], index: 0, kind: input, shape index: {}]   ;;  %s3130_s1 = inlined_call_operand.vmem [shape: f32[8,32], index: 1, kind: input, shape index: {}]   ;;  %s3131_s2 = inlined_call_operand.vmem [shape: f32[8,16], index: 2, kind: input, shape index: {}]   ;;  %s3132_s3 = inlined_call_operand.vmem [shape: bf16[32,32], index: 3, kind: input, shape index: {}]   ;;  %s3133_s4 = inlined_call_operand.vmem [shape: bf16[32,32], index: 4, kind: input, shape index: {}]   ;;  %s3134_s5 = inlined_call_operand.vmem [shape: bf16[32,32], index: 5, kind: input, shape index: {}]   ;;  %s3135_s6 = inlined_call_operand.vmem [shape: bf16[4,8,32], index: 6, kind: input, shape index: {}]   ;;  %s3136_s7 = inlined_call_operand.vmem [shape: bf16[3,32,16], index: 7, kind: input, shape index: {}]   ;;  %s3137_s8 = inlined_call_operand.vmem [shape: bf16[3,16,16], index: 8, kind: input, shape index: {}]   ;;  %s3138_s9 = inlined_call_operand.vmem [shape: bf16[32,16], index: 9, kind: input, shape index: {}]   ;;  %s3139_s10 = inlined_call_operand.vmem [shape: f32[64,16], index: 10, kind: output, shape index: {}]  }
   0x1 LB: > { %s2195_s14 = sadd.s32 4294967295, %s2483_s13   ;;  %p2199_p0 = scmp.ge.s32.totalorder %s2483_s13, 1  ;;  %s2483_s13 = sphi %s2545_s13, %s20_s13  }
   0x2   : > { %p313_p1 = scmp.lt.s32.totalorder %s2483_s13, 3 }
   0x4   : > { %p314_p2 = pnand %p2199_p0, %p313_p1 }
   0x5   : > { %s2200_s15 = sshll.u32 (!%p314_p2), %s2195_s14, 2  ;;  %s2486_s17 = smov (!%p314_p2), 120  }
   0x6   : > { %317 = sbr.rel (%p314_p2) target bundleno = 3311 (0xcef), region = 60  ;;  %p352_p3 = scmp.lt.s32.totalorder (!%p314_p2), %s2200_s15, 7 }
   0x7   : > { %s2487_s18 = smov (!%p314_p2), 112   ;;  %s2488_s20 = smov (!%p314_p2), 104  }
   0xb   : > { %s3149_s15 = smov (!%p352_p3, %s2200_s15), 7  ;;  %vm370_vm0 = vcmask 261120   ;;  %v2485_v8 = vmov 32.0   ;;  %v2334_v35 = vld [vmem:[%s3132_s3 + $0x8] sm:$0xff]  ;;  %v2333_v41 = vld [vmem:[%s3132_s3] sm:$0xff]  ;;  %vm614_vm14 = vcmask 64512  }
   0xc   : > { %s2201_s16 = sshll.u32 %s3149_s15, 3  ;;  %2365 = vrcp.f32 %v2485_v8  ;;  %v2338_v36 = vld [vmem:[%s3134_s5 + $0x8] sm:$0xff]  ;;  %507 = vmatpush.bf16.msra.mxu0 %v2334_v35  ;;  %2350 = vmatpush.bf16.msra.mxu1 %v2334_v35  ;;  %v2337_v42 = vld [vmem:[%s3134_s5] sm:$0xff]  ;;  %vm635_vm15 = vcmask 130048  }
   0xd   : > { %s2561_s19 = scalar_lea.vmem %s3129_s0, %s2201_s16  ;;  %579 = vmatpush.bf16.msra.mxu2 %v2338_v36  ;;  %v2336_v47 = vld [vmem:[%s3133_s4 + $0x8] sm:$0xff]  ;;  %v2335_v50 = vld [vmem:[%s3133_s4] sm:$0xff]  ;;  %s3114_s23 = scalar_lea.vmem %s3139_s10, %s2201_s16 }
   0xe   : > { %v366_v0 = vld [vmem:[%s2561_s19 + $0x10] sm:$0xff]  ;;  %v2565_v1 = vld [vmem:[%s2561_s19] sm:$0xff]  ;;  %v367_v4 = vld [vmem:[%s2561_s19 + $0x18] sm:$0xff] }
   0xf   : > { %v377_v2 = vsel %vm370_vm0, %v366_v0, 0.0  ;;  %v371_v3 = vsel %vm370_vm0, %v2565_v1, 0.0  ;;  %v365_v5 = vld [vmem:[%s2561_s19 + $0x8] sm:$0xff]  ;;  %v380_v6 = vsel %vm370_vm0, %v367_v4, 0.0  ;;  %v2626_v8 = vld [vmem:[%s3130_s1] sm:$0xff] }
  0x10   : > { %378 = vadd.xlane.f32.xlu0 %v377_v2  ;;  %372 = vadd.xlane.f32.xlu1 %v371_v3  ;;  %v374_v7 = vsel %vm370_vm0, %v365_v5, 0.0 }
  0x11   : > { %508 = vmatpush.bf16.msra.mxu0 %v2333_v41  ;;  %2351 = vmatpush.bf16.msra.mxu1 %v2333_v41 }
  0x12   : > { %v2366_v9 = vpop.eup %2365  ;;  %580 = vmatpush.bf16.msra.mxu2 %v2337_v42 }
  0x13   : > { %v384_v10 = vmul.f32 32.0, %v2366_v9  ;;  %vm388_vm1 = vweird.f32 %v2366_v9 }
  0x15   : > { %v385_v11 = vsub.f32 1.0, %v384_v10  ;;  %543 = vmatpush.bf16.msrb.mxu1 %v2336_v47 }
  0x17   : > { %v386_v12 = vmul.f32 %v2366_v9, %v385_v11 }
  0x18   : > { %381 = vadd.xlane.f32.xlu0 %v380_v6  ;;  %375 = vadd.xlane.f32.xlu1 %v374_v7 }
  0x19   : > { %v387_v13 = vadd.f32 %v2366_v9, %v386_v12  ;;  %544 = vmatpush.bf16.msrb.mxu1 %v2335_v50 }
  0x1b   : > { %v2574_v14 = vsel %vm388_vm1, %v2366_v9, %v387_v13  ;;  %vm757_vm1 = vcmask 1043456  }
  0x83   : > { %v379_v15 = vpop.xlane.xlu0 %378  ;;  %v373_v16 = vpop.xlane.xlu1 %372 }
  0x84   : > { %v392_v17 = vmul.f32 %v2574_v14, %v379_v15  ;;  %v390_v18 = vmul.f32 %v2574_v14, %v373_v16  ;;  %v466_v15 = vperm.slane %v2626_v8, 0 }
  0x86   : > { %v2578_v19 = vsub.f32 %v366_v0, %v392_v17  ;;  %v2581_v20 = vsub.f32 %v2565_v1, %v390_v18 }
  0x88   : > { %v400_v21 = vmul.f32 %v2578_v19, %v2578_v19  ;;  %v398_v22 = vmul.f32 %v2581_v20, %v2581_v20 }
  0x8a   : > { %v408_v23 = vsel %vm370_vm0, %v400_v21, 0.0  ;;  %v402_v24 = vsel %vm370_vm0, %v398_v22, 0.0 }
  0x8b   : > { %409 = vadd.xlane.f32.xlu2 %v408_v23  ;;  %v382_v25 = vpop.xlane.xlu0 %381  ;;  %403 = vadd.xlane.f32.xlu0 %v402_v24  ;;  %v376_v26 = vpop.xlane.xlu1 %375 }
  0x8c   : > { %v393_v27 = vmul.f32 %v2574_v14, %v382_v25  ;;  %v391_v28 = vmul.f32 %v2574_v14, %v376_v26  ;;  %v471_v26 = vperm.slane %v2626_v8, 1 }
  0x8e   : > { %v2591_v29 = vsub.f32 %v367_v4, %v393_v27  ;;  %v2593_v30 = vsub.f32 %v365_v5, %v391_v28 }
  0x90   : > { %v401_v31 = vmul.f32 %v2591_v29, %v2591_v29  ;;  %v399_v32 = vmul.f32 %v2593_v30, %v2593_v30 }
  0x92   : > { %v411_v33 = vsel %vm370_vm0, %v401_v31, 0.0  ;;  %v405_v34 = vsel %vm370_vm0, %v399_v32, 0.0 }
  0x93   : > { %412 = vadd.xlane.f32.xlu2 %v411_v33  ;;  %406 = vadd.xlane.f32.xlu1 %v405_v34 }
  0xfe   : > { %v410_v37 = vpop.xlane.xlu2 %409  ;;  %v404_v38 = vpop.xlane.xlu0 %403 }
  0xff   : > { %v416_v39 = vmul.f32 %v410_v37, %v2574_v14  ;;  %v414_v40 = vmul.f32 %v404_v38, %v2574_v14 }
 0x101   : > { %v420_v43 = vadd.f32 1e-05, %v416_v39  ;;  %v418_v44 = vadd.f32 1e-05, %v414_v40 }
 0x103   : > { %2367 = vrsqrt.f32 %v420_v43  ;;  %vm428_vm3 = vweird.f32 %v418_v44  ;;  %vm448_vm5 = vweird.f32 %v420_v43 }
 0x104   : > { %2369 = vrsqrt.f32 %v418_v44 }
 0x106   : > { %v413_v45 = vpop.xlane.xlu2 %412  ;;  %v407_v46 = vpop.xlane.xlu1 %406 }
 0x107   : > { %v417_v48 = vmul.f32 %v413_v45, %v2574_v14  ;;  %v415_v49 = vmul.f32 %v407_v46, %v2574_v14 }
 0x109   : > { %v2368_v51 = vpop.eup %2367  ;;  %v421_v52 = vadd.f32 1e-05, %v417_v48  ;;  %v419_v53 = vadd.f32 1e-05, %v415_v49 }
 0x10a   : > { %v2370_v54 = vpop.eup %2369  ;;  %v443_v55 = vmul.f32 %v2368_v51, %v420_v43  ;;  %vm449_vm2 = vweird.f32 %v2368_v51 }
 0x10b   : > { %v423_v56 = vmul.f32 %v2370_v54, %v418_v44  ;;  %2371 = vrsqrt.f32 %v421_v52  ;;  %vm429_vm4 = vweird.f32 %v2370_v54  ;;  %vm450_vm6 = vmor %vm448_vm5, %vm449_vm2  ;;  %vm438_vm9 = vweird.f32 %v419_v53 }
 0x10c   : > { %v444_v57 = vmul.f32 %v2368_v51, %v443_v55  ;;  %2373 = vrsqrt.f32 %v419_v53  ;;  %vm430_vm7 = vmor %vm428_vm3, %vm429_vm4  ;;  %vm458_vm11 = vweird.f32 %v421_v52 }
 0x10d   : > { %v424_v58 = vmul.f32 %v2370_v54, %v423_v56 }
 0x10e   : > { %v445_v59 = vmul.f32 0.5, %v444_v57  ;;  %v2646_v57 = vperm.slane %v2626_v8, 3 }
 0x10f   : > { %v425_v60 = vmul.f32 0.5, %v424_v58 }
 0x110   : > { %v446_v61 = vsub.f32 1.5, %v445_v59  ;;  %v2651_v59 = vperm.slane %v2626_v8, 4 }
 0x111   : > { %v2372_v62 = vpop.eup %2371  ;;  %v426_v63 = vsub.f32 1.5, %v425_v60 }
 0x112   : > { %v2374_v0 = vpop.eup %2373  ;;  %v447_v2 = vmul.f32 %v2368_v51, %v446_v61  ;;  %v453_v3 = vmul.f32 %v2372_v62, %v421_v52  ;;  %vm459_vm8 = vweird.f32 %v2372_v62 }
 0x113   : > { %v427_v4 = vmul.f32 %v2370_v54, %v426_v63  ;;  %v433_v5 = vmul.f32 %v2374_v0, %v419_v53  ;;  %vm439_vm10 = vweird.f32 %v2374_v0  ;;  %vm460_vm12 = vmor %vm458_vm11, %vm459_vm8 }
 0x114   : > { %v454_v6 = vmul.f32 %v2372_v62, %v453_v3  ;;  %v451_v9 = vsel %vm450_vm6, %v2368_v51, %v447_v2  ;;  %vm440_vm13 = vmor %vm438_vm9, %vm439_vm10 }
 0x115   : > { %v434_v7 = vmul.f32 %v2374_v0, %v433_v5  ;;  %v431_v11 = vsel %vm430_vm7, %v2370_v54, %v427_v4  ;;  %v464_v16 = vmul.f32 %v451_v9, %v2578_v19 }
 0x116   : > { %v455_v10 = vmul.f32 0.5, %v454_v6  ;;  %v462_v18 = vmul.f32 %v431_v11, %v2581_v20 }
 0x117   : > { %v435_v12 = vmul.f32 0.5, %v434_v7  ;;  %v469_v27 = vmul.f32 %v466_v15, %v464_v16 }
 0x118   : > { %v456_v13 = vsub.f32 1.5, %v455_v10  ;;  %v467_v19 = vmul.f32 %v466_v15, %v462_v18 }
 0x119   : > { %v436_v17 = vsub.f32 1.5, %v435_v12  ;;  %v474_v33 = vadd.f32 %v471_v26, %v469_v27 }
 0x11a   : > { %v457_v21 = vmul.f32 %v2372_v62, %v456_v13  ;;  %v472_v20 = vadd.f32 %v471_v26, %v467_v19 }
 0x11b   : > { %v437_v22 = vmul.f32 %v2374_v0, %v436_v17 }
 0x11c   : > { %v461_v23 = vsel %vm460_vm12, %v2372_v62, %v457_v21 }
 0x11d   : > { %v465_v24 = vmul.f32 %v461_v23, %v2591_v29  ;;  %v441_v25 = vsel %vm440_vm13, %v2374_v0, %v437_v22  ;;  %v482_v29 = vperm.slane %v2626_v8, 2 }
 0x11e   : > { %v463_v28 = vmul.f32 %v441_v25, %v2593_v30 }
 0x11f   : > { %v470_v31 = vmul.f32 %v466_v15, %v465_v24 }
 0x120   : > { %v468_v32 = vmul.f32 %v466_v15, %v463_v28 }
 0x121   : > { %v475_v34 = vadd.f32 %v471_v26, %v470_v31 }
 0x122   : > { %v473_v35 = vadd.f32 %v471_v26, %v468_v32 }
 0x123   : > { %v477_v36 = vpack.c.bf16 %v475_v34, %v474_v33 }
 0x124   : > { %v476_v37 = vpack.c.bf16 %v473_v35, %v472_v20 }
 0x125   : > { %2213 = vmatmul.msk.bf16.vlgmr.msra.gmra.mxu1 %vm370_vm0, %v477_v36 }
 0x126   : > { %2212 = vmatmul.msk.bf16.vlgmr.msra.gmra.mxu0 %vm370_vm0, %v476_v37  ;;  %2232 = vmatmul.msk.bf16.vlgmr.msra.gmra.mxu2 %vm370_vm0, %v476_v37 }
 0x135   : > { %2222 = vmatmul.msk.bf16.vlgmr.msrb.gmra.mxu1 %vm370_vm0, %v476_v37 }
 0x136   : > { %2233 = vmatmul.msk.bf16.gmra.mxu2 %vm370_vm0, %v477_v36 }
 0x145   : > { %2223 = vmatmul.msk.bf16.gmra.mxu1 %vm370_vm0, %v477_v36 }
 0x1a2   : > { %v515_v30 = vpop.f32.mrf.mxu1 }
 0x1a3   : > { %v510_v38 = vpop.f32.mrf.mxu0  ;;  %v516_v39 = vadd.f32 %v515_v30, %v482_v29 }
 0x1a4   : > { %v511_v40 = vadd.f32 %v510_v38, %v482_v29 }
 0x1a5   : > { %v594_v43 = vpack.c.bf16 %v516_v39, %v516_v39 }
 0x1a6   : > { %v592_v46 = vpack.c.bf16 %v511_v40, %v511_v40 }
 0x1a7   : > { %v981_v50 = vunpack.c.l.b16 %v594_v43 }
 0x1a8   : > { %v606_v52 = vunpack.c.l.b16 %v592_v46 }
 0x1a9   : > { %v582_v41 = vpop.f32.mrf.mxu2 }
 0x1aa   : > { %v517_v42 = vpop.f32.mrf.mxu1  ;;  %v583_v62 = vadd.f32 %v582_v41, %v2651_v59 }
 0x1ab   : > { %v512_v44 = vpop.f32.mrf.mxu0  ;;  %v518_v45 = vadd.f32 %v517_v42, %v482_v29 }
 0x1ac   : > { %v513_v47 = vadd.f32 %v512_v44, %v482_v29  ;;  %v600_v4 = vpack.c.bf16 %v583_v62, %v583_v62 }
 0x1ad   : > { %v595_v48 = vpack.c.bf16 %v518_v45, %v518_v45 }
 0x1ae   : > { %v593_v49 = vpack.c.bf16 %v513_v47, %v513_v47  ;;  %v661_v10 = vunpack.c.l.b16 %v600_v4 }
 0x1af   : > { %v982_v51 = vunpack.c.l.b16 %v595_v48 }
 0x1b0   : > { %v607_v53 = vunpack.c.l.b16 %v593_v49 }
 0x1b1   : > { %v2641_v54 = vpack.c.b16 %v982_v51, %v981_v50  ;;  %v584_v58 = vpop.f32.mrf.mxu2 }
 0x1b2   : > { %v2643_v55 = vpack.c.b16 %v607_v53, %v606_v52  ;;  %v546_v56 = vpop.f32.mrf.mxu1  ;;  %v585_v60 = vadd.f32 %v584_v58, %v2651_v59 }
 0x1b3   : > { %v547_v61 = vadd.f32 %v546_v56, %v2646_v57 }
 0x1b4   : > { %684 = vrot.lane.b32.xlu0 %v2643_v55, %s2486_s17  ;;  %v601_v0 = vpack.c.bf16 %v585_v60, %v585_v60 }
 0x1b5   : > { %v596_v2 = vpack.c.bf16 %v547_v61, %v547_v61 }
 0x1b6   : > { %v662_v6 = vunpack.c.l.b16 %v601_v0 }
 0x1b7   : > { %v611_v7 = vunpack.c.l.b16 %v596_v2 }
 0x1b8   : > { %v2659_v12 = vpack.c.b16 %v662_v6, %v661_v10 }
 0x1ba   : > { %v548_v63 = vpop.f32.mrf.mxu1 }
 0x1bb   : > { %v549_v3 = vadd.f32 %v548_v63, %v2646_v57 }
 0x1bd   : > { %v597_v5 = vpack.c.bf16 %v549_v3, %v549_v3 }
 0x1bf   : > { %v612_v9 = vunpack.c.l.b16 %v597_v5 }
 0x1c1   : > { %v2657_v11 = vpack.c.b16 %v612_v9, %v611_v7 }
 0x1c3   : > { %797 = vrot.lane.b32.xlu1 %v2657_v11, %s2487_s18  ;;  %686 = vrot.lane.b32.xlu2 %v2657_v11, %s2486_s17  ;;  %v619_v13 = vsel %vm614_vm14, %v2657_v11, 0 }
 0x1c4   : > { %628 = vmatpush.bf16.xpose.msra.mxu3 %v619_v13 }
 0x1cb   : > { %795 = vrot.lane.b32.xlu2 %v2643_v55, %s2487_s18  ;;  %2234 = vmatmul.msk.bf16.vlgmr.msra.gmra.mxu3 %vm614_vm14, %v2643_v55 }
 0x1cc   : > { %675 = vmatpush.bf16.msrb.mxu3 %v2659_v12 }
 0x21d   : > { %v687_v15 = vpop.permute.xlu2 %686 }
 0x21e   : > { %v692_v16 = vsel %vm614_vm14, %v687_v15, 0 }
 0x21f   : > { %701 = vmatpush.bf16.xpose.msrb.mxu0 %v692_v16 }
 0x225   : > { %v796_v22 = vpop.permute.xlu2 %795 }
 0x226   : > { %v685_v17 = vpop.permute.xlu0 %684 }
 0x227   : > { %2236 = vmatmul.msk.bf16.vlgmr.msrb.gmra.mxu0 %vm614_vm14, %v685_v17 }
 0x235   : > { %v798_v18 = vpop.permute.xlu1 %797 }
 0x236   : > { %v803_v21 = vsel %vm614_vm14, %v798_v18, 0 }
 0x237   : > { %812 = vmatpush.bf16.xpose.msra.mxu0 %v803_v21 }
 0x23e   : > { %2241 = vmatmul.msk.bf16.vlgmr.msra.gmra.mxu0 %vm614_vm14, %v796_v22 }
 0x24e   : > { %v2682_v32 = vpop.f32.mrf.mxu3 }
 0x24f   : > { %v636_v53 = vsel %vm635_vm15, %v2682_v32, -inf }
 0x256   : > { %v2684_v33 = vpop.f32.mrf.mxu3 }
 0x257   : > { %v639_v34 = vsel %vm635_vm15, %v2684_v33, -inf }
 0x2a4   : > { %v703_v23 = vpop.f32.mrf.mxu0 }
 0x2a5   : > { %v708_v24 = vsel %vm635_vm15, %v703_v23, -inf }
 0x2a6   : > { %709 = vmax.xlane.f32.xlu0 %v708_v24 }
 0x2ac   : > { %v705_v25 = vpop.f32.mrf.mxu0 }
 0x2ad   : > { %v711_v26 = vsel %vm635_vm15, %v705_v25, -inf }
 0x2ae   : > { %712 = vmax.xlane.f32.xlu2 %v711_v26 }
 0x2bb   : > { %v814_v27 = vpop.f32.mrf.mxu0 }
 0x2bc   : > { %v819_v28 = vsel %vm635_vm15, %v814_v27, -inf }
 0x2bd   : > { %820 = vmax.xlane.f32.xlu1 %v819_v28 }
 0x2c3   : > { %v816_v19 = vpop.f32.mrf.mxu0 }
 0x2c4   : > { %v822_v31 = vsel %vm635_vm15, %v816_v19, -inf }
 0x2c5   : > { %823 = vmax.xlane.f32.xlu0 %v822_v31 }
 0x2d9   : > { %731 = vrot.lane.b32.xlu0 %v2659_v12, %s2486_s17 }
 0x303   : > { %640 = vmax.xlane.f32.xlu0 %v639_v34 }
 0x319   : > { %v710_v20 = vpop.xlane.xlu0 %709 }
 0x31a   : > { %v714_v35 = vsub.f32 %v703_v23, %v710_v20 }
 0x31c   : > { %v716_v36 = vmul.f32 1.442695, %v714_v35 }
 0x31e   : > { %2375 = vpow2.f32 %v716_v36 }
 0x321   : > { %v713_v37 = vpop.xlane.xlu2 %712 }
 0x322   : > { %v715_v29 = vsub.f32 %v705_v25, %v713_v37  ;;  %v2238_v25 = vld [vmem:[%s3135_s6 + $0x4] sm:$0xf]  ;;  %v683_v37 = vld [vmem:[%s3135_s6] sm:$0xf] }
 0x323   : > { %v759_v26 = vsel %vm757_vm1, %v2238_v25, 0 }
 0x324   : > { %v2376_v30 = vpop.eup %2375  ;;  %v718_v38 = vmul.f32 1.442695, %v715_v29  ;;  %768 = vmatpush.bf16.msrb.mxu2 %v759_v26 }
 0x325   : > { %v720_v39 = vsel %vm635_vm15, %v2376_v30, 0.0 }
 0x326   : > { %2377 = vpow2.f32 %v718_v38  ;;  %721 = vadd.xlane.f32.xlu2 %v720_v39 }
 0x32c   : > { %v2378_v40 = vpop.eup %2377 }
 0x32d   : > { %v723_v41 = vsel %vm635_vm15, %v2378_v40, 0.0 }
 0x32e   : > { %724 = vadd.xlane.f32.xlu1 %v723_v41 }
 0x330   : > { %v821_v42 = vpop.xlane.xlu1 %820 }
 0x331   : > { %v825_v43 = vsub.f32 %v814_v27, %v821_v42  ;;  %v2243_v27 = vld [vmem:[%s3135_s6 + $0x8] sm:$0xf] }
 0x332   : > { %v869_v28 = vsel %vm757_vm1, %v2243_v27, 0 }
 0x333   : > { %v827_v44 = vmul.f32 1.442695, %v825_v43  ;;  %878 = vmatpush.bf16.msra.mxu2 %v869_v28 }
 0x335   : > { %2379 = vpow2.f32 %v827_v44 }
 0x338   : > { %v824_v45 = vpop.xlane.xlu0 %823 }
 0x339   : > { %v826_v46 = vsub.f32 %v816_v19, %v824_v45  ;;  %v551_v19 = vpop.f32.mrf.mxu1 }
 0x33b   : > { %v2380_v47 = vpop.eup %2379  ;;  %v829_v48 = vmul.f32 1.442695, %v826_v46 }
 0x33c   : > { %v831_v49 = vsel %vm635_vm15, %v2380_v47, 0.0 }
 0x33d   : > { %2381 = vpow2.f32 %v829_v48  ;;  %832 = vadd.xlane.f32.xlu2 %v831_v49 }
 0x341   : > { %v553_v31 = vpop.f32.mrf.mxu1 }
 0x343   : > { %v2382_v50 = vpop.eup %2381 }
 0x344   : > { %v834_v51 = vsel %vm635_vm15, %v2382_v50, 0.0 }
 0x345   : > { %835 = vadd.xlane.f32.xlu1 %v834_v51 }
 0x34b   : > { %v732_v52 = vpop.permute.xlu0 %731 }
 0x34c   : > { %744 = vmatpush.bf16.msra.mxu1 %v732_v52  ;;  %v587_v52 = vpop.f32.mrf.mxu2 }
 0x34d   : > { %637 = vmax.xlane.f32.xlu1 %v636_v53 }
 0x354   : > { %v589_v53 = vpop.f32.mrf.mxu2 }
 0x355   : > { %842 = vrot.lane.b32.xlu2 %v2659_v12, %s2487_s18 }
 0x35d   : > { %889 = vrot.lane.b32.xlu2 %v2657_v11, %s2488_s20 }
 0x376   : > { %v641_v7 = vpop.xlane.xlu0 %640 }
 0x377   : > { %v643_v16 = vsub.f32 %v2684_v33, %v641_v7 }
 0x379   : > { %v646_v18 = vmul.f32 1.442695, %v643_v16 }
 0x399   : > { %v722_v56 = vpop.xlane.xlu2 %721 }
 0x39a   : > { %2383 = vrcp.f32 %v722_v56 }
 0x3a0   : > { %v2384_v60 = vpop.eup %2383 }
 0x3a1   : > { %v725_v58 = vpop.xlane.xlu1 %724  ;;  %v728_v62 = vmul.f32 %v2384_v60, %v2376_v30  ;;  %v779_v30 = vsel %vm757_vm1, %v683_v37, 0 }
 0x3a2   : > { %2385 = vrcp.f32 %v725_v58  ;;  %788 = vmatpush.bf16.msra.mxu3 %v779_v30 }
 0x3a8   : > { %v2386_v61 = vpop.eup %2385 }
 0x3a9   : > { %v729_v63 = vmul.f32 %v2386_v61, %v2378_v40  ;;  %v590_v61 = vadd.f32 %v589_v53, %v2651_v59 }
 0x3ab   : > { %v730_v0 = vpack.c.bf16 %v729_v63, %v728_v62  ;;  %v588_v62 = vadd.f32 %v587_v52, %v2651_v59 }
 0x3ad   : > { %2237 = vmatmul.msk.bf16.vlgmr.msra.gmra.mxu1 %vm635_vm15, %v730_v0 }
 0x3b0   : > { %v833_v2 = vpop.xlane.xlu2 %832 }
 0x3b1   : > { %2387 = vrcp.f32 %v833_v2  ;;  %v603_v2 = vpack.c.bf16 %v590_v61, %v590_v61 }
 0x3b7   : > { %v2388_v5 = vpop.eup %2387 }
 0x3b8   : > { %v836_v3 = vpop.xlane.xlu1 %835  ;;  %v843_v4 = vpop.permute.xlu2 %842  ;;  %v839_v9 = vmul.f32 %v2388_v5, %v2380_v47 }
 0x3b9   : > { %2389 = vrcp.f32 %v836_v3  ;;  %855 = vmatpush.bf16.msrb.mxu1 %v843_v4  ;;  %v602_v3 = vpack.c.bf16 %v588_v62, %v588_v62  ;;  %v1035_v4 = vunpack.c.l.b16 %v603_v2 }
 0x3bb   : > { %v1034_v5 = vunpack.c.l.b16 %v602_v3 }
 0x3bf   : > { %v2390_v6 = vpop.eup %2389 }
 0x3c0   : > { %v840_v10 = vmul.f32 %v2390_v6, %v2382_v50  ;;  %v638_v11 = vpop.xlane.xlu1 %637  ;;  %v890_v49 = vpop.permute.xlu2 %889 }
 0x3c1   : > { %v642_v13 = vsub.f32 %v2682_v32, %v638_v11  ;;  %v554_v32 = vadd.f32 %v553_v31, %v2646_v57  ;;  %v895_v51 = vsel %vm614_vm14, %v890_v49, 0  ;;  %v2741_v11 = vpack.c.b16 %v1035_v4, %v1034_v5 }
 0x3c2   : > { %v841_v15 = vpack.c.bf16 %v840_v10, %v839_v9 }
 0x3c3   : > { %v644_v17 = vmul.f32 1.442695, %v642_v13  ;;  %v599_v33 = vpack.c.bf16 %v554_v32, %v554_v32 }
 0x3c4   : > { %2242 = vmatmul.msk.bf16.vlgmr.msrb.gmra.mxu1 %vm635_vm15, %v841_v15 }
 0x3c5   : > { %2391 = vpow2.f32 %v644_v17  ;;  %v987_v35 = vunpack.c.l.b16 %v599_v33 }
 0x3c6   : > { %2393 = vpow2.f32 %v646_v18 }
 0x3cb   : > { %v2392_v21 = vpop.eup %2391 }
 0x3cc   : > { %v648_v22 = vsel %vm635_vm15, %v2392_v21, 0.0  ;;  %v2394_v23 = vpop.eup %2393 }
 0x3cd   : > { %649 = vadd.xlane.f32.xlu1 %v648_v22  ;;  %v651_v24 = vsel %vm635_vm15, %v2394_v23, 0.0 }
 0x3d5   : > { %652 = vadd.xlane.f32.xlu1 %v651_v24 }
 0x3ee   : > { %887 = vrot.lane.b32.xlu1 %v2643_v55, %s2488_s20  ;;  %v552_v55 = vadd.f32 %v551_v19, %v2646_v57 }
 0x3f0   : > { %v598_v20 = vpack.c.bf16 %v552_v55, %v552_v55 }
 0x3f2   : > { %v986_v36 = vunpack.c.l.b16 %v598_v20 }
 0x3f4   : > { %v2719_v29 = vpack.c.b16 %v987_v35, %v986_v36 }
 0x3f6   : > { %v993_v57 = vsel %vm614_vm14, %v2719_v29, 0 }
 0x42a   : > { %v746_v34 = vpop.f32.mrf.mxu1 }
 0x432   : > { %v748_v38 = vpop.f32.mrf.mxu1 }
 0x433   : > { %v751_v39 = vpack.c.bf16 %v748_v38, %v746_v34 }
 0x435   : > { %2239 = vmatmul.msk.bf16.vlgmr.msrb.gmra.mxu2 %vm614_vm14, %v751_v39 }
 0x436   : > { %1002 = vmatpush.bf16.xpose.msrb.mxu2 %v993_v57 }
 0x440   : > { %v650_v40 = vpop.xlane.xlu1 %649 }
 0x441   : > { %v857_v41 = vpop.f32.mrf.mxu1  ;;  %2395 = vrcp.f32 %v650_v40 }
 0x447   : > { %v2396_v45 = vpop.eup %2395 }
 0x448   : > { %v653_v42 = vpop.xlane.xlu1 %652  ;;  %v656_v47 = vmul.f32 %v2396_v45, %v2392_v21 }
 0x449   : > { %2397 = vrcp.f32 %v653_v42  ;;  %v859_v43 = vpop.f32.mrf.mxu1 }
 0x44a   : > { %v862_v44 = vpack.c.bf16 %v859_v43, %v857_v41 }
 0x44c   : > { %2244 = vmatmul.msk.bf16.vlgmr.msra.gmra.mxu2 %vm614_vm14, %v862_v44 }
 0x44d   : > { %1134 = vmatpush.bf16.msra.mxu2 %v759_v26 }
 0x44f   : > { %v2398_v46 = vpop.eup %2397 }
 0x450   : > { %v657_v48 = vmul.f32 %v2398_v46, %v2394_v23 }
 0x452   : > { %v658_v50 = vpack.c.bf16 %v657_v48, %v656_v47 }
 0x454   : > { %2235 = vmatmul.msk.bf16.vlgmr.msrb.gmra.mxu3 %vm635_vm15, %v658_v50 }
 0x455   : > { %904 = vmatpush.bf16.xpose.msrb.mxu3 %v895_v51 }
 0x45c   : > { %2249 = vmatmul.msk.bf16.vlgmr.msrb.gmra.mxu2 %vm614_vm14, %v2641_v54 }
 0x45d   : > { %1236 = vmatpush.bf16.msrb.mxu2 %v869_v28 }
 0x460   : > { %v888_v15 = vpop.permute.xlu1 %887 }
 0x4b8   : > { %v2730_v56 = vpop.f32.mrf.mxu2 }
 0x4c0   : > { %v2732_v58 = vpop.f32.mrf.mxu2 }
 0x4cf   : > { %v2734_v60 = vpop.f32.mrf.mxu2 }
 0x4d7   : > { %v677_v63 = vpop.f32.mrf.mxu3  ;;  %v2738_v0 = vpop.f32.mrf.mxu2 }
 0x4df   : > { %v679_v6 = vpop.f32.mrf.mxu3  ;;  %v1004_v7 = vpop.f32.mrf.mxu2 }
 0x4e0   : > { %v682_v9 = vpack.c.bf16 %v679_v6, %v677_v63  ;;  %v1009_v10 = vsel %vm635_vm15, %v1004_v7, -inf }
 0x4e1   : > { %1010 = vmax.xlane.f32.xlu2 %v1009_v10 }
 0x4e2   : > { %2240 = vmatmul.msk.bf16.vlgmr.msra.gmra.mxu3 %vm614_vm14, %v682_v9 }
 0x4e3   : > { %1048 = vmatpush.bf16.msra.mxu3 %v2741_v11 }
 0x4e7   : > { %v1006_v59 = vpop.f32.mrf.mxu2 }
 0x4e8   : > { %v1012_v13 = vsel %vm635_vm15, %v1006_v59, -inf }
 0x4e9   : > { %1013 = vmax.xlane.f32.xlu0 %v1012_v13 }
 0x4f2   : > { %2245 = vmatmul.msk.bf16.vlgmr.msrb.gmra.mxu3 %vm614_vm14, %v888_v15 }
 0x4f3   : > { %1151 = vmatpush.bf16.msrb.mxu3 %v779_v30 }
 0x554   : > { %v1011_v16 = vpop.xlane.xlu2 %1010 }
 0x555   : > { %v1015_v17 = vsub.f32 %v1004_v7, %v1011_v16 }
 0x557   : > { %v1017_v18 = vmul.f32 1.442695, %v1015_v17 }
 0x559   : > { %2399 = vpow2.f32 %v1017_v18 }
 0x55c   : > { %v1014_v21 = vpop.xlane.xlu0 %1013 }
 0x55d   : > { %v1016_v22 = vsub.f32 %v1006_v59, %v1014_v21  ;;  %v2247_v59 = vld [vmem:[%s3135_s6 + $0xc] sm:$0xf] }
 0x55e   : > { %v2784_v13 = vsel %vm757_vm1, %v2247_v59, 0 }
 0x55f   : > { %v2400_v23 = vpop.eup %2399  ;;  %v1019_v24 = vmul.f32 1.442695, %v1016_v22  ;;  %970 = vmatpush.bf16.msra.mxu1 %v2784_v13 }
 0x560   : > { %v1021_v25 = vsel %vm635_vm15, %v2400_v23, 0.0 }
 0x561   : > { %2401 = vpow2.f32 %v1019_v24  ;;  %1022 = vadd.xlane.f32.xlu1 %v1021_v25 }
 0x565   : > { %v2748_v26 = vpop.f32.mrf.mxu3 }
 0x567   : > { %v2402_v27 = vpop.eup %2401 }
 0x568   : > { %v1024_v28 = vsel %vm635_vm15, %v2402_v27, 0.0 }
 0x569   : > { %1025 = vadd.xlane.f32.xlu0 %v1024_v28 }
 0x56d   : > { %v2751_v19 = vpop.f32.mrf.mxu3 }
 0x575   : > { %v906_v31 = vpop.f32.mrf.mxu3 }
 0x576   : > { %v911_v32 = vsel %vm635_vm15, %v906_v31, -inf }
 0x577   : > { %912 = vmax.xlane.f32.xlu0 %v911_v32 }
 0x57a   : > { %1056 = vrot.lane.b32.xlu1 %v2641_v54, %s2486_s17 }
 0x57d   : > { %v908_v55 = vpop.f32.mrf.mxu3 }
 0x57e   : > { %v914_v33 = vsel %vm635_vm15, %v908_v55, -inf }
 0x57f   : > { %915 = vmax.xlane.f32.xlu2 %v914_v33 }
 0x582   : > { %1245 = vrot.lane.b32.xlu1 %v2641_v54, %s2488_s20 }
 0x5d4   : > { %v1023_v34 = vpop.xlane.xlu1 %1022 }
 0x5d5   : > { %2403 = vrcp.f32 %v1023_v34 }
 0x5db   : > { %v2404_v35 = vpop.eup %2403 }
 0x5dc   : > { %v1026_v20 = vpop.xlane.xlu0 %1025  ;;  %v1029_v37 = vmul.f32 %v2404_v35, %v2400_v23  ;;  %v791_v35 = vadd.f32 %v2748_v26, %v2730_v56 }
 0x5dd   : > { %2405 = vrcp.f32 %v1026_v20 }
 0x5e3   : > { %v2406_v36 = vpop.eup %2405 }
 0x5e4   : > { %v1030_v30 = vmul.f32 %v2406_v36, %v2402_v27 }
 0x5e6   : > { %v1031_v38 = vpack.c.bf16 %v1030_v30, %v1029_v37  ;;  %v885_v30 = vadd.f32 %v2734_v60, %v791_v35 }
 0x5e8   : > { %2250 = vmatmul.msk.bf16.vlgmr.msra.gmra.mxu3 %vm635_vm15, %v1031_v38 }
 0x5ea   : > { %v913_v39 = vpop.xlane.xlu0 %912 }
 0x5eb   : > { %v917_v57 = vsub.f32 %v906_v31, %v913_v39 }
 0x5ec   : > { %v1057_v5 = vpop.permute.xlu1 %1056 }
 0x5ed   : > { %v919_v40 = vmul.f32 1.442695, %v917_v57 }
 0x5ef   : > { %2407 = vpow2.f32 %v919_v40  ;;  %v2804_v40 = vperm.slane %v2626_v8, 5 }
 0x5f2   : > { %v916_v41 = vpop.xlane.xlu2 %915 }
 0x5f3   : > { %v918_v42 = vsub.f32 %v908_v55, %v916_v41 }
 0x5f4   : > { %v1246_v9 = vpop.permute.xlu1 %1245 }
 0x5f5   : > { %v2408_v43 = vpop.eup %2407  ;;  %v921_v44 = vmul.f32 1.442695, %v918_v42 }
 0x5f6   : > { %v923_v45 = vsel %vm635_vm15, %v2408_v43, 0.0 }
 0x5f7   : > { %2409 = vpow2.f32 %v921_v44  ;;  %924 = vadd.xlane.f32.xlu0 %v923_v45 }
 0x5fd   : > { %v2410_v46 = vpop.eup %2409 }
 0x5fe   : > { %v926_v47 = vsel %vm635_vm15, %v2410_v46, 0.0 }
 0x5ff   : > { %927 = vadd.xlane.f32.xlu2 %v926_v47 }
 0x60b   : > { %934 = vrot.lane.b32.xlu0 %v2659_v12, %s2488_s20 }
 0x613   : > { %1160 = vrot.lane.b32.xlu0 %v2719_v29, %s2487_s18 }
 0x617   : > { %1058 = vrot.lane.b32.xlu2 %v2719_v29, %s2486_s17 }
 0x61b   : > { %1247 = vrot.lane.b32.xlu0 %v2719_v29, %s2488_s20 }
 0x61f   : > { %1158 = vrot.lane.b32.xlu2 %v2641_v54, %s2487_s18 }
 0x66a   : > { %v925_v49 = vpop.xlane.xlu0 %924 }
 0x66b   : > { %v1050_v48 = vpop.f32.mrf.mxu3 }
 0x672   : > { %v928_v50 = vpop.xlane.xlu2 %927 }
 0x673   : > { %2411 = vrcp.f32 %v928_v50  ;;  %v1052_v51 = vpop.f32.mrf.mxu3 }
 0x674   : > { %2413 = vrcp.f32 %v925_v49  ;;  %v1055_v52 = vpack.c.bf16 %v1052_v51, %v1050_v48 }
 0x676   : > { %2254 = vmatmul.msk.bf16.vlgmr.msrb.gmra.mxu3 %vm614_vm14, %v1055_v52 }
 0x679   : > { %v2412_v12 = vpop.eup %2411 }
 0x67a   : > { %v2414_v53 = vpop.eup %2413  ;;  %v932_v61 = vmul.f32 %v2412_v12, %v2410_v46  ;;  %v1059_v62 = vpop.permute.xlu2 %1058 }
 0x67b   : > { %v931_v63 = vmul.f32 %v2414_v53, %v2408_v43  ;;  %v1064_v29 = vsel %vm614_vm14, %v1059_v62, 0 }
 0x67d   : > { %v935_v2 = vpop.permute.xlu0 %934  ;;  %v933_v3 = vpack.c.bf16 %v932_v61, %v931_v63 }
 0x67e   : > { %947 = vmatpush.bf16.msrb.mxu0 %v935_v2 }
 0x681   : > { %2246 = vmatmul.msk.bf16.vlgmr.msrb.gmra.mxu0 %vm635_vm15, %v933_v3 }
 0x682   : > { %1073 = vmatpush.bf16.xpose.msra.mxu0 %v1064_v29  ;;  %v1159_v10 = vpop.permute.xlu2 %1158 }
 0x685   : > { %v1161_v54 = vpop.permute.xlu0 %1160 }
 0x686   : > { %v1166_v4 = vsel %vm614_vm14, %v1161_v54, 0 }
 0x68a   : > { %1175 = vmatpush.bf16.xpose.msrb.mxu0 %v1166_v4 }
 0x68d   : > { %v1248_v6 = vpop.permute.xlu0 %1247 }
 0x68e   : > { %v1253_v7 = vsel %vm614_vm14, %v1248_v6, 0 }
 0x68f   : > { %1262 = vmatpush.bf16.xpose.msra.mxu3 %v1253_v7 }
 0x691   : > { %2251 = vmatmul.msk.bf16.vlgmr.msra.gmra.mxu0 %vm614_vm14, %v1057_v5 }
 0x696   : > { %2258 = vmatmul.msk.bf16.vlgmr.msra.gmra.mxu3 %vm614_vm14, %v1246_v9 }
 0x6a1   : > { %2255 = vmatmul.msk.bf16.vlgmr.msrb.gmra.mxu0 %vm614_vm14, %v1159_v10  ;;  %v793_v10 = vadd.f32 %v2751_v19, %v2732_v58 }
 0x6f9   : > { %v2787_v18 = vpop.f32.mrf.mxu3 }
 0x6fe   : > { %v949_v15 = vpop.f32.mrf.mxu0 }
 0x701   : > { %v2791_v23 = vpop.f32.mrf.mxu3 }
 0x706   : > { %v951_v16 = vpop.f32.mrf.mxu0 }
 0x707   : > { %v954_v17 = vpack.c.bf16 %v951_v16, %v949_v15  ;;  %v886_v15 = vadd.f32 %v2738_v0, %v793_v10 }
 0x709   : > { %2248 = vmatmul.msk.bf16.vlgmr.msra.gmra.mxu1 %vm614_vm14, %v954_v17  ;;  %v2473_v17 = vld [vmem:[%s2561_s19 + $0x8] sm:$0xff] }
 0x70e   : > { %v1075_v21 = vpop.f32.mrf.mxu0 }
 0x70f   : > { %v1080_v22 = vsel %vm635_vm15, %v1075_v21, -inf }
 0x710   : > { %1081 = vmax.xlane.f32.xlu0 %v1080_v22 }
 0x716   : > { %v1077_v24 = vpop.f32.mrf.mxu0 }
 0x717   : > { %v1083_v25 = vsel %vm635_vm15, %v1077_v24, -inf }
 0x718   : > { %1084 = vmax.xlane.f32.xlu2 %v1083_v25 }
 0x719   : > { %v1264_v27 = vpop.f32.mrf.mxu3 }
 0x71a   : > { %v1269_v32 = vsel %vm635_vm15, %v1264_v27, -inf }
 0x71e   : > { %v1177_v28 = vpop.f32.mrf.mxu0 }
 0x71f   : > { %v1182_v31 = vsel %vm635_vm15, %v1177_v28, -inf }
 0x720   : > { %1183 = vmax.xlane.f32.xlu1 %v1182_v31  ;;  %1270 = vmax.xlane.f32.xlu2 %v1269_v32 }
 0x721   : > { %v1266_v55 = vpop.f32.mrf.mxu3 }
 0x722   : > { %v1272_v20 = vsel %vm635_vm15, %v1266_v55, -inf }
 0x726   : > { %v1179_v33 = vpop.f32.mrf.mxu0 }
 0x727   : > { %v1185_v34 = vsel %vm635_vm15, %v1179_v33, -inf }
 0x728   : > { %1186 = vmax.xlane.f32.xlu0 %v1185_v34  ;;  %1273 = vmax.xlane.f32.xlu1 %v1272_v20 }
 0x741   : > { %1103 = vrot.lane.b32.xlu1 %v2741_v11, %s2486_s17 }
 0x783   : > { %v1082_v36 = vpop.xlane.xlu0 %1081 }
 0x784   : > { %v1086_v37 = vsub.f32 %v1075_v21, %v1082_v36 }
 0x786   : > { %v1088_v38 = vmul.f32 1.442695, %v1086_v37  ;;  %v972_v39 = vpop.f32.mrf.mxu1 }
 0x787   : > { %v977_v57 = vadd.f32 %v972_v39, %v885_v30 }
 0x788   : > { %2415 = vpow2.f32 %v1088_v38 }
 0x789   : > { %v1332_v41 = vadd.f32 %v977_v57, %v2565_v1 }
 0x78b   : > { %v2808_v42 = vadd.f32 %v2804_v40, %v1332_v41  ;;  %v1085_v43 = vpop.xlane.xlu2 %1084 }
 0x78c   : > { %v1087_v44 = vsub.f32 %v1077_v24, %v1085_v43 }
 0x78d   : > { %v1402_v56 = vsel %vm370_vm0, %v2808_v42, 0.0 }
 0x78e   : > { %v2416_v26 = vpop.eup %2415  ;;  %v1090_v45 = vmul.f32 1.442695, %v1087_v44  ;;  %1403 = vadd.xlane.f32.xlu1 %v1402_v56  ;;  %v974_v59 = vpop.f32.mrf.mxu1 }
 0x78f   : > { %v1092_v60 = vsel %vm635_vm15, %v2416_v26, 0.0  ;;  %v978_v16 = vadd.f32 %v974_v59, %v886_v15  ;;  %v2475_v59 = vld [vmem:[%s2561_s19 + $0x18] sm:$0xff] }
 0x790   : > { %2417 = vpow2.f32 %v1090_v45  ;;  %1093 = vadd.xlane.f32.xlu0 %v1092_v60 }
 0x791   : > { %v1333_v21 = vadd.f32 %v2473_v17, %v978_v16 }
 0x793   : > { %v1184_v8 = vpop.xlane.xlu1 %1183  ;;  %v1271_v46 = vpop.xlane.xlu2 %1270  ;;  %v2827_v22 = vadd.f32 %v2804_v40, %v1333_v21 }
 0x794   : > { %v1188_v47 = vsub.f32 %v1177_v28, %v1184_v8  ;;  %v1275_v49 = vsub.f32 %v1264_v27, %v1271_v46 }
 0x795   : > { %v1405_v24 = vsel %vm370_vm0, %v2827_v22, 0.0 }
 0x796   : > { %v2418_v48 = vpop.eup %2417  ;;  %v1190_v1 = vmul.f32 1.442695, %v1188_v47  ;;  %v1277_v51 = vmul.f32 1.442695, %v1275_v49 }
 0x797   : > { %v1095_v50 = vsel %vm635_vm15, %v2418_v48, 0.0 }
 0x798   : > { %2419 = vpow2.f32 %v1190_v1  ;;  %1096 = vadd.xlane.f32.xlu2 %v1095_v50 }
 0x799   : > { %2421 = vpow2.f32 %v1277_v51 }
 0x79b   : > { %v1187_v52 = vpop.xlane.xlu0 %1186  ;;  %v1274_v12 = vpop.xlane.xlu1 %1273 }
 0x79c   : > { %v1189_v53 = vsub.f32 %v1179_v33, %v1187_v52  ;;  %v1276_v63 = vsub.f32 %v1266_v55, %v1274_v12 }
 0x79e   : > { %v2420_v61 = vpop.eup %2419  ;;  %v1192_v62 = vmul.f32 1.442695, %v1189_v53  ;;  %v1279_v29 = vmul.f32 1.442695, %v1276_v63  ;;  %v2474_v63 = vld [vmem:[%s2561_s19 + $0x10] sm:$0xff] }
 0x79f   : > { %v1194_v2 = vsel %vm635_vm15, %v2420_v61, 0.0  ;;  %v2422_v3 = vpop.eup %2421 }
 0x7a0   : > { %1195 = vadd.xlane.f32.xlu0 %v1194_v2  ;;  %2423 = vpow2.f32 %v1192_v62  ;;  %v1281_v4 = vsel %vm635_vm15, %v2422_v3, 0.0 }
 0x7a1   : > { %2425 = vpow2.f32 %v1279_v29 }
 0x7a6   : > { %v2424_v54 = vpop.eup %2423 }
 0x7a7   : > { %v1197_v5 = vsel %vm635_vm15, %v2424_v54, 0.0  ;;  %v2426_v6 = vpop.eup %2425 }
 0x7a8   : > { %1282 = vadd.xlane.f32.xlu0 %v1281_v4  ;;  %1198 = vadd.xlane.f32.xlu2 %v1197_v5  ;;  %v1284_v7 = vsel %vm635_vm15, %v2426_v6, 0.0 }
 0x7b0   : > { %1285 = vadd.xlane.f32.xlu2 %v1284_v7 }
 0x7b3   : > { %v1104_v9 = vpop.permute.xlu1 %1103 }
 0x7b4   : > { %1116 = vmatpush.bf16.msrb.mxu1 %v1104_v9 }
 0x7bc   : > { %1205 = vrot.lane.b32.xlu0 %v2741_v11, %s2487_s18 }
 0x7c8   : > { %1292 = vrot.lane.b32.xlu2 %v2741_v11, %s2488_s20 }
 0x7f1   : > { %1406 = vadd.xlane.f32.xlu2 %v1405_v24 }
 0x801   : > { %v1404_v53 = vpop.xlane.xlu1 %1403 }
 0x802   : > { %v1414_v62 = vmul.f32 %v1404_v53, %v2574_v14 }
 0x803   : > { %v1094_v25 = vpop.xlane.xlu0 %1093 }
 0x804   : > { %2427 = vrcp.f32 %v1094_v25  ;;  %v1418_v4 = vsub.f32 %v2808_v42, %v1414_v62 }
 0x806   : > { %v1422_v16 = vmul.f32 %v1418_v4, %v1418_v4 }
 0x808   : > { %v1426_v21 = vsel %vm370_vm0, %v1422_v16, 0.0 }
 0x80a   : > { %v2428_v11 = vpop.eup %2427 }
 0x80b   : > { %v1097_v27 = vpop.xlane.xlu2 %1096  ;;  %v1100_v58 = vmul.f32 %v2428_v11, %v2416_v26 }
 0x80c   : > { %2429 = vrcp.f32 %v1097_v27 }
 0x812   : > { %v2430_v28 = vpop.eup %2429 }
 0x813   : > { %v1101_v19 = vmul.f32 %v2430_v28, %v2418_v48  ;;  %v1196_v0 = vpop.xlane.xlu0 %1195 }
 0x815   : > { %v1102_v31 = vpack.c.bf16 %v1101_v19, %v1100_v58 }
 0x817   : > { %2252 = vmatmul.msk.bf16.vlgmr.msrb.gmra.mxu1 %vm635_vm15, %v1102_v31 }
 0x81b   : > { %v1199_v32 = vpop.xlane.xlu2 %1198  ;;  %v1283_v55 = vpop.xlane.xlu0 %1282 }
 0x81c   : > { %2431 = vrcp.f32 %v1283_v55 }
 0x81d   : > { %2433 = vrcp.f32 %v1199_v32  ;;  %v2342_v32 = vld [vmem:[%s3136_s7 + $0x18] sm:$0xff] }
 0x81e   : > { %2435 = vrcp.f32 %v1196_v0 }
 0x822   : > { %v2432_v34 = vpop.eup %2431 }
 0x823   : > { %v1286_v33 = vpop.xlane.xlu2 %1285  ;;  %v2434_v20 = vpop.eup %2433  ;;  %v1289_v30 = vmul.f32 %v2432_v34, %v2422_v3 }
 0x824   : > { %2437 = vrcp.f32 %v1286_v33  ;;  %v2436_v35 = vpop.eup %2435  ;;  %v1203_v37 = vmul.f32 %v2434_v20, %v2424_v54 }
 0x825   : > { %v1202_v57 = vmul.f32 %v2436_v35, %v2420_v61  ;;  %v2341_v35 = vld [vmem:[%s3136_s7 + $0x10] sm:$0xff] }
 0x827   : > { %v1204_v44 = vpack.c.bf16 %v1203_v37, %v1202_v57 }
 0x82a   : > { %v2438_v36 = vpop.eup %2437 }
 0x82b   : > { %v1290_v38 = vmul.f32 %v2438_v36, %v2426_v6  ;;  %v1293_v39 = vpop.permute.xlu2 %1292 }
 0x82c   : > { %1305 = vmatpush.bf16.msra.mxu0 %v1293_v39 }
 0x82d   : > { %v1291_v41 = vpack.c.bf16 %v1290_v38, %v1289_v30 }
 0x82e   : > { %v1206_v43 = vpop.permute.xlu0 %1205 }
 0x82f   : > { %1218 = vmatpush.bf16.msra.mxu1 %v1206_v43  ;;  %2259 = vmatmul.msk.bf16.vlgmr.msra.gmra.mxu0 %vm635_vm15, %v1291_v41 }
 0x832   : > { %2256 = vmatmul.msk.bf16.vlgmr.msra.gmra.mxu1 %vm635_vm15, %v1204_v44 }
 0x833   : > { %1323 = vmatpush.bf16.msrb.mxu1 %v2784_v13 }
 0x864   : > { %v1407_v6 = vpop.xlane.xlu2 %1406 }
 0x865   : > { %v1415_v10 = vmul.f32 %v1407_v6, %v2574_v14 }
 0x867   : > { %v1419_v17 = vsub.f32 %v2827_v22, %v1415_v10  ;;  %v2344_v10 = vld [vmem:[%s3136_s7 + $0x28] sm:$0xff] }
 0x868   : > { %1660 = vmatpush.bf16.msrb.mxu0 %v2344_v10 }
 0x869   : > { %v1423_v25 = vmul.f32 %v1419_v17, %v1419_v17 }
 0x86b   : > { %v1429_v27 = vsel %vm370_vm0, %v1423_v25, 0.0 }
 0x894   : > { %v1118_v56 = vpop.f32.mrf.mxu1 }
 0x89c   : > { %v1120_v26 = vpop.f32.mrf.mxu1 }
 0x89d   : > { %v1123_v45 = vpack.c.bf16 %v1120_v26, %v1118_v56 }
 0x89f   : > { %2253 = vmatmul.msk.bf16.vlgmr.msra.gmra.mxu2 %vm614_vm14, %v1123_v45 }
 0x8a0   : > { %1581 = vmatpush.bf16.msra.mxu2 %v2342_v32 }
 0x8a4   : > { %1582 = vmatpush.bf16.msra.mxu2 %v2341_v35 }
 0x8ac   : > { %v1307_v60 = vpop.f32.mrf.mxu0 }
 0x8af   : > { %v1220_v8 = vpop.f32.mrf.mxu1 }
 0x8b4   : > { %v1309_v46 = vpop.f32.mrf.mxu0 }
 0x8b5   : > { %v1312_v47 = vpack.c.bf16 %v1309_v46, %v1307_v60 }
 0x8b7   : > { %v1222_v48 = vpop.f32.mrf.mxu1  ;;  %2260 = vmatmul.msk.bf16.vlgmr.msrb.gmra.mxu1 %vm614_vm14, %v1312_v47  ;;  %v2476_v47 = vld [vmem:[%s3130_s1] sm:$0xff] }
 0x8b8   : > { %v1225_v1 = vpack.c.bf16 %v1222_v48, %v1220_v8  ;;  %v2883_v48 = vperm.slane %v2476_v47, 6 }
 0x8ba   : > { %2257 = vmatmul.msk.bf16.vlgmr.msrb.gmra.mxu2 %vm614_vm14, %v1225_v1 }
 0x922   : > { %v1136_v49 = vpop.f32.mrf.mxu2 }
 0x923   : > { %v1154_v50 = vadd.f32 %v2787_v18, %v1136_v49 }
 0x92a   : > { %v1138_v13 = vpop.f32.mrf.mxu2 }
 0x92b   : > { %v1156_v29 = vadd.f32 %v2791_v23, %v1138_v13 }
 0x934   : > { %v1325_v51 = vpop.f32.mrf.mxu1 }
 0x93c   : > { %v1327_v7 = vpop.f32.mrf.mxu1 }
 0x93d   : > { %v1238_v52 = vpop.f32.mrf.mxu2 }
 0x93e   : > { %v1243_v12 = vadd.f32 %v1238_v52, %v1154_v50  ;;  %v2885_v50 = vperm.slane %v2476_v47, 7 }
 0x940   : > { %v1330_v61 = vadd.f32 %v1325_v51, %v1243_v12  ;;  %v1341_v12 = vlaneseq }
 0x942   : > { %v1334_v2 = vadd.f32 %v2474_v63, %v1330_v61  ;;  %v2891_v63 = vshrl.u32 %v1341_v12, 7 }
 0x944   : > { %v2843_v3 = vadd.f32 %v2804_v40, %v1334_v2  ;;  %vm1525_vm8 = vcmp.lt.s32.totalorder %v2891_v63, 7  ;;  %vm1504_vm9 = vcmp.lt.s32.totalorder %v2891_v63, 1 }
 0x945   : > { %v1240_v54 = vpop.f32.mrf.mxu2 }
 0x946   : > { %v1244_v5 = vadd.f32 %v1240_v54, %v1156_v29  ;;  %v1408_v18 = vsel %vm370_vm0, %v2843_v3, 0.0 }
 0x947   : > { %1409 = vadd.xlane.f32.xlu1 %v1408_v18 }
 0x948   : > { %v1331_v9 = vadd.f32 %v1327_v7, %v1244_v5 }
 0x94a   : > { %v1335_v15 = vadd.f32 %v2475_v59, %v1331_v9  ;;  %v2343_v59 = vld [vmem:[%s3136_s7 + $0x20] sm:$0xff] }
 0x94b   : > { %1661 = vmatpush.bf16.msrb.mxu0 %v2343_v59 }
 0x94c   : > { %v2851_v23 = vadd.f32 %v2804_v40, %v1335_v15 }
 0x94e   : > { %v1411_v24 = vsel %vm370_vm0, %v2851_v23, 0.0 }
 0x94f   : > { %1427 = vadd.xlane.f32.xlu1 %v1426_v21  ;;  %1412 = vadd.xlane.f32.xlu0 %v1411_v24  ;;  %v2340_v21 = vld [vmem:[%s3136_s7 + $0x8] sm:$0xff]  ;;  %v2339_v24 = vld [vmem:[%s3136_s7] sm:$0xff] }
 0x950   : > { %1618 = vmatpush.bf16.msrb.mxu3 %v2340_v21  ;;  %v1982_v21 = vpack.c.bf16 %v2827_v22, %v2808_v42 }
 0x954   : > { %1619 = vmatpush.bf16.msrb.mxu3 %v2339_v24 }
 0x957   : > { %1430 = vadd.xlane.f32.xlu1 %v1429_v27 }
 0x9ba   : > { %v1410_v11 = vpop.xlane.xlu1 %1409 }
 0x9bb   : > { %v1416_v28 = vmul.f32 %v1410_v11, %v2574_v14 }
 0x9bd   : > { %v2860_v58 = vsub.f32 %v2843_v3, %v1416_v28 }
 0x9bf   : > { %v1424_v40 = vmul.f32 %v2860_v58, %v2860_v58 }
 0x9c1   : > { %v1432_v19 = vsel %vm370_vm0, %v1424_v40, 0.0 }
 0x9c2   : > { %1433 = vadd.xlane.f32.xlu2 %v1432_v19  ;;  %v1428_v31 = vpop.xlane.xlu1 %1427  ;;  %v1413_v0 = vpop.xlane.xlu0 %1412 }
 0x9c3   : > { %v1438_v55 = vmul.f32 %v1428_v31, %v2574_v14  ;;  %v1417_v33 = vmul.f32 %v1413_v0, %v2574_v14 }
 0x9c5   : > { %v1442_v34 = vadd.f32 1e-05, %v1438_v55  ;;  %v2871_v20 = vsub.f32 %v2851_v23, %v1417_v33 }
 0x9c7   : > { %2439 = vrsqrt.f32 %v1442_v34  ;;  %v1425_v36 = vmul.f32 %v2871_v20, %v2871_v20  ;;  %vm1452_vm3 = vweird.f32 %v1442_v34 }
 0x9c9   : > { %v1435_v37 = vsel %vm370_vm0, %v1425_v36, 0.0 }
 0x9ca   : > { %v1431_v30 = vpop.xlane.xlu1 %1430  ;;  %1436 = vadd.xlane.f32.xlu0 %v1435_v37 }
 0x9cb   : > { %v1439_v38 = vmul.f32 %v1431_v30, %v2574_v14 }
 0x9cd   : > { %v2440_v39 = vpop.eup %2439  ;;  %v1443_v57 = vadd.f32 1e-05, %v1439_v38 }
 0x9ce   : > { %v1447_v41 = vmul.f32 %v2440_v39, %v1442_v34  ;;  %vm1453_vm2 = vweird.f32 %v2440_v39  ;;  %v1343_v34 = vadd.s32 8, %v2891_v63 }
 0x9cf   : > { %2441 = vrsqrt.f32 %v1443_v57  ;;  %vm1454_vm4 = vmor %vm1452_vm3, %vm1453_vm2  ;;  %vm1462_vm6 = vweird.f32 %v1443_v57 }
 0x9d0   : > { %v1448_v43 = vmul.f32 %v2440_v39, %v1447_v41  ;;  %v1357_v38 = vand.u32 15, %v1343_v34  ;;  %v2349_v41 = vld [vmem:[%s3138_s9 + $0x8] sm:$0xff] }
 0x9d1   : > { %2013 = vmatpush.bf16.msra.mxu0 %v2349_v41 }
 0x9d2   : > { %v1449_v44 = vmul.f32 0.5, %v1448_v43  ;;  %vm2939_vm2 = vcmp.ne.s32.totalorder %v1357_v38, 15 }
 0x9d4   : > { %v1450_v56 = vsub.f32 1.5, %v1449_v44 }
 0x9d5   : > { %v2442_v26 = vpop.eup %2441 }
 0x9d6   : > { %v1451_v45 = vmul.f32 %v2440_v39, %v1450_v56  ;;  %v1457_v60 = vmul.f32 %v2442_v26, %v1443_v57  ;;  %vm1463_vm5 = vweird.f32 %v2442_v26 }
 0x9d7   : > { %vm1464_vm7 = vmor %vm1462_vm6, %vm1463_vm5 }
 0x9d8   : > { %v1455_v8 = vsel %vm1454_vm4, %v2440_v39, %v1451_v45  ;;  %v1458_v46 = vmul.f32 %v2442_v26, %v1457_v60  ;;  %v2348_v60 = vld [vmem:[%s3138_s9] sm:$0xff] }
 0x9d9   : > { %v1486_v1 = vmul.f32 %v1455_v8, %v1418_v4  ;;  %2014 = vmatpush.bf16.msra.mxu0 %v2348_v60 }
 0x9da   : > { %v1459_v49 = vmul.f32 0.5, %v1458_v46 }
 0x9db   : > { %v1491_v51 = vmul.f32 %v2883_v48, %v1486_v1  ;;  %v1350_v1 = vand.u32 15, %v2891_v63 }
 0x9dc   : > { %v1460_v13 = vsub.f32 1.5, %v1459_v49  ;;  %v1345_v49 = vadd.s32 24, %v2891_v63 }
 0x9dd   : > { %v2889_v62 = vadd.f32 %v2885_v50, %v1491_v51  ;;  %vm2956_vm3 = vcmp.ne.s32.totalorder %v1350_v1, 0 }
 0x9de   : > { %v1461_v52 = vmul.f32 %v2442_v26, %v1460_v13  ;;  %v1371_v12 = vand.u32 15, %v1345_v49 }
 0x9df   : > { %v1521_v54 = vrot.slane %v2889_v62, 1  ;;  %v1500_v18 = vrot.slane %v2889_v62, 7 }
 0x9e0   : > { %v1465_v53 = vsel %vm1464_vm7, %v2442_v26, %v1461_v52  ;;  %vm2969_vm4 = vcmp.ne.s32.totalorder %v1371_v12, 15 }
 0x9e1   : > { %v1487_v61 = vmul.f32 %v1465_v53, %v1419_v17 }
 0x9e3   : > { %v1492_v2 = vmul.f32 %v2883_v48, %v1487_v61 }
 0x9e5   : > { %v2895_v29 = vadd.f32 %v2885_v50, %v1492_v2 }
 0x9e7   : > { %v1550_v4 = vpack.c.bf16 %v2895_v29, %v2889_v62  ;;  %v1522_v5 = vrot.slane %v2895_v29, 1  ;;  %v1501_v6 = vrot.slane %v2895_v29, 7  ;;  %v1983_v29 = vpack.c.bf16 %v2851_v23, %v2843_v3 }
 0x9e9   : > { %2273 = vmatmul.msk.bf16.vlgmr.msra.gmra.mxu2 %vm370_vm0, %v1550_v4  ;;  %v1528_v7 = vsel %vm1525_vm8, %v1521_v54, %v1522_v5  ;;  %v2916_v9 = vsel %vm1504_vm9, %v1500_v18, %v1501_v6 }
 0xa35   : > { %v1434_v15 = vpop.xlane.xlu2 %1433 }
 0xa36   : > { %v1440_v16 = vmul.f32 %v1434_v15, %v2574_v14 }
 0xa38   : > { %v1444_v17 = vadd.f32 1e-05, %v1440_v16 }
 0xa3a   : > { %2443 = vrsqrt.f32 %v1444_v17  ;;  %vm1472_vm11 = vweird.f32 %v1444_v17 }
 0xa3d   : > { %v1437_v25 = vpop.xlane.xlu0 %1436 }
 0xa3e   : > { %v1441_v27 = vmul.f32 %v1437_v25, %v2574_v14  ;;  %v3005_v25 = vld [vmem:[%s3131_s2] sm:$0xff] }
 0xa40   : > { %v2444_v11 = vpop.eup %2443  ;;  %v1445_v28 = vadd.f32 1e-05, %v1441_v27 }
 0xa41   : > { %v1467_v40 = vmul.f32 %v2444_v11, %v1444_v17  ;;  %vm1473_vm10 = vweird.f32 %v2444_v11 }
 0xa42   : > { %2445 = vrsqrt.f32 %v1445_v28  ;;  %vm1474_vm12 = vmor %vm1472_vm11, %vm1473_vm10  ;;  %vm1482_vm14 = vweird.f32 %v1445_v28 }
 0xa43   : > { %v1468_v19 = vmul.f32 %v2444_v11, %v1467_v40 }
 0xa45   : > { %v1469_v31 = vmul.f32 0.5, %v1468_v19 }
 0xa47   : > { %v1470_v0 = vsub.f32 1.5, %v1469_v31 }
 0xa48   : > { %v2446_v32 = vpop.eup %2445 }
 0xa49   : > { %v1471_v55 = vmul.f32 %v2444_v11, %v1470_v0  ;;  %v1477_v33 = vmul.f32 %v2446_v32, %v1445_v28  ;;  %vm1483_vm13 = vweird.f32 %v2446_v32  ;;  %v1677_v28 = vperm.slane %v3005_v25, 0 }
 0xa4a   : > { %vm1484_vm1 = vmor %vm1482_vm14, %vm1483_vm13 }
 0xa4b   : > { %v1475_v35 = vsel %vm1474_vm12, %v2444_v11, %v1471_v55  ;;  %v1478_v36 = vmul.f32 %v2446_v32, %v1477_v33 }
 0xa4c   : > { %v1488_v14 = vmul.f32 %v1475_v35, %v2860_v58 }
 0xa4d   : > { %v1479_v37 = vmul.f32 0.5, %v1478_v36 }
 0xa4e   : > { %v1493_v30 = vmul.f32 %v2883_v48, %v1488_v14 }
 0xa4f   : > { %v1480_v39 = vsub.f32 1.5, %v1479_v37 }
 0xa50   : > { %v1498_v57 = vadd.f32 %v2885_v50, %v1493_v30 }
 0xa51   : > { %v1481_v43 = vmul.f32 %v2446_v32, %v1480_v39 }
 0xa52   : > { %v1523_v44 = vrot.slane %v1498_v57, 1  ;;  %v1502_v59 = vrot.slane %v1498_v57, 7 }
 0xa53   : > { %v1485_v58 = vsel %vm1484_vm1, %v2446_v32, %v1481_v43 }
 0xa54   : > { %v1489_v26 = vmul.f32 %v1485_v58, %v2871_v20  ;;  %v1527_v45 = vsel %vm1525_vm8, %v1522_v5, %v1523_v44  ;;  %v1344_v5 = vadd.s32 16, %v2891_v63  ;;  %v1506_v62 = vsel %vm1504_vm9, %v1501_v6, %v1502_v59 }
 0xa55   : > { %v1539_v8 = vsel %vm2939_vm2, %v1527_v45, 0.0 }
 0xa56   : > { %v1544_v46 = vpack.c.bf16 %v1539_v8, %v1528_v7  ;;  %v1494_v47 = vmul.f32 %v2883_v48, %v1489_v26  ;;  %v1364_v10 = vand.u32 15, %v1344_v5 }
 0xa58   : > { %2297 = vmatmul.msk.bf16.vlgmr.msrb.gmra.mxu0 %vm370_vm0, %v1544_v46  ;;  %v1499_v20 = vadd.f32 %v2885_v50, %v1494_v47  ;;  %vm2983_vm5 = vcmp.ne.s32.totalorder %v1364_v10, 0 }
 0xa59   : > { %v1519_v16 = vsel %vm2983_vm5, %v1506_v62, 0.0 }
 0xa5a   : > { %v1503_v13 = vrot.slane %v1499_v20, 7  ;;  %v1551_v51 = vpack.c.bf16 %v1499_v20, %v1498_v57  ;;  %v1524_v53 = vrot.slane %v1499_v20, 1 }
 0xa5c   : > { %2274 = vmatmul.msk.bf16.gmra.mxu2 %vm370_vm0, %v1551_v51  ;;  %v1508_v48 = vsel %vm1504_vm9, %v1503_v13, %v1500_v18  ;;  %v1529_v4 = vsel %vm1525_vm8, %v1524_v53, %v1521_v54  ;;  %v1526_v18 = vsel %vm1525_vm8, %v1523_v44, %v1524_v53  ;;  %v1505_v54 = vsel %vm1504_vm9, %v1502_v59, %v1503_v13 }
 0xa5d   : > { %v1517_v50 = vsel %vm2956_vm3, %v1508_v48, 0.0  ;;  %v1541_v7 = vsel %vm2969_vm4, %v1529_v4, 0.0  ;;  %v1543_v17 = vpack.c.bf16 %v1505_v54, %v1519_v16 }
 0xa5e   : > { %v1542_v61 = vpack.c.bf16 %v2916_v9, %v1517_v50  ;;  %v1545_v9 = vpack.c.bf16 %v1541_v7, %v1526_v18 }
 0xa60   : > { %2283 = vmatmul.msk.bf16.vlgmr.msrb.gmra.mxu3 %vm370_vm0, %v1542_v61 }
 0xa68   : > { %2298 = vmatmul.msk.bf16.gmra.mxu0 %vm370_vm0, %v1545_v9 }
 0xa6c   : > { %v1584_v6 = vpop.f32.mrf.mxu2 }
 0xa70   : > { %2284 = vmatmul.msk.bf16.gmra.mxu3 %vm370_vm0, %v1543_v17 }
 0xa74   : > { %v1586_v22 = vpop.f32.mrf.mxu2 }
 0xa78   : > { %2329 = vmatmul.msk.bf16.vlgmr.msra.gmra.mxu0 %vm370_vm0, %v1982_v21 }
 0xa88   : > { %2330 = vmatmul.msk.bf16.gmra.mxu0 %vm370_vm0, %v1983_v29 }
 0xad5   : > { %v1663_v24 = vpop.f32.mrf.mxu0 }
 0xadd   : > { %v1665_v19 = vpop.f32.mrf.mxu0 }
 0xadf   : > { %v1589_v35 = vpop.f32.mrf.mxu2 }
 0xae3   : > { %v1621_v27 = vpop.f32.mrf.mxu3 }
 0xae4   : > { %v1622_v11 = vadd.f32 %v1621_v27, %v1584_v6 }
 0xae5   : > { %v1668_v37 = vpop.f32.mrf.mxu0 }
 0xae6   : > { %v1673_v40 = vadd.f32 %v1663_v24, %v1622_v11 }
 0xae7   : > { %v1591_v46 = vpop.f32.mrf.mxu2 }
 0xae8   : > { %v3008_v42 = vadd.f32 %v1677_v28, %v1673_v40  ;;  %v2346_v40 = vld [vmem:[%s3137_s8 + $0x8] sm:$0xff] }
 0xae9   : > { %1896 = vmatpush.bf16.msra.mxu1 %v2346_v40 }
 0xaea   : > { %v3011_v3 = vmul.f32 0.70710677, %v3008_v42 }
 0xaeb   : > { %v1623_v23 = vpop.f32.mrf.mxu3 }
 0xaec   : > { %v1690_v31 = vand.u32 2147483647, %v3011_v3  ;;  %v1624_v0 = vadd.f32 %v1623_v23, %v1586_v22 }
 0xaed   : > { %v1670_v13 = vpop.f32.mrf.mxu0 }
 0xaee   : > { %v1694_v32 = vmul.f32 0.3275911, %v1690_v31  ;;  %v1674_v55 = vadd.f32 %v1665_v19, %v1624_v0  ;;  %v1798_v5 = vmul.f32 %v1690_v31, %v1690_v31 }
 0xaf0   : > { %v1698_v33 = vadd.f32 1.0, %v1694_v32  ;;  %v3014_v34 = vadd.f32 %v1677_v28, %v1674_v55  ;;  %v1802_v16 = vsub.f32 0.0, %v1798_v5 }
 0xaf2   : > { %2447 = vrcp.f32 %v1698_v33  ;;  %v3017_v36 = vmul.f32 0.70710677, %v3014_v34  ;;  %v1713_v8 = vand.u32 2147483648, %v1698_v33  ;;  %v1711_v20 = vand.u32 2147483647, %v1698_v33 }
 0xaf3   : > { %v1626_v14 = vpop.f32.mrf.mxu3  ;;  %vm1707_vm6 = vweird.f32 %v1698_v33  ;;  %v1806_v19 = vmul.f32 1.442695, %v1802_v16 }
 0xaf4   : > { %v1627_v30 = vadd.f32 %v1626_v14, %v1589_v35  ;;  %v1691_v38 = vand.u32 2147483647, %v3017_v36  ;;  %v1714_v53 = vor.u32 1.1754944e-38, %v1713_v8  ;;  %vm1712_vm10 = vcmp.eq.f32.partialorder %v1711_v20, 8.507059e+37 }
 0xaf6   : > { %v1675_v39 = vadd.f32 %v1668_v37, %v1627_v30  ;;  %v1695_v57 = vmul.f32 0.3275911, %v1691_v38  ;;  %v1799_v32 = vmul.f32 %v1691_v38, %v1691_v38 }
 0xaf8   : > { %v2448_v41 = vpop.eup %2447  ;;  %v3020_v43 = vadd.f32 %v1677_v28, %v1675_v39  ;;  %v1699_v58 = vadd.f32 1.0, %v1695_v57 }
 0xaf9   : > { %v1703_v44 = vmul.f32 %v2448_v41, %v1698_v33  ;;  %vm1708_vm0 = vweird.f32 %v2448_v41 }
 0xafa   : > { %v3023_v26 = vmul.f32 0.70710677, %v3020_v43  ;;  %2449 = vrcp.f32 %v1699_v58  ;;  %vm1709_vm7 = vmor %vm1707_vm6, %vm1708_vm0  ;;  %v1728_v17 = vand.u32 2147483648, %v1699_v58  ;;  %v1726_v29 = vand.u32 2147483647, %v1699_v58 }
 0xafb   : > { %v1704_v45 = vsub.f32 1.0, %v1703_v44  ;;  %v1628_v60 = vpop.f32.mrf.mxu3  ;;  %vm1722_vm12 = vweird.f32 %v1699_v58 }
 0xafc   : > { %v3026_v47 = vand.u32 2147483647, %v3023_v26  ;;  %v1629_v49 = vadd.f32 %v1628_v60, %v1591_v46  ;;  %v1729_v23 = vor.u32 1.1754944e-38, %v1728_v17  ;;  %vm1727_vm14 = vcmp.eq.f32.partialorder %v1726_v29, 8.507059e+37  ;;  %v2345_v46 = vld [vmem:[%s3137_s8] sm:$0xff] }
 0xafd   : > { %v1705_v1 = vmul.f32 %v2448_v41, %v1704_v45  ;;  %1927 = vmatpush.bf16.msrb.mxu2 %v2345_v46 }
 0xafe   : > { %v1696_v51 = vmul.f32 0.3275911, %v3026_v47  ;;  %v1676_v12 = vadd.f32 %v1670_v13, %v1629_v49 }
 0xaff   : > { %v1706_v48 = vadd.f32 %v2448_v41, %v1705_v1  ;;  %v2347_v1 = vld [vmem:[%s3137_s8 + $0x10] sm:$0xff] }
 0xb00   : > { %v1700_v50 = vadd.f32 1.0, %v1696_v51  ;;  %v2450_v61 = vpop.eup %2449  ;;  %v3029_v18 = vadd.f32 %v1677_v28, %v1676_v12  ;;  %1961 = vmatpush.bf16.msra.mxu3 %v2347_v1 }
 0xb01   : > { %v1710_v4 = vsel %vm1709_vm7, %v2448_v41, %v1706_v48  ;;  %v1718_v9 = vmul.f32 %v2450_v61, %v1699_v58  ;;  %vm1723_vm11 = vweird.f32 %v2450_v61  ;;  %v1803_v58 = vsub.f32 0.0, %v1799_v32 }
 0xb02   : > { %v1715_v7 = vsel %vm1712_vm10, %v1714_v53, %v1710_v4  ;;  %2451 = vrcp.f32 %v1700_v50  ;;  %v3032_v62 = vmul.f32 0.70710677, %v3029_v18  ;;  %vm1724_vm13 = vmor %vm1722_vm12, %vm1723_vm11  ;;  %v1743_v30 = vand.u32 2147483648, %v1700_v50 }
 0xb03   : > { %v1762_v10 = vmul.f32 1.0614054, %v1715_v7  ;;  %v1719_v59 = vsub.f32 1.0, %v1718_v9  ;;  %v1741_v41 = vand.u32 2147483647, %v1700_v50  ;;  %vm1737_vm0 = vweird.f32 %v1700_v50 }
 0xb04   : > { %v3035_v6 = vand.u32 2147483647, %v3032_v62  ;;  %v1744_v38 = vor.u32 1.1754944e-38, %v1743_v30  ;;  %v1808_v48 = vmul.f32 1.442695, %v1803_v58  ;;  %v1800_v53 = vmul.f32 %v3026_v47, %v3026_v47 }
 0xb05   : > { %v1766_v54 = vadd.f32 -1.4531521, %v1762_v10  ;;  %v1720_v21 = vmul.f32 %v2450_v61, %v1719_v59  ;;  %vm1742_vm7 = vcmp.eq.f32.partialorder %v1741_v41, 8.507059e+37 }
 0xb06   : > { %v1697_v28 = vmul.f32 0.3275911, %v3035_v6  ;;  %v1804_v17 = vsub.f32 0.0, %v1800_v53  ;;  %v1801_v30 = vmul.f32 %v3035_v6, %v3035_v6  ;;  %v1682_v6 = vmul.f32 0.5, %v3008_v42 }
 0xb07   : > { %v1770_v24 = vmul.f32 %v1766_v54, %v1715_v7  ;;  %v1721_v11 = vadd.f32 %v2450_v61, %v1720_v21  ;;  %v1684_v42 = vmul.f32 0.5, %v3020_v43 }
 0xb08   : > { %v2452_v27 = vpop.eup %2451  ;;  %v1701_v55 = vadd.f32 1.0, %v1697_v28 }
 0xb09   : > { %v1774_v22 = vadd.f32 1.4214138, %v1770_v24  ;;  %v1733_v31 = vmul.f32 %v2452_v27, %v1700_v50  ;;  %v1725_v0 = vsel %vm1724_vm13, %v2450_v61, %v1721_v11  ;;  %vm1738_vm1 = vweird.f32 %v2452_v27 }
 0xb0a   : > { %v1730_v35 = vsel %vm1727_vm14, %v1729_v23, %v1725_v0  ;;  %2453 = vrcp.f32 %v1701_v55  ;;  %vm1739_vm6 = vmor %vm1737_vm0, %vm1738_vm1  ;;  %v1758_v21 = vand.u32 2147483648, %v1701_v55  ;;  %vm1752_vm11 = vweird.f32 %v1701_v55 }
 0xb0b   : > { %v1778_v33 = vmul.f32 %v1774_v22, %v1715_v7  ;;  %v1734_v14 = vsub.f32 1.0, %v1733_v31  ;;  %v1763_v37 = vmul.f32 1.0614054, %v1730_v35  ;;  %2455 = vpow2.f32 %v1806_v19 }
 0xb0c   : > { %2457 = vpow2.f32 %v1808_v48  ;;  %v1810_v22 = vmul.f32 1.442695, %v1804_v17  ;;  %v1759_v19 = vor.u32 1.1754944e-38, %v1758_v21  ;;  %vm1822_vm14 = vcmp.lt.f32.partialorder %v3011_v3, 0.0 }
 0xb0d   : > { %v1782_v39 = vadd.f32 -0.28449672, %v1778_v33  ;;  %v1735_v57 = vmul.f32 %v2452_v27, %v1734_v14  ;;  %v1767_v44 = vadd.f32 -1.4531521, %v1763_v37  ;;  %vm1823_vm1 = vcmp.lt.f32.partialorder %v3017_v36, 0.0 }
 0xb0e   : > { %2459 = vpow2.f32 %v1810_v22  ;;  %vm1824_vm0 = vcmp.lt.f32.partialorder %v3023_v26, 0.0  ;;  %v1685_v22 = vmul.f32 0.5, %v3029_v18 }
 0xb0f   : > { %v1786_v45 = vmul.f32 %v1782_v39, %v1715_v7  ;;  %v1736_v60 = vadd.f32 %v2452_v27, %v1735_v57  ;;  %v1771_v8 = vmul.f32 %v1767_v44, %v1730_v35 }
 0xb10   : > { %v2454_v13 = vpop.eup %2453 }
 0xb11   : > { %v1790_v20 = vadd.f32 0.2548296, %v1786_v45  ;;  %v1740_v49 = vsel %vm1739_vm6, %v2452_v27, %v1736_v60  ;;  %v1775_v51 = vadd.f32 1.4214138, %v1771_v8  ;;  %v1748_v4 = vmul.f32 %v2454_v13, %v1701_v55  ;;  %v2456_v5 = vpop.eup %2455 }
 0xb12   : > { %v1745_v12 = vsel %vm1742_vm7, %v1744_v38, %v1740_v49  ;;  %vm1753_vm10 = vweird.f32 %v2454_v13  ;;  %v1756_v27 = vand.u32 2147483647, %v1701_v55  ;;  %v2458_v0 = vpop.eup %2457  ;;  %v1805_v60 = vsub.f32 0.0, %v1801_v30 }
 0xb13   : > { %v1794_v50 = vmul.f32 %v1790_v20, %v1715_v7  ;;  %v1764_v61 = vmul.f32 1.0614054, %v1745_v12  ;;  %v1779_v9 = vmul.f32 %v1775_v51, %v1730_v35  ;;  %v1749_v54 = vsub.f32 1.0, %v1748_v4  ;;  %vm1754_vm12 = vmor %vm1752_vm11, %vm1753_vm10 }
 0xb14   : > { %vm1757_vm13 = vcmp.eq.f32.partialorder %v1756_v27, 8.507059e+37  ;;  %v2460_v20 = vpop.eup %2459  ;;  %v1683_v49 = vmul.f32 0.5, %v3014_v34  ;;  %v1812_v48 = vmul.f32 1.442695, %v1805_v60  ;;  %vm1825_vm6 = vcmp.lt.f32.partialorder %v3032_v62, 0.0 }
 0xb15   : > { %v1814_v10 = vmul.f32 %v2456_v5, %v1794_v50  ;;  %v1768_v59 = vadd.f32 -1.4531521, %v1764_v61  ;;  %v1783_v16 = vadd.f32 -0.28449672, %v1779_v9  ;;  %v1750_v24 = vmul.f32 %v2454_v13, %v1749_v54 }
 0xb16   : > { %2461 = vpow2.f32 %v1812_v48 }
 0xb17   : > { %v1772_v29 = vmul.f32 %v1768_v59, %v1745_v12  ;;  %v1818_v11 = vsub.f32 1.0, %v1814_v10  ;;  %v1787_v47 = vmul.f32 %v1783_v16, %v1730_v35  ;;  %v1751_v40 = vadd.f32 %v2454_v13, %v1750_v24 }
 0xb19   : > { %v1776_v28 = vadd.f32 1.4214138, %v1772_v29  ;;  %v1791_v7 = vadd.f32 0.2548296, %v1787_v47  ;;  %v1755_v31 = vsel %vm1754_vm12, %v2454_v13, %v1751_v40  ;;  %v1826_v32 = vsub.f32 0.0, %v1818_v11 }
 0xb1a   : > { %v1760_v14 = vsel %vm1757_vm13, %v1759_v19, %v1755_v31 }
 0xb1b   : > { %v1780_v23 = vmul.f32 %v1776_v28, %v1745_v12  ;;  %v1795_v33 = vmul.f32 %v1791_v7, %v1730_v35  ;;  %v1765_v39 = vmul.f32 1.0614054, %v1760_v14  ;;  %v1830_v44 = vsel %vm1822_vm14, %v1826_v32, %v1818_v11 }
 0xb1c   : > { %v1834_v46 = vadd.f32 1.0, %v1830_v44  ;;  %v2462_v17 = vpop.eup %2461 }
 0xb1d   : > { %v1784_v37 = vadd.f32 -0.28449672, %v1780_v23  ;;  %v1815_v57 = vmul.f32 %v2458_v0, %v1795_v33  ;;  %v1769_v41 = vadd.f32 -1.4531521, %v1765_v39 }
 0xb1e   : > { %v1838_v50 = vmul.f32 %v1834_v46, %v1682_v6  ;;  %v1988_v46 = vperm.slane %v3005_v25, 2 }
 0xb1f   : > { %v1788_v55 = vmul.f32 %v1784_v37, %v1745_v12  ;;  %v1819_v58 = vsub.f32 1.0, %v1815_v57  ;;  %v1773_v8 = vmul.f32 %v1769_v41, %v1760_v14 }
 0xb20   : > { %v1854_v27 = vrot.slane %v1838_v50, 1  ;;  %v1842_v0 = vrot.slane %v1838_v50, 7 }
 0xb21   : > { %v1792_v45 = vadd.f32 0.2548296, %v1788_v55  ;;  %v1827_v38 = vsub.f32 0.0, %v1819_v58  ;;  %v1777_v1 = vadd.f32 1.4214138, %v1773_v8  ;;  %v2016_v8 = vpop.f32.mrf.mxu0 }
 0xb23   : > { %v1796_v35 = vmul.f32 %v1792_v45, %v1745_v12  ;;  %v1831_v13 = vsel %vm1823_vm1, %v1827_v38, %v1819_v58  ;;  %v1781_v53 = vmul.f32 %v1777_v1, %v1760_v14  ;;  %v1977_v1 = vperm.slane %v3005_v25, 1 }
 0xb24   : > { %v1835_v3 = vadd.f32 1.0, %v1831_v13 }
 0xb25   : > { %v1816_v51 = vmul.f32 %v2460_v20, %v1796_v35  ;;  %v1785_v5 = vadd.f32 -0.28449672, %v1781_v53 }
 0xb26   : > { %v1839_v61 = vmul.f32 %v1835_v3, %v1683_v49  ;;  %v2017_v49 = vadd.f32 %v2016_v8, %v1988_v46 }
 0xb27   : > { %v1820_v4 = vsub.f32 1.0, %v1816_v51  ;;  %v1789_v36 = vmul.f32 %v1785_v5, %v1760_v14 }
 0xb28   : > { %v1872_v10 = vpack.c.bf16 %v1839_v61, %v1838_v50  ;;  %v1855_v21 = vrot.slane %v1839_v61, 1  ;;  %v1843_v31 = vrot.slane %v1839_v61, 7 }
 0xb29   : > { %v1828_v9 = vsub.f32 0.0, %v1820_v4  ;;  %v1793_v59 = vadd.f32 0.2548296, %v1789_v36  ;;  %v2018_v63 = vpop.f32.mrf.mxu0 }
 0xb2a   : > { %2305 = vmatmul.msk.bf16.vlgmr.msra.gmra.mxu1 %vm635_vm15, %v1872_v10  ;;  %v1860_v26 = vsel %vm1525_vm8, %v1854_v27, %v1855_v21  ;;  %v1848_v62 = vsel %vm1504_vm9, %v1842_v0, %v1843_v31  ;;  %v2019_v61 = vadd.f32 %v2018_v63, %v1988_v46 }
 0xb2b   : > { %v1832_v12 = vsel %vm1824_vm0, %v1828_v9, %v1820_v4  ;;  %v1797_v16 = vmul.f32 %v1793_v59, %v1760_v14 }
 0xb2c   : > { %v1836_v34 = vadd.f32 1.0, %v1832_v12 }
 0xb2d   : > { %v1817_v24 = vmul.f32 %v2462_v17, %v1797_v16 }
 0xb2e   : > { %v1840_v54 = vmul.f32 %v1836_v34, %v1684_v42 }
 0xb2f   : > { %v1821_v47 = vsub.f32 1.0, %v1817_v24 }
 0xb30   : > { %v1856_v29 = vrot.slane %v1840_v54, 1  ;;  %v1844_v41 = vrot.slane %v1840_v54, 7 }
 0xb31   : > { %v1829_v40 = vsub.f32 0.0, %v1821_v47  ;;  %v2021_v9 = vpop.f32.mrf.mxu0 }
 0xb32   : > { %v1859_v11 = vsel %vm1525_vm8, %v1855_v21, %v1856_v29  ;;  %v1847_v52 = vsel %vm1504_vm9, %v1843_v31, %v1844_v41 }
 0xb33   : > { %v1863_v28 = vsel %vm2939_vm2, %v1859_v11, 0.0  ;;  %v1833_v7 = vsel %vm1825_vm6, %v1829_v40, %v1821_v47  ;;  %v1852_v58 = vsel %vm2983_vm5, %v1847_v52, 0.0 }
 0xb34   : > { %v1868_v43 = vpack.c.bf16 %v1863_v28, %v1860_v26  ;;  %v1837_v19 = vadd.f32 1.0, %v1833_v7 }
 0xb36   : > { %2319 = vmatmul.msk.bf16.vlgmr.msra.gmra.mxu3 %vm635_vm15, %v1868_v43  ;;  %v1841_v23 = vmul.f32 %v1837_v19, %v1685_v22  ;;  %v2489_v22 = vmov 16.0  }
 0xb37   : > { %2463 = vrcp.f32 %v2489_v22 }
 0xb38   : > { %v1845_v32 = vrot.slane %v1841_v23, 7  ;;  %v1873_v33 = vpack.c.bf16 %v1841_v23, %v1840_v54  ;;  %v1857_v14 = vrot.slane %v1841_v23, 1  ;;  %v2022_v54 = vadd.f32 %v2021_v9, %v1988_v46 }
 0xb39   : > { %v2023_v11 = vpop.f32.mrf.mxu0 }
 0xb3a   : > { %2306 = vmatmul.msk.bf16.gmra.mxu1 %vm635_vm15, %v1873_v33  ;;  %v1849_v56 = vsel %vm1504_vm9, %v1845_v32, %v1842_v0  ;;  %v1861_v18 = vsel %vm1525_vm8, %v1857_v14, %v1854_v27  ;;  %v1858_v39 = vsel %vm1525_vm8, %v1856_v29, %v1857_v14  ;;  %v1846_v44 = vsel %vm1504_vm9, %v1844_v41, %v1845_v32 }
 0xb3b   : > { %v1850_v37 = vsel %vm2956_vm3, %v1849_v56, 0.0  ;;  %v1865_v57 = vsel %vm2969_vm4, %v1861_v18, 0.0  ;;  %v1867_v45 = vpack.c.bf16 %v1846_v44, %v1852_v58  ;;  %v2024_v28 = vadd.f32 %v2023_v11, %v1988_v46 }
 0xb3c   : > { %v1866_v30 = vpack.c.bf16 %v1848_v62, %v1850_v37  ;;  %v1869_v55 = vpack.c.bf16 %v1865_v57, %v1858_v39 }
 0xb3d   : > { %v2464_v19 = vpop.eup %2463 }
 0xb3e   : > { %2311 = vmatmul.msk.bf16.vlgmr.msrb.gmra.mxu2 %vm635_vm15, %v1866_v30  ;;  %v2043_v23 = vmul.f32 16.0, %v2464_v19  ;;  %vm2047_vm8 = vweird.f32 %v2464_v19 }
 0xb40   : > { %v2044_v31 = vsub.f32 1.0, %v2043_v23 }
 0xb42   : > { %v2045_v0 = vmul.f32 %v2464_v19, %v2044_v31 }
 0xb44   : > { %v2046_v32 = vadd.f32 %v2464_v19, %v2045_v0 }
 0xb46   : > { %2320 = vmatmul.msk.bf16.gmra.mxu3 %vm635_vm15, %v1869_v55  ;;  %v2048_v33 = vsel %vm2047_vm8, %v2464_v19, %v2046_v32 }
 0xb4e   : > { %2312 = vmatmul.msk.bf16.gmra.mxu2 %vm635_vm15, %v1867_v45 }
 0xba7   : > { %v1898_v60 = vpop.f32.mrf.mxu1 }
 0xbaf   : > { %v1900_v6 = vpop.f32.mrf.mxu1 }
 0xbb7   : > { %v1903_v5 = vpop.f32.mrf.mxu1 }
 0xbb9   : > { %v1963_v2 = vpop.f32.mrf.mxu3 }
 0xbbf   : > { %v1905_v21 = vpop.f32.mrf.mxu1 }
 0xbc1   : > { %v1929_v38 = vpop.f32.mrf.mxu2  ;;  %v1965_v3 = vpop.f32.mrf.mxu3 }
 0xbc2   : > { %v1930_v35 = vadd.f32 %v1929_v38, %v1898_v60 }
 0xbc4   : > { %v1973_v20 = vadd.f32 %v1963_v2, %v1930_v35 }
 0xbc6   : > { %v1978_v13 = vadd.f32 %v1977_v1, %v1973_v20 }
 0xbc8   : > { %v2026_v15 = vadd.f32 %v2017_v49, %v1978_v13 }
 0xbc9   : > { %v1931_v51 = vpop.f32.mrf.mxu2  ;;  %v1968_v36 = vpop.f32.mrf.mxu3 }
 0xbca   : > { %v1932_v48 = vadd.f32 %v1931_v51, %v1900_v6  ;;  %v2030_v53 = vsel %vm635_vm15, %v2026_v15, 0.0 }
 0xbcb   : > { %2031 = vadd.xlane.f32.xlu0 %v2030_v53 }
 0xbcc   : > { %v1974_v50 = vadd.f32 %v1965_v3, %v1932_v48 }
 0xbce   : > { %v1979_v4 = vadd.f32 %v1977_v1, %v1974_v50 }
 0xbd0   : > { %v2027_v10 = vadd.f32 %v2019_v61, %v1979_v4 }
 0xbd1   : > { %v1934_v12 = vpop.f32.mrf.mxu2  ;;  %v1970_v47 = vpop.f32.mrf.mxu3 }
 0xbd2   : > { %v1935_v42 = vadd.f32 %v1934_v12, %v1903_v5  ;;  %v2033_v34 = vsel %vm635_vm15, %v2027_v10, 0.0 }
 0xbd3   : > { %2034 = vadd.xlane.f32.xlu1 %v2033_v34  ;;  %v2130_v34 = vperm.slane %v3005_v25, 4 }
 0xbd4   : > { %v1975_v59 = vadd.f32 %v1968_v36, %v1935_v42  ;;  %v2125_v36 = vperm.slane %v3005_v25, 3 }
 0xbd6   : > { %v1980_v16 = vadd.f32 %v1977_v1, %v1975_v59 }
 0xbd8   : > { %v2028_v17 = vadd.f32 %v2022_v54, %v1980_v16 }
 0xbd9   : > { %v1936_v29 = vpop.f32.mrf.mxu2 }
 0xbda   : > { %v1937_v24 = vadd.f32 %v1936_v29, %v1905_v21  ;;  %v2036_v27 = vsel %vm635_vm15, %v2028_v17, 0.0 }
 0xbdb   : > { %2037 = vadd.xlane.f32.xlu2 %v2036_v27 }
 0xbdc   : > { %v1976_v26 = vadd.f32 %v1970_v47, %v1937_v24 }
 0xbde   : > { %v1981_v43 = vadd.f32 %v1977_v1, %v1976_v26 }
 0xbe0   : > { %v2029_v40 = vadd.f32 %v2024_v28, %v1981_v43 }
 0xbe2   : > { %v2039_v7 = vsel %vm635_vm15, %v2029_v40, 0.0 }
 0xbe3   : > { %2040 = vadd.xlane.f32.xlu0 %v2039_v7 }
 0xc3e   : > { %v2032_v14 = vpop.xlane.xlu0 %2031 }
 0xc3f   : > { %v2049_v56 = vmul.f32 %v2048_v33, %v2032_v14 }
 0xc41   : > { %v2053_v62 = vsub.f32 %v2026_v15, %v2049_v56 }
 0xc43   : > { %v2057_v37 = vmul.f32 %v2053_v62, %v2053_v62 }
 0xc45   : > { %v2061_v18 = vsel %vm635_vm15, %v2057_v37, 0.0 }
 0xc46   : > { %2062 = vadd.xlane.f32.xlu1 %v2061_v18  ;;  %v2035_v30 = vpop.xlane.xlu1 %2034 }
 0xc47   : > { %v2050_v39 = vmul.f32 %v2048_v33, %v2035_v30 }
 0xc49   : > { %v2054_v57 = vsub.f32 %v2027_v10, %v2050_v39 }
 0xc4b   : > { %v2058_v55 = vmul.f32 %v2054_v57, %v2054_v57 }
 0xc4d   : > { %v2064_v41 = vsel %vm635_vm15, %v2058_v55, 0.0 }
 0xc4e   : > { %2065 = vadd.xlane.f32.xlu2 %v2064_v41  ;;  %v2038_v52 = vpop.xlane.xlu2 %2037 }
 0xc4f   : > { %v2051_v44 = vmul.f32 %v2048_v33, %v2038_v52 }
 0xc51   : > { %v3097_v58 = vsub.f32 %v2028_v17, %v2051_v44 }
 0xc53   : > { %v2059_v45 = vmul.f32 %v3097_v58, %v3097_v58 }
 0xc55   : > { %v2067_v60 = vsel %vm635_vm15, %v2059_v45, 0.0 }
 0xc56   : > { %v2041_v8 = vpop.xlane.xlu0 %2040  ;;  %2068 = vadd.xlane.f32.xlu0 %v2067_v60 }
 0xc57   : > { %v2052_v2 = vmul.f32 %v2048_v33, %v2041_v8 }
 0xc59   : > { %v3102_v38 = vsub.f32 %v2029_v40, %v2052_v2 }
 0xc5b   : > { %v2060_v46 = vmul.f32 %v3102_v38, %v3102_v38 }
 0xc5d   : > { %v2070_v35 = vsel %vm635_vm15, %v2060_v46, 0.0 }
 0xc5e   : > { %2071 = vadd.xlane.f32.xlu1 %v2070_v35 }
 0xcb9   : > { %v2063_v1 = vpop.xlane.xlu1 %2062 }
 0xcba   : > { %v2073_v20 = vmul.f32 %v2063_v1, %v2048_v33 }
 0xcbc   : > { %v2077_v6 = vadd.f32 1e-05, %v2073_v20 }
 0xcbe   : > { %2465 = vrsqrt.f32 %v2077_v6  ;;  %vm2087_vm2 = vweird.f32 %v2077_v6 }
 0xcc1   : > { %v2066_v49 = vpop.xlane.xlu2 %2065 }
 0xcc2   : > { %v2074_v63 = vmul.f32 %v2066_v49, %v2048_v33 }
 0xcc4   : > { %v2466_v13 = vpop.eup %2465  ;;  %v2078_v3 = vadd.f32 1e-05, %v2074_v63 }
 0xcc5   : > { %v2082_v15 = vmul.f32 %v2466_v13, %v2077_v6  ;;  %vm2088_vm9 = vweird.f32 %v2466_v13 }
 0xcc6   : > { %2467 = vrsqrt.f32 %v2078_v3  ;;  %vm2089_vm3 = vmor %vm2087_vm2, %vm2088_vm9  ;;  %vm2097_vm5 = vweird.f32 %v2078_v3 }
 0xcc7   : > { %v2083_v51 = vmul.f32 %v2466_v13, %v2082_v15 }
 0xcc9   : > { %v2084_v48 = vmul.f32 0.5, %v2083_v51  ;;  %v2069_v53 = vpop.xlane.xlu0 %2068 }
 0xcca   : > { %v2075_v50 = vmul.f32 %v2069_v53, %v2048_v33 }
 0xccb   : > { %v2085_v61 = vsub.f32 1.5, %v2084_v48 }
 0xccc   : > { %v2468_v4 = vpop.eup %2467  ;;  %v2079_v5 = vadd.f32 1e-05, %v2075_v50 }
 0xccd   : > { %v2086_v9 = vmul.f32 %v2466_v13, %v2085_v61  ;;  %v2092_v10 = vmul.f32 %v2468_v4, %v2078_v3  ;;  %vm2098_vm4 = vweird.f32 %v2468_v4 }
 0xcce   : > { %2469 = vrsqrt.f32 %v2079_v5  ;;  %vm2099_vm7 = vmor %vm2097_vm5, %vm2098_vm4  ;;  %vm2107_vm11 = vweird.f32 %v2079_v5 }
 0xccf   : > { %v2090_v12 = vsel %vm2089_vm3, %v2466_v13, %v2086_v9  ;;  %v2093_v42 = vmul.f32 %v2468_v4, %v2092_v10 }
 0xcd0   : > { %v2121_v59 = vmul.f32 %v2090_v12, %v2053_v62 }
 0xcd1   : > { %v2094_v54 = vmul.f32 0.5, %v2093_v42  ;;  %v2072_v16 = vpop.xlane.xlu1 %2071 }
 0xcd2   : > { %v2126_v17 = vmul.f32 %v2125_v36, %v2121_v59  ;;  %v2076_v21 = vmul.f32 %v2072_v16, %v2048_v33 }
 0xcd3   : > { %v2095_v29 = vsub.f32 1.5, %v2094_v54 }
 0xcd4   : > { %v2470_v24 = vpop.eup %2469  ;;  %v2131_v27 = vadd.f32 %v2130_v34, %v2126_v17  ;;  %v2080_v11 = vadd.f32 1e-05, %v2076_v21 }
 0xcd5   : > { %v2096_v47 = vmul.f32 %v2468_v4, %v2095_v29  ;;  %v2102_v25 = vmul.f32 %v2470_v24, %v2079_v5  ;;  %vm2108_vm10 = vweird.f32 %v2470_v24 }
 0xcd6   : > { %2135 = vst.msk [vmem:[%s3114_s23] sm:$0xff] %vm635_vm15, %v2131_v27  ;;  %2471 = vrsqrt.f32 %v2080_v11  ;;  %vm2109_vm12 = vmor %vm2107_vm11, %vm2108_vm10  ;;  %vm2117_vm14 = vweird.f32 %v2080_v11 }
 0xcd7   : > { %v2100_v26 = vsel %vm2099_vm7, %v2468_v4, %v2096_v47  ;;  %v2103_v28 = vmul.f32 %v2470_v24, %v2102_v25 }
 0xcd8   : > { %v2122_v43 = vmul.f32 %v2100_v26, %v2054_v57 }
 0xcd9   : > { %v2104_v40 = vmul.f32 0.5, %v2103_v28 }
 0xcda   : > { %v2127_v7 = vmul.f32 %v2125_v36, %v2122_v43 }
 0xcdb   : > { %v2105_v22 = vsub.f32 1.5, %v2104_v40 }
 0xcdc   : > { %v2472_v19 = vpop.eup %2471  ;;  %v2132_v23 = vadd.f32 %v2130_v34, %v2127_v7 }
 0xcdd   : > { %v2106_v31 = vmul.f32 %v2470_v24, %v2105_v22  ;;  %v2112_v0 = vmul.f32 %v2472_v19, %v2080_v11  ;;  %vm2118_vm13 = vweird.f32 %v2472_v19 }
 0xcde   : > { %2136 = vst.msk [vmem:[%s3114_s23 + $0x8] sm:$0xff] %vm635_vm15, %v2132_v23  ;;  %vm2119_vm1 = vmor %vm2117_vm14, %vm2118_vm13 }
 0xcdf   : > { %v2110_v32 = vsel %vm2109_vm12, %v2470_v24, %v2106_v31  ;;  %v2113_v33 = vmul.f32 %v2472_v19, %v2112_v0 }
 0xce0   : > { %v2123_v14 = vmul.f32 %v2110_v32, %v3097_v58 }
 0xce1   : > { %v2114_v56 = vmul.f32 0.5, %v2113_v33 }
 0xce2   : > { %v2128_v62 = vmul.f32 %v2125_v36, %v2123_v14 }
 0xce3   : > { %v2115_v37 = vsub.f32 1.5, %v2114_v56 }
 0xce4   : > { %v2133_v18 = vadd.f32 %v2130_v34, %v2128_v62 }
 0xce5   : > { %v2116_v30 = vmul.f32 %v2472_v19, %v2115_v37 }
 0xce6   : > { %2137 = vst.msk [vmem:[%s3114_s23 + $0x10] sm:$0xff] %vm635_vm15, %v2133_v18 }
 0xce7   : > { %v2120_v39 = vsel %vm2119_vm1, %v2472_v19, %v2116_v30 }
 0xce8   : > { %v2124_v57 = vmul.f32 %v2120_v39, %v3102_v38 }
 0xcea   : > { %v2129_v55 = vmul.f32 %v2125_v36, %v2124_v57 }
 0xcec   : > { %v2134_v41 = vadd.f32 %v2130_v34, %v2129_v55 }
 0xcee   : > { %2138 = vst.msk [vmem:[%s3114_s23 + $0x18] sm:$0xff] %vm635_vm15, %v2134_v41 }
 0xcef PF: > { %s20_s13 = sadd.s32 1, %s2483_s13  }
 0xcf0   : > { %p17_p4 = scmp.ge.s32.totalorder %s20_s13, 4  }
 0xcf2   :  { %19 = sbr.rel (!%p17_p4) target bundleno = 1 (0x1), region = 97 }

// kernel: tpu_custom_call.1
= control target key start
LH: loop header
LB: loop body
LE: loop exit
PB: predicated region body
PF: predicated region fallthrough
CT: control target
= control target key end

     0   :  { %s2545_s13 = smov 0   ;;  %s3129_s0 = inlined_call_operand.vmem [shape: f32[64,32], index: 0, kind: input, shape index: {}]   ;;  %s3130_s1 = inlined_call_operand.vmem [shape: f32[8,32], index: 1, kind: input, shape index: {}]   ;;  %s3131_s2 = inlined_call_operand.vmem [shape: f32[8,16], index: 2, kind: input, shape index: {}]   ;;  %s3132_s3 = inlined_call_operand.vmem [shape: bf16[32,32], index: 3, kind: input, shape index: {}]   ;;  %s3133_s4 = inlined_call_operand.vmem [shape: bf16[32,32], index: 4, kind: input, shape index: {}]   ;;  %s3134_s5 = inlined_call_operand.vmem [shape: bf16[32,32], index: 5, kind: input, shape index: {}]   ;;  %s3135_s6 = inlined_call_operand.vmem [shape: bf16[4,8,32], index: 6, kind: input, shape index: {}]   ;;  %s3136_s7 = inlined_call_operand.vmem [shape: bf16[3,32,16], index: 7, kind: input, shape index: {}]   ;;  %s3137_s8 = inlined_call_operand.vmem [shape: bf16[3,16,16], index: 8, kind: input, shape index: {}]   ;;  %s3138_s9 = inlined_call_operand.vmem [shape: bf16[32,16], index: 9, kind: input, shape index: {}]   ;;  %s3139_s10 = inlined_call_operand.vmem [shape: f32[64,16], index: 10, kind: output, shape index: {}]  }
   0x1 LB: > { %s2195_s14 = sadd.s32 4294967295, %s2483_s13   ;;  %p2199_p0 = scmp.ge.s32.totalorder %s2483_s13, 1  ;;  %s2483_s13 = sphi %s2545_s13, %s20_s13  }
   0x2   : > { %p313_p1 = scmp.lt.s32.totalorder %s2483_s13, 3 }
   0x4   : > { %p314_p2 = pnand %p2199_p0, %p313_p1 }
   0x5   : > { %s2200_s15 = sshll.u32 (!%p314_p2), %s2195_s14, 2  ;;  %s2486_s17 = smov (!%p314_p2), 120  }
   0x6   : > { %317 = sbr.rel (%p314_p2) target bundleno = 3311 (0xcef), region = 60  ;;  %p352_p3 = scmp.lt.s32.totalorder (!%p314_p2), %s2200_s15, 7 }
   0x7   : > { %s2487_s18 = smov (!%p314_p2), 112   ;;  %s2488_s20 = smov (!%p314_p2), 104  }
   0xb   : > { %s3149_s15 = smov (!%p352_p3, %s2200_s15), 7  ;;  %vm370_vm0 = vcmask 261120   ;;  %v2485_v8 = vmov 32.0   ;;  %v2334_v35 = vld [vmem:[%s3132_s3 + $0x8] sm:$0xff]  ;;  %v2333_v41 = vld [vmem:[%s3132_s3] sm:$0xff]  ;;  %vm614_vm14 = vcmask 64512  }
   0xc   : > { %s2201_s16 = sshll.u32 %s3149_s15, 3  ;;  %2365 = vrcp.f32 %v2485_v8  ;;  %v2338_v36 = vld [vmem:[%s3134_s5 + $0x8] sm:$0xff]  ;;  %507 = vmatpush.bf16.msra.mxu0 %v2334_v35  ;;  %2350 = vmatpush.bf16.msra.mxu1 %v2334_v35  ;;  %v2337_v42 = vld [vmem:[%s3134_s5] sm:$0xff]  ;;  %vm635_vm15 = vcmask 130048  }
   0xd   : > { %s2561_s19 = scalar_lea.vmem %s3129_s0, %s2201_s16  ;;  %579 = vmatpush.bf16.msra.mxu2 %v2338_v36  ;;  %v2336_v47 = vld [vmem:[%s3133_s4 + $0x8] sm:$0xff]  ;;  %v2335_v50 = vld [vmem:[%s3133_s4] sm:$0xff]  ;;  %s3114_s23 = scalar_lea.vmem %s3139_s10, %s2201_s16 }
   0xe   : > { %v366_v0 = vld [vmem:[%s2561_s19 + $0x10] sm:$0xff]  ;;  %v2565_v1 = vld [vmem:[%s2561_s19] sm:$0xff]  ;;  %v367_v4 = vld [vmem:[%s2561_s19 + $0x18] sm:$0xff] }
   0xf   : > { %v377_v2 = vsel %vm370_vm0, %v366_v0, 0.0  ;;  %v371_v3 = vsel %vm370_vm0, %v2565_v1, 0.0  ;;  %v365_v5 = vld [vmem:[%s2561_s19 + $0x8] sm:$0xff]  ;;  %v380_v6 = vsel %vm370_vm0, %v367_v4, 0.0  ;;  %v2626_v8 = vld [vmem:[%s3130_s1] sm:$0xff] }
  0x10   : > { %378 = vadd.xlane.f32.xlu0 %v377_v2  ;;  %372 = vadd.xlane.f32.xlu1 %v371_v3  ;;  %v374_v7 = vsel %vm370_vm0, %v365_v5, 0.0 }
  0x11   : > { %508 = vmatpush.bf16.msra.mxu0 %v2333_v41  ;;  %2351 = vmatpush.bf16.msra.mxu1 %v2333_v41 }
  0x12   : > { %v2366_v9 = vpop.eup %2365  ;;  %580 = vmatpush.bf16.msra.mxu2 %v2337_v42 }
  0x13   : > { %v384_v10 = vmul.f32 32.0, %v2366_v9  ;;  %vm388_vm1 = vweird.f32 %v2366_v9 }
  0x15   : > { %v385_v11 = vsub.f32 1.0, %v384_v10  ;;  %543 = vmatpush.bf16.msrb.mxu1 %v2336_v47 }
  0x17   : > { %v386_v12 = vmul.f32 %v2366_v9, %v385_v11 }
  0x18   : > { %381 = vadd.xlane.f32.xlu0 %v380_v6  ;;  %375 = vadd.xlane.f32.xlu1 %v374_v7 }
  0x19   : > { %v387_v13 = vadd.f32 %v2366_v9, %v386_v12  ;;  %544 = vmatpush.bf16.msrb.mxu1 %v2335_v50 }
  0x1b   : > { %v2574_v14 = vsel %vm388_vm1, %v2366_v9, %v387_v13  ;;  %vm757_vm1 = vcmask 1043456  }
  0x83   : > { %v379_v15 = vpop.xlane.xlu0 %378  ;;  %v373_v16 = vpop.xlane.xlu1 %372 }
  0x84   : > { %v392_v17 = vmul.f32 %v2574_v14, %v379_v15  ;;  %v390_v18 = vmul.f32 %v2574_v14, %v373_v16  ;;  %v466_v15 = vperm.slane %v2626_v8, 0 }
  0x86   : > { %v2578_v19 = vsub.f32 %v366_v0, %v392_v17  ;;  %v2581_v20 = vsub.f32 %v2565_v1, %v390_v18 }
  0x88   : > { %v400_v21 = vmul.f32 %v2578_v19, %v2578_v19  ;;  %v398_v22 = vmul.f32 %v2581_v20, %v2581_v20 }
  0x8a   : > { %v408_v23 = vsel %vm370_vm0, %v400_v21, 0.0  ;;  %v402_v24 = vsel %vm370_vm0, %v398_v22, 0.0 }
  0x8b   : > { %409 = vadd.xlane.f32.xlu2 %v408_v23  ;;  %v382_v25 = vpop.xlane.xlu0 %381  ;;  %403 = vadd.xlane.f32.xlu0 %v402_v24  ;;  %v376_v26 = vpop.xlane.xlu1 %375 }
  0x8c   : > { %v393_v27 = vmul.f32 %v2574_v14, %v382_v25  ;;  %v391_v28 = vmul.f32 %v2574_v14, %v376_v26  ;;  %v471_v26 = vperm.slane %v2626_v8, 1 }
  0x8e   : > { %v2591_v29 = vsub.f32 %v367_v4, %v393_v27  ;;  %v2593_v30 = vsub.f32 %v365_v5, %v391_v28 }
  0x90   : > { %v401_v31 = vmul.f32 %v2591_v29, %v2591_v29  ;;  %v399_v32 = vmul.f32 %v2593_v30, %v2593_v30 }
  0x92   : > { %v411_v33 = vsel %vm370_vm0, %v401_v31, 0.0  ;;  %v405_v34 = vsel %vm370_vm0, %v399_v32, 0.0 }
  0x93   : > { %412 = vadd.xlane.f32.xlu2 %v411_v33  ;;  %406 = vadd.xlane.f32.xlu1 %v405_v34 }
  0xfe   : > { %v410_v37 = vpop.xlane.xlu2 %409  ;;  %v404_v38 = vpop.xlane.xlu0 %403 }
  0xff   : > { %v416_v39 = vmul.f32 %v410_v37, %v2574_v14  ;;  %v414_v40 = vmul.f32 %v404_v38, %v2574_v14 }
 0x101   : > { %v420_v43 = vadd.f32 1e-05, %v416_v39  ;;  %v418_v44 = vadd.f32 1e-05, %v414_v40 }
 0x103   : > { %2367 = vrsqrt.f32 %v420_v43  ;;  %vm428_vm3 = vweird.f32 %v418_v44  ;;  %vm448_vm5 = vweird.f32 %v420_v43 }
 0x104   : > { %2369 = vrsqrt.f32 %v418_v44 }
 0x106   : > { %v413_v45 = vpop.xlane.xlu2 %412  ;;  %v407_v46 = vpop.xlane.xlu1 %406 }
 0x107   : > { %v417_v48 = vmul.f32 %v413_v45, %v2574_v14  ;;  %v415_v49 = vmul.f32 %v407_v46, %v2574_v14 }
 0x109   : > { %v2368_v51 = vpop.eup %2367  ;;  %v421_v52 = vadd.f32 1e-05, %v417_v48  ;;  %v419_v53 = vadd.f32 1e-05, %v415_v49 }
 0x10a   : > { %v2370_v54 = vpop.eup %2369  ;;  %v443_v55 = vmul.f32 %v2368_v51, %v420_v43  ;;  %vm449_vm2 = vweird.f32 %v2368_v51 }
 0x10b   : > { %v423_v56 = vmul.f32 %v2370_v54, %v418_v44  ;;  %2371 = vrsqrt.f32 %v421_v52  ;;  %vm429_vm4 = vweird.f32 %v2370_v54  ;;  %vm450_vm6 = vmor %vm448_vm5, %vm449_vm2  ;;  %vm438_vm9 = vweird.f32 %v419_v53 }
 0x10c   : > { %v444_v57 = vmul.f32 %v2368_v51, %v443_v55  ;;  %2373 = vrsqrt.f32 %v419_v53  ;;  %vm430_vm7 = vmor %vm428_vm3, %vm429_vm4  ;;  %vm458_vm11 = vweird.f32 %v421_v52 }
 0x10d   : > { %v424_v58 = vmul.f32 %v2370_v54, %v423_v56 }
 0x10e   : > { %v445_v59 = vmul.f32 0.5, %v444_v57  ;;  %v2646_v57 = vperm.slane %v2626_v8, 3 }
 0x10f   : > { %v425_v60 = vmul.f32 0.5, %v424_v58 }
 0x110   : > { %v446_v61 = vsub.f32 1.5, %v445_v59  ;;  %v2651_v59 = vperm.slane %v2626_v8, 4 }
 0x111   : > { %v2372_v62 = vpop.eup %2371  ;;  %v426_v63 = vsub.f32 1.5, %v425_v60 }
 0x112   : > { %v2374_v0 = vpop.eup %2373  ;;  %v447_v2 = vmul.f32 %v2368_v51, %v446_v61  ;;  %v453_v3 = vmul.f32 %v2372_v62, %v421_v52  ;;  %vm459_vm8 = vweird.f32 %v2372_v62 }
 0x113   : > { %v427_v4 = vmul.f32 %v2370_v54, %v426_v63  ;;  %v433_v5 = vmul.f32 %v2374_v0, %v419_v53  ;;  %vm439_vm10 = vweird.f32 %v2374_v0  ;;  %vm460_vm12 = vmor %vm458_vm11, %vm459_vm8 }
 0x114   : > { %v454_v6 = vmul.f32 %v2372_v62, %v453_v3  ;;  %v451_v9 = vsel %vm450_vm6, %v2368_v51, %v447_v2  ;;  %vm440_vm13 = vmor %vm438_vm9, %vm439_vm10 }
 0x115   : > { %v434_v7 = vmul.f32 %v2374_v0, %v433_v5  ;;  %v431_v11 = vsel %vm430_vm7, %v2370_v54, %v427_v4  ;;  %v464_v16 = vmul.f32 %v451_v9, %v2578_v19 }
 0x116   : > { %v455_v10 = vmul.f32 0.5, %v454_v6  ;;  %v462_v18 = vmul.f32 %v431_v11, %v2581_v20 }
 0x117   : > { %v435_v12 = vmul.f32 0.5, %v434_v7  ;;  %v469_v27 = vmul.f32 %v466_v15, %v464_v16 }
 0x118   : > { %v456_v13 = vsub.f32 1.5, %v455_v10  ;;  %v467_v19 = vmul.f32 %v466_v15, %v462_v18 }
 0x119   : > { %v436_v17 = vsub.f32 1.5, %v435_v12  ;;  %v474_v33 = vadd.f32 %v471_v26, %v469_v27 }
 0x11a   : > { %v457_v21 = vmul.f32 %v2372_v62, %v456_v13  ;;  %v472_v20 = vadd.f32 %v471_v26, %v467_v19 }
 0x11b   : > { %v437_v22 = vmul.f32 %v2374_v0, %v436_v17 }
 0x11c   : > { %v461_v23 = vsel %vm460_vm12, %v2372_v62, %v457_v21 }
 0x11d   : > { %v465_v24 = vmul.f32 %v461_v23, %v2591_v29  ;;  %v441_v25 = vsel %vm440_vm13, %v2374_v0, %v437_v22  ;;  %v482_v29 = vperm.slane %v2626_v8, 2 }
 0x11e   : > { %v463_v28 = vmul.f32 %v441_v25, %v2593_v30 }
 0x11f   : > { %v470_v31 = vmul.f32 %v466_v15, %v465_v24 }
 0x120   : > { %v468_v32 = vmul.f32 %v466_v15, %v463_v28 }
 0x121   : > { %v475_v34 = vadd.f32 %v471_v26, %v470_v31 }
 0x122   : > { %v473_v35 = vadd.f32 %v471_v26, %v468_v32 }
 0x123   : > { %v477_v36 = vpack.c.bf16 %v475_v34, %v474_v33 }
 0x124   : > { %v476_v37 = vpack.c.bf16 %v473_v35, %v472_v20 }
 0x125   : > { %2213 = vmatmul.msk.bf16.vlgmr.msra.gmra.mxu1 %vm370_vm0, %v477_v36 }
 0x126   : > { %2212 = vmatmul.msk.bf16.vlgmr.msra.gmra.mxu0 %vm370_vm0, %v476_v37  ;;  %2232 = vmatmul.msk.bf16.vlgmr.msra.gmra.mxu2 %vm370_vm0, %v476_v37 }
 0x135   : > { %2222 = vmatmul.msk.bf16.vlgmr.msrb.gmra.mxu1 %vm370_vm0, %v476_v37 }
 0x136   : > { %2233 = vmatmul.msk.bf16.gmra.mxu2 %vm370_vm0, %v477_v36 }
 0x145   : > { %2223 = vmatmul.msk.bf16.gmra.mxu1 %vm370_vm0, %v477_v36 }
 0x1a2   : > { %v515_v30 = vpop.f32.mrf.mxu1 }
 0x1a3   : > { %v510_v38 = vpop.f32.mrf.mxu0  ;;  %v516_v39 = vadd.f32 %v515_v30, %v482_v29 }
 0x1a4   : > { %v511_v40 = vadd.f32 %v510_v38, %v482_v29 }
 0x1a5   : > { %v594_v43 = vpack.c.bf16 %v516_v39, %v516_v39 }
 0x1a6   : > { %v592_v46 = vpack.c.bf16 %v511_v40, %v511_v40 }
 0x1a7   : > { %v981_v50 = vunpack.c.l.b16 %v594_v43 }
 0x1a8   : > { %v606_v52 = vunpack.c.l.b16 %v592_v46 }
 0x1a9   : > { %v582_v41 = vpop.f32.mrf.mxu2 }
 0x1aa   : > { %v517_v42 = vpop.f32.mrf.mxu1  ;;  %v583_v62 = vadd.f32 %v582_v41, %v2651_v59 }
 0x1ab   : > { %v512_v44 = vpop.f32.mrf.mxu0  ;;  %v518_v45 = vadd.f32 %v517_v42, %v482_v29 }
 0x1ac   : > { %v513_v47 = vadd.f32 %v512_v44, %v482_v29  ;;  %v600_v4 = vpack.c.bf16 %v583_v62, %v583_v62 }
 0x1ad   : > { %v595_v48 = vpack.c.bf16 %v518_v45, %v518_v45 }
 0x1ae   : > { %v593_v49 = vpack.c.bf16 %v513_v47, %v513_v47  ;;  %v661_v10 = vunpack.c.l.b16 %v600_v4 }
 0x1af   : > { %v982_v51 = vunpack.c.l.b16 %v595_v48 }
 0x1b0   : > { %v607_v53 = vunpack.c.l.b16 %v593_v49 }
 0x1b1   : > { %v2641_v54 = vpack.c.b16 %v982_v51, %v981_v50  ;;  %v584_v58 = vpop.f32.mrf.mxu2 }
 0x1b2   : > { %v2643_v55 = vpack.c.b16 %v607_v53, %v606_v52  ;;  %v546_v56 = vpop.f32.mrf.mxu1  ;;  %v585_v60 = vadd.f32 %v584_v58, %v2651_v59 }
 0x1b3   : > { %v547_v61 = vadd.f32 %v546_v56, %v2646_v57 }
 0x1b4   : > { %684 = vrot.lane.b32.xlu0 %v2643_v55, %s2486_s17  ;;  %v601_v0 = vpack.c.bf16 %v585_v60, %v585_v60 }
 0x1b5   : > { %v596_v2 = vpack.c.bf16 %v547_v61, %v547_v61 }
 0x1b6   : > { %v662_v6 = vunpack.c.l.b16 %v601_v0 }
 0x1b7   : > { %v611_v7 = vunpack.c.l.b16 %v596_v2 }
 0x1b8   : > { %v2659_v12 = vpack.c.b16 %v662_v6, %v661_v10 }
 0x1ba   : > { %v548_v63 = vpop.f32.mrf.mxu1 }
 0x1bb   : > { %v549_v3 = vadd.f32 %v548_v63, %v2646_v57 }
 0x1bd   : > { %v597_v5 = vpack.c.bf16 %v549_v3, %v549_v3 }
 0x1bf   : > { %v612_v9 = vunpack.c.l.b16 %v597_v5 }
 0x1c1   : > { %v2657_v11 = vpack.c.b16 %v612_v9, %v611_v7 }
 0x1c3   : > { %797 = vrot.lane.b32.xlu1 %v2657_v11, %s2487_s18  ;;  %686 = vrot.lane.b32.xlu2 %v2657_v11, %s2486_s17  ;;  %v619_v13 = vsel %vm614_vm14, %v2657_v11, 0 }
 0x1c4   : > { %628 = vmatpush.bf16.xpose.msra.mxu3 %v619_v13 }
 0x1cb   : > { %795 = vrot.lane.b32.xlu2 %v2643_v55, %s2487_s18  ;;  %2234 = vmatmul.msk.bf16.vlgmr.msra.gmra.mxu3 %vm614_vm14, %v2643_v55 }
 0x1cc   : > { %675 = vmatpush.bf16.msrb.mxu3 %v2659_v12 }
 0x21d   : > { %v687_v15 = vpop.permute.xlu2 %686 }
 0x21e   : > { %v692_v16 = vsel %vm614_vm14, %v687_v15, 0 }
 0x21f   : > { %701 = vmatpush.bf16.xpose.msrb.mxu0 %v692_v16 }
 0x225   : > { %v796_v22 = vpop.permute.xlu2 %795 }
 0x226   : > { %v685_v17 = vpop.permute.xlu0 %684 }
 0x227   : > { %2236 = vmatmul.msk.bf16.vlgmr.msrb.gmra.mxu0 %vm614_vm14, %v685_v17 }
 0x235   : > { %v798_v18 = vpop.permute.xlu1 %797 }
 0x236   : > { %v803_v21 = vsel %vm614_vm14, %v798_v18, 0 }
 0x237   : > { %812 = vmatpush.bf16.xpose.msra.mxu0 %v803_v21 }
 0x23e   : > { %2241 = vmatmul.msk.bf16.vlgmr.msra.gmra.mxu0 %vm614_vm14, %v796_v22 }
 0x24e   : > { %v2682_v32 = vpop.f32.mrf.mxu3 }
 0x24f   : > { %v636_v53 = vsel %vm635_vm15, %v2682_v32, -inf }
 0x256   : > { %v2684_v33 = vpop.f32.mrf.mxu3 }
 0x257   : > { %v639_v34 = vsel %vm635_vm15, %v2684_v33, -inf }
 0x2a4   : > { %v703_v23 = vpop.f32.mrf.mxu0 }
 0x2a5   : > { %v708_v24 = vsel %vm635_vm15, %v703_v23, -inf }
 0x2a6   : > { %709 = vmax.xlane.f32.xlu0 %v708_v24 }
 0x2ac   : > { %v705_v25 = vpop.f32.mrf.mxu0 }
 0x2ad   : > { %v711_v26 = vsel %vm635_vm15, %v705_v25, -inf }
 0x2ae   : > { %712 = vmax.xlane.f32.xlu2 %v711_v26 }
 0x2bb   : > { %v814_v27 = vpop.f32.mrf.mxu0 }
 0x2bc   : > { %v819_v28 = vsel %vm635_vm15, %v814_v27, -inf }
 0x2bd   : > { %820 = vmax.xlane.f32.xlu1 %v819_v28 }
 0x2c3   : > { %v816_v19 = vpop.f32.mrf.mxu0 }
 0x2c4   : > { %v822_v31 = vsel %vm635_vm15, %v816_v19, -inf }
 0x2c5   : > { %823 = vmax.xlane.f32.xlu0 %v822_v31 }
 0x2d9   : > { %731 = vrot.lane.b32.xlu0 %v2659_v12, %s2486_s17 }
 0x303   : > { %640 = vmax.xlane.f32.xlu0 %v639_v34 }
 0x319   : > { %v710_v20 = vpop.xlane.xlu0 %709 }
 0x31a   : > { %v714_v35 = vsub.f32 %v703_v23, %v710_v20 }
 0x31c   : > { %v716_v36 = vmul.f32 1.442695, %v714_v35 }
 0x31e   : > { %2375 = vpow2.f32 %v716_v36 }
 0x321   : > { %v713_v37 = vpop.xlane.xlu2 %712 }
 0x322   : > { %v715_v29 = vsub.f32 %v705_v25, %v713_v37  ;;  %v2238_v25 = vld [vmem:[%s3135_s6 + $0x4] sm:$0xf]  ;;  %v683_v37 = vld [vmem:[%s3135_s6] sm:$0xf] }
 0x323   : > { %v759_v26 = vsel %vm757_vm1, %v2238_v25, 0 }
 0x324   : > { %v2376_v30 = vpop.eup %2375  ;;  %v718_v38 = vmul.f32 1.442695, %v715_v29  ;;  %768 = vmatpush.bf16.msrb.mxu2 %v759_v26 }
 0x325   : > { %v720_v39 = vsel %vm635_vm15, %v2376_v30, 0.0 }
 0x326   : > { %2377 = vpow2.f32 %v718_v38  ;;  %721 = vadd.xlane.f32.xlu2 %v720_v39 }
 0x32c   : > { %v2378_v40 = vpop.eup %2377 }
 0x32d   : > { %v723_v41 = vsel %vm635_vm15, %v2378_v40, 0.0 }
 0x32e   : > { %724 = vadd.xlane.f32.xlu1 %v723_v41 }
 0x330   : > { %v821_v42 = vpop.xlane.xlu1 %820 }
 0x331   : > { %v825_v43 = vsub.f32 %v814_v27, %v821_v42  ;;  %v2243_v27 = vld [vmem:[%s3135_s6 + $0x8] sm:$0xf] }
 0x332   : > { %v869_v28 = vsel %vm757_vm1, %v2243_v27, 0 }
 0x333   : > { %v827_v44 = vmul.f32 1.442695, %v825_v43  ;;  %878 = vmatpush.bf16.msra.mxu2 %v869_v28 }
 0x335   : > { %2379 = vpow2.f32 %v827_v44 }
 0x338   : > { %v824_v45 = vpop.xlane.xlu0 %823 }
 0x339   : > { %v826_v46 = vsub.f32 %v816_v19, %v824_v45  ;;  %v551_v19 = vpop.f32.mrf.mxu1 }
 0x33b   : > { %v2380_v47 = vpop.eup %2379  ;;  %v829_v48 = vmul.f32 1.442695, %v826_v46 }
 0x33c   : > { %v831_v49 = vsel %vm635_vm15, %v2380_v47, 0.0 }
 0x33d   : > { %2381 = vpow2.f32 %v829_v48  ;;  %832 = vadd.xlane.f32.xlu2 %v831_v49 }
 0x341   : > { %v553_v31 = vpop.f32.mrf.mxu1 }
 0x343   : > { %v2382_v50 = vpop.eup %2381 }
 0x344   : > { %v834_v51 = vsel %vm635_vm15, %v2382_v50, 0.0 }
 0x345   : > { %835 = vadd.xlane.f32.xlu1 %v834_v51 }
 0x34b   : > { %v732_v52 = vpop.permute.xlu0 %731 }
 0x34c   : > { %744 = vmatpush.bf16.msra.mxu1 %v732_v52  ;;  %v587_v52 = vpop.f32.mrf.mxu2 }
 0x34d   : > { %637 = vmax.xlane.f32.xlu1 %v636_v53 }
 0x354   : > { %v589_v53 = vpop.f32.mrf.mxu2 }
 0x355   : > { %842 = vrot.lane.b32.xlu2 %v2659_v12, %s2487_s18 }
 0x35d   : > { %889 = vrot.lane.b32.xlu2 %v2657_v11, %s2488_s20 }
 0x376   : > { %v641_v7 = vpop.xlane.xlu0 %640 }
 0x377   : > { %v643_v16 = vsub.f32 %v2684_v33, %v641_v7 }
 0x379   : > { %v646_v18 = vmul.f32 1.442695, %v643_v16 }
 0x399   : > { %v722_v56 = vpop.xlane.xlu2 %721 }
 0x39a   : > { %2383 = vrcp.f32 %v722_v56 }
 0x3a0   : > { %v2384_v60 = vpop.eup %2383 }
 0x3a1   : > { %v725_v58 = vpop.xlane.xlu1 %724  ;;  %v728_v62 = vmul.f32 %v2384_v60, %v2376_v30  ;;  %v779_v30 = vsel %vm757_vm1, %v683_v37, 0 }
 0x3a2   : > { %2385 = vrcp.f32 %v725_v58  ;;  %788 = vmatpush.bf16.msra.mxu3 %v779_v30 }
 0x3a8   : > { %v2386_v61 = vpop.eup %2385 }
 0x3a9   : > { %v729_v63 = vmul.f32 %v2386_v61, %v2378_v40  ;;  %v590_v61 = vadd.f32 %v589_v53, %v2651_v59 }
 0x3ab   : > { %v730_v0 = vpack.c.bf16 %v729_v63, %v728_v62  ;;  %v588_v62 = vadd.f32 %v587_v52, %v2651_v59 }
 0x3ad   : > { %2237 = vmatmul.msk.bf16.vlgmr.msra.gmra.mxu1 %vm635_vm15, %v730_v0 }
 0x3b0   : > { %v833_v2 = vpop.xlane.xlu2 %832 }
 0x3b1   : > { %2387 = vrcp.f32 %v833_v2  ;;  %v603_v2 = vpack.c.bf16 %v590_v61, %v590_v61 }
 0x3b7   : > { %v2388_v5 = vpop.eup %2387 }
 0x3b8   : > { %v836_v3 = vpop.xlane.xlu1 %835  ;;  %v843_v4 = vpop.permute.xlu2 %842  ;;  %v839_v9 = vmul.f32 %v2388_v5, %v2380_v47 }
 0x3b9   : > { %2389 = vrcp.f32 %v836_v3  ;;  %855 = vmatpush.bf16.msrb.mxu1 %v843_v4  ;;  %v602_v3 = vpack.c.bf16 %v588_v62, %v588_v62  ;;  %v1035_v4 = vunpack.c.l.b16 %v603_v2 }
 0x3bb   : > { %v1034_v5 = vunpack.c.l.b16 %v602_v3 }
 0x3bf   : > { %v2390_v6 = vpop.eup %2389 }
 0x3c0   : > { %v840_v10 = vmul.f32 %v2390_v6, %v2382_v50  ;;  %v638_v11 = vpop.xlane.xlu1 %637  ;;  %v890_v49 = vpop.permute.xlu2 %889 }
 0x3c1   : > { %v642_v13 = vsub.f32 %v2682_v32, %v638_v11  ;;  %v554_v32 = vadd.f32 %v553_v31, %v2646_v57  ;;  %v895_v51 = vsel %vm614_vm14, %v890_v49, 0  ;;  %v2741_v11 = vpack.c.b16 %v1035_v4, %v1034_v5 }
 0x3c2   : > { %v841_v15 = vpack.c.bf16 %v840_v10, %v839_v9 }
 0x3c3   : > { %v644_v17 = vmul.f32 1.442695, %v642_v13  ;;  %v599_v33 = vpack.c.bf16 %v554_v32, %v554_v32 }
 0x3c4   : > { %2242 = vmatmul.msk.bf16.vlgmr.msrb.gmra.mxu1 %vm635_vm15, %v841_v15 }
 0x3c5   : > { %2391 = vpow2.f32 %v644_v17  ;;  %v987_v35 = vunpack.c.l.b16 %v599_v33 }
 0x3c6   : > { %2393 = vpow2.f32 %v646_v18 }
 0x3cb   : > { %v2392_v21 = vpop.eup %2391 }
 0x3cc   : > { %v648_v22 = vsel %vm635_vm15, %v2392_v21, 0.0  ;;  %v2394_v23 = vpop.eup %2393 }
 0x3cd   : > { %649 = vadd.xlane.f32.xlu1 %v648_v22  ;;  %v651_v24 = vsel %vm635_vm15, %v2394_v23, 0.0 }
 0x3d5   : > { %652 = vadd.xlane.f32.xlu1 %v651_v24 }
 0x3ee   : > { %887 = vrot.lane.b32.xlu1 %v2643_v55, %s2488_s20  ;;  %v552_v55 = vadd.f32 %v551_v19, %v2646_v57 }
 0x3f0   : > { %v598_v20 = vpack.c.bf16 %v552_v55, %v552_v55 }
 0x3f2   : > { %v986_v36 = vunpack.c.l.b16 %v598_v20 }
 0x3f4   : > { %v2719_v29 = vpack.c.b16 %v987_v35, %v986_v36 }
 0x3f6   : > { %v993_v57 = vsel %vm614_vm14, %v2719_v29, 0 }
 0x42a   : > { %v746_v34 = vpop.f32.mrf.mxu1 }
 0x432   : > { %v748_v38 = vpop.f32.mrf.mxu1 }
 0x433   : > { %v751_v39 = vpack.c.bf16 %v748_v38, %v746_v34 }
 0x435   : > { %2239 = vmatmul.msk.bf16.vlgmr.msrb.gmra.mxu2 %vm614_vm14, %v751_v39 }
 0x436   : > { %1002 = vmatpush.bf16.xpose.msrb.mxu2 %v993_v57 }
 0x440   : > { %v650_v40 = vpop.xlane.xlu1 %649 }
 0x441   : > { %v857_v41 = vpop.f32.mrf.mxu1  ;;  %2395 = vrcp.f32 %v650_v40 }
 0x447   : > { %v2396_v45 = vpop.eup %2395 }
 0x448   : > { %v653_v42 = vpop.xlane.xlu1 %652  ;;  %v656_v47 = vmul.f32 %v2396_v45, %v2392_v21 }
 0x449   : > { %2397 = vrcp.f32 %v653_v42  ;;  %v859_v43 = vpop.f32.mrf.mxu1 }
 0x44a   : > { %v862_v44 = vpack.c.bf16 %v859_v43, %v857_v41 }
 0x44c   : > { %2244 = vmatmul.msk.bf16.vlgmr.msra.gmra.mxu2 %vm614_vm14, %v862_v44 }
 0x44d   : > { %1134 = vmatpush.bf16.msra.mxu2 %v759_v26 }
 0x44f   : > { %v2398_v46 = vpop.eup %2397 }
 0x450   : > { %v657_v48 = vmul.f32 %v2398_v46, %v2394_v23 }
 0x452   : > { %v658_v50 = vpack.c.bf16 %v657_v48, %v656_v47 }
 0x454   : > { %2235 = vmatmul.msk.bf16.vlgmr.msrb.gmra.mxu3 %vm635_vm15, %v658_v50 }
 0x455   : > { %904 = vmatpush.bf16.xpose.msrb.mxu3 %v895_v51 }
 0x45c   : > { %2249 = vmatmul.msk.bf16.vlgmr.msrb.gmra.mxu2 %vm614_vm14, %v2641_v54 }
 0x45d   : > { %1236 = vmatpush.bf16.msrb.mxu2 %v869_v28 }
 0x460   : > { %v888_v15 = vpop.permute.xlu1 %887 }
 0x4b8   : > { %v2730_v56 = vpop.f32.mrf.mxu2 }
 0x4c0   : > { %v2732_v58 = vpop.f32.mrf.mxu2 }
 0x4cf   : > { %v2734_v60 = vpop.f32.mrf.mxu2 }
 0x4d7   : > { %v677_v63 = vpop.f32.mrf.mxu3  ;;  %v2738_v0 = vpop.f32.mrf.mxu2 }
 0x4df   : > { %v679_v6 = vpop.f32.mrf.mxu3  ;;  %v1004_v7 = vpop.f32.mrf.mxu2 }
 0x4e0   : > { %v682_v9 = vpack.c.bf16 %v679_v6, %v677_v63  ;;  %v1009_v10 = vsel %vm635_vm15, %v1004_v7, -inf }
 0x4e1   : > { %1010 = vmax.xlane.f32.xlu2 %v1009_v10 }
 0x4e2   : > { %2240 = vmatmul.msk.bf16.vlgmr.msra.gmra.mxu3 %vm614_vm14, %v682_v9 }
 0x4e3   : > { %1048 = vmatpush.bf16.msra.mxu3 %v2741_v11 }
 0x4e7   : > { %v1006_v59 = vpop.f32.mrf.mxu2 }
 0x4e8   : > { %v1012_v13 = vsel %vm635_vm15, %v1006_v59, -inf }
 0x4e9   : > { %1013 = vmax.xlane.f32.xlu0 %v1012_v13 }
 0x4f2   : > { %2245 = vmatmul.msk.bf16.vlgmr.msrb.gmra.mxu3 %vm614_vm14, %v888_v15 }
 0x4f3   : > { %1151 = vmatpush.bf16.msrb.mxu3 %v779_v30 }
 0x554   : > { %v1011_v16 = vpop.xlane.xlu2 %1010 }
 0x555   : > { %v1015_v17 = vsub.f32 %v1004_v7, %v1011_v16 }
 0x557   : > { %v1017_v18 = vmul.f32 1.442695, %v1015_v17 }
 0x559   : > { %2399 = vpow2.f32 %v1017_v18 }
 0x55c   : > { %v1014_v21 = vpop.xlane.xlu0 %1013 }
 0x55d   : > { %v1016_v22 = vsub.f32 %v1006_v59, %v1014_v21  ;;  %v2247_v59 = vld [vmem:[%s3135_s6 + $0xc] sm:$0xf] }
 0x55e   : > { %v2784_v13 = vsel %vm757_vm1, %v2247_v59, 0 }
 0x55f   : > { %v2400_v23 = vpop.eup %2399  ;;  %v1019_v24 = vmul.f32 1.442695, %v1016_v22  ;;  %970 = vmatpush.bf16.msra.mxu1 %v2784_v13 }
 0x560   : > { %v1021_v25 = vsel %vm635_vm15, %v2400_v23, 0.0 }
 0x561   : > { %2401 = vpow2.f32 %v1019_v24  ;;  %1022 = vadd.xlane.f32.xlu1 %v1021_v25 }
 0x565   : > { %v2748_v26 = vpop.f32.mrf.mxu3 }
 0x567   : > { %v2402_v27 = vpop.eup %2401 }
 0x568   : > { %v1024_v28 = vsel %vm635_vm15, %v2402_v27, 0.0 }
 0x569   : > { %1025 = vadd.xlane.f32.xlu0 %v1024_v28 }
 0x56d   : > { %v2751_v19 = vpop.f32.mrf.mxu3 }
 0x575   : > { %v906_v31 = vpop.f32.mrf.mxu3 }
 0x576   : > { %v911_v32 = vsel %vm635_vm15, %v906_v31, -inf }
 0x577   : > { %912 = vmax.xlane.f32.xlu0 %v911_v32 }
 0x57a   : > { %1056 = vrot.lane.b32.xlu1 %v2641_v54, %s2486_s17 }
 0x57d   : > { %v908_v55 = vpop.f32.mrf.mxu3 }
 0x57e   : > { %v914_v33 = vsel %vm635_vm15, %v908_v55, -inf }
 0x57f   : > { %915 = vmax.xlane.f32.xlu2 %v914_v33 }
 0x582   : > { %1245 = vrot.lane.b32.xlu1 %v2641_v54, %s2488_s20 }
 0x5d4   : > { %v1023_v34 = vpop.xlane.xlu1 %1022 }
 0x5d5   : > { %2403 = vrcp.f32 %v1023_v34 }
 0x5db   : > { %v2404_v35 = vpop.eup %2403 }
 0x5dc   : > { %v1026_v20 = vpop.xlane.xlu0 %1025  ;;  %v1029_v37 = vmul.f32 %v2404_v35, %v2400_v23  ;;  %v791_v35 = vadd.f32 %v2748_v26, %v2730_v56 }
 0x5dd   : > { %2405 = vrcp.f32 %v1026_v20 }
 0x5e3   : > { %v2406_v36 = vpop.eup %2405 }
 0x5e4   : > { %v1030_v30 = vmul.f32 %v2406_v36, %v2402_v27 }
 0x5e6   : > { %v1031_v38 = vpack.c.bf16 %v1030_v30, %v1029_v37  ;;  %v885_v30 = vadd.f32 %v2734_v60, %v791_v35 }
 0x5e8   : > { %2250 = vmatmul.msk.bf16.vlgmr.msra.gmra.mxu3 %vm635_vm15, %v1031_v38 }
 0x5ea   : > { %v913_v39 = vpop.xlane.xlu0 %912 }
 0x5eb   : > { %v917_v57 = vsub.f32 %v906_v31, %v913_v39 }
 0x5ec   : > { %v1057_v5 = vpop.permute.xlu1 %1056 }
 0x5ed   : > { %v919_v40 = vmul.f32 1.442695, %v917_v57 }
 0x5ef   : > { %2407 = vpow2.f32 %v919_v40  ;;  %v2804_v40 = vperm.slane %v2626_v8, 5 }
 0x5f2   : > { %v916_v41 = vpop.xlane.xlu2 %915 }
 0x5f3   : > { %v918_v42 = vsub.f32 %v908_v55, %v916_v41 }
 0x5f4   : > { %v1246_v9 = vpop.permute.xlu1 %1245 }
 0x5f5   : > { %v2408_v43 = vpop.eup %2407  ;;  %v921_v44 = vmul.f32 1.442695, %v918_v42 }
 0x5f6   : > { %v923_v45 = vsel %vm635_vm15, %v2408_v43, 0.0 }
 0x5f7   : > { %2409 = vpow2.f32 %v921_v44  ;;  %924 = vadd.xlane.f32.xlu0 %v923_v45 }
 0x5fd   : > { %v2410_v46 = vpop.eup %2409 }
 0x5fe   : > { %v926_v47 = vsel %vm635_vm15, %v2410_v46, 0.0 }
 0x5ff   : > { %927 = vadd.xlane.f32.xlu2 %v926_v47 }
 0x60b   : > { %934 = vrot.lane.b32.xlu0 %v2659_v12, %s2488_s20 }
 0x613   : > { %1160 = vrot.lane.b32.xlu0 %v2719_v29, %s2487_s18 }
 0x617   : > { %1058 = vrot.lane.b32.xlu2 %v2719_v29, %s2486_s17 }
 0x61b   : > { %1247 = vrot.lane.b32.xlu0 %v2719_v29, %s2488_s20 }
 0x61f   : > { %1158 = vrot.lane.b32.xlu2 %v2641_v54, %s2487_s18 }
 0x66a   : > { %v925_v49 = vpop.xlane.xlu0 %924 }
 0x66b   : > { %v1050_v48 = vpop.f32.mrf.mxu3 }
 0x672   : > { %v928_v50 = vpop.xlane.xlu2 %927 }
 0x673   : > { %2411 = vrcp.f32 %v928_v50  ;;  %v1052_v51 = vpop.f32.mrf.mxu3 }
 0x674   : > { %2413 = vrcp.f32 %v925_v49  ;;  %v1055_v52 = vpack.c.bf16 %v1052_v51, %v1050_v48 }
 0x676   : > { %2254 = vmatmul.msk.bf16.vlgmr.msrb.gmra.mxu3 %vm614_vm14, %v1055_v52 }
 0x679   : > { %v2412_v12 = vpop.eup %2411 }
 0x67a   : > { %v2414_v53 = vpop.eup %2413  ;;  %v932_v61 = vmul.f32 %v2412_v12, %v2410_v46  ;;  %v1059_v62 = vpop.permute.xlu2 %1058 }
 0x67b   : > { %v931_v63 = vmul.f32 %v2414_v53, %v2408_v43  ;;  %v1064_v29 = vsel %vm614_vm14, %v1059_v62, 0 }
 0x67d   : > { %v935_v2 = vpop.permute.xlu0 %934  ;;  %v933_v3 = vpack.c.bf16 %v932_v61, %v931_v63 }
 0x67e   : > { %947 = vmatpush.bf16.msrb.mxu0 %v935_v2 }
 0x681   : > { %2246 = vmatmul.msk.bf16.vlgmr.msrb.gmra.mxu0 %vm635_vm15, %v933_v3 }
 0x682   : > { %1073 = vmatpush.bf16.xpose.msra.mxu0 %v1064_v29  ;;  %v1159_v10 = vpop.permute.xlu2 %1158 }
 0x685   : > { %v1161_v54 = vpop.permute.xlu0 %1160 }
 0x686   : > { %v1166_v4 = vsel %vm614_vm14, %v1161_v54, 0 }
 0x68a   : > { %1175 = vmatpush.bf16.xpose.msrb.mxu0 %v1166_v4 }
 0x68d   : > { %v1248_v6 = vpop.permute.xlu0 %1247 }
 0x68e   : > { %v1253_v7 = vsel %vm614_vm14, %v1248_v6, 0 }
 0x68f   : > { %1262 = vmatpush.bf16.xpose.msra.mxu3 %v1253_v7 }
 0x691   : > { %2251 = vmatmul.msk.bf16.vlgmr.msra.gmra.mxu0 %vm614_vm14, %v1057_v5 }
 0x696   : > { %2258 = vmatmul.msk.bf16.vlgmr.msra.gmra.mxu3 %vm614_vm14, %v1246_v9 }
 0x6a1   : > { %2255 = vmatmul.msk.bf16.vlgmr.msrb.gmra.mxu0 %vm614_vm14, %v1159_v10  ;;  %v793_v10 = vadd.f32 %v2751_v19, %v2732_v58 }
 0x6f9   : > { %v2787_v18 = vpop.f32.mrf.mxu3 }
 0x6fe   : > { %v949_v15 = vpop.f32.mrf.mxu0 }
 0x701   : > { %v2791_v23 = vpop.f32.mrf.mxu3 }
 0x706   : > { %v951_v16 = vpop.f32.mrf.mxu0 }
 0x707   : > { %v954_v17 = vpack.c.bf16 %v951_v16, %v949_v15  ;;  %v886_v15 = vadd.f32 %v2738_v0, %v793_v10 }
 0x709   : > { %2248 = vmatmul.msk.bf16.vlgmr.msra.gmra.mxu1 %vm614_vm14, %v954_v17  ;;  %v2473_v17 = vld [vmem:[%s2561_s19 + $0x8] sm:$0xff] }
 0x70e   : > { %v1075_v21 = vpop.f32.mrf.mxu0 }
 0x70f   : > { %v1080_v22 = vsel %vm635_vm15, %v1075_v21, -inf }
 0x710   : > { %1081 = vmax.xlane.f32.xlu0 %v1080_v22 }
 0x716   : > { %v1077_v24 = vpop.f32.mrf.mxu0 }
 0x717   : > { %v1083_v25 = vsel %vm635_vm15, %v1077_v24, -inf }
 0x718   : > { %1084 = vmax.xlane.f32.xlu2 %v1083_v25 }
 0x719   : > { %v1264_v27 = vpop.f32.mrf.mxu3 }
 0x71a   : > { %v1269_v32 = vsel %vm635_vm15, %v1264_v27, -inf }
 0x71e   : > { %v1177_v28 = vpop.f32.mrf.mxu0 }
 0x71f   : > { %v1182_v31 = vsel %vm635_vm15, %v1177_v28, -inf }
 0x720   : > { %1183 = vmax.xlane.f32.xlu1 %v1182_v31  ;;  %1270 = vmax.xlane.f32.xlu2 %v1269_v32 }
 0x721   : > { %v1266_v55 = vpop.f32.mrf.mxu3 }
 0x722   : > { %v1272_v20 = vsel %vm635_vm15, %v1266_v55, -inf }
 0x726   : > { %v1179_v33 = vpop.f32.mrf.mxu0 }
 0x727   : > { %v1185_v34 = vsel %vm635_vm15, %v1179_v33, -inf }
 0x728   : > { %1186 = vmax.xlane.f32.xlu0 %v1185_v34  ;;  %1273 = vmax.xlane.f32.xlu1 %v1272_v20 }
 0x741   : > { %1103 = vrot.lane.b32.xlu1 %v2741_v11, %s2486_s17 }
 0x783   : > { %v1082_v36 = vpop.xlane.xlu0 %1081 }
 0x784   : > { %v1086_v37 = vsub.f32 %v1075_v21, %v1082_v36 }
 0x786   : > { %v1088_v38 = vmul.f32 1.442695, %v1086_v37  ;;  %v972_v39 = vpop.f32.mrf.mxu1 }
 0x787   : > { %v977_v57 = vadd.f32 %v972_v39, %v885_v30 }
 0x788   : > { %2415 = vpow2.f32 %v1088_v38 }
 0x789   : > { %v1332_v41 = vadd.f32 %v977_v57, %v2565_v1 }
 0x78b   : > { %v2808_v42 = vadd.f32 %v2804_v40, %v1332_v41  ;;  %v1085_v43 = vpop.xlane.xlu2 %1084 }
 0x78c   : > { %v1087_v44 = vsub.f32 %v1077_v24, %v1085_v43 }
 0x78d   : > { %v1402_v56 = vsel %vm370_vm0, %v2808_v42, 0.0 }
 0x78e   : > { %v2416_v26 = vpop.eup %2415  ;;  %v1090_v45 = vmul.f32 1.442695, %v1087_v44  ;;  %1403 = vadd.xlane.f32.xlu1 %v1402_v56  ;;  %v974_v59 = vpop.f32.mrf.mxu1 }
 0x78f   : > { %v1092_v60 = vsel %vm635_vm15, %v2416_v26, 0.0  ;;  %v978_v16 = vadd.f32 %v974_v59, %v886_v15  ;;  %v2475_v59 = vld [vmem:[%s2561_s19 + $0x18] sm:$0xff] }
 0x790   : > { %2417 = vpow2.f32 %v1090_v45  ;;  %1093 = vadd.xlane.f32.xlu0 %v1092_v60 }
 0x791   : > { %v1333_v21 = vadd.f32 %v2473_v17, %v978_v16 }
 0x793   : > { %v1184_v8 = vpop.xlane.xlu1 %1183  ;;  %v1271_v46 = vpop.xlane.xlu2 %1270  ;;  %v2827_v22 = vadd.f32 %v2804_v40, %v1333_v21 }
 0x794   : > { %v1188_v47 = vsub.f32 %v1177_v28, %v1184_v8  ;;  %v1275_v49 = vsub.f32 %v1264_v27, %v1271_v46 }
 0x795   : > { %v1405_v24 = vsel %vm370_vm0, %v2827_v22, 0.0 }
 0x796   : > { %v2418_v48 = vpop.eup %2417  ;;  %v1190_v1 = vmul.f32 1.442695, %v1188_v47  ;;  %v1277_v51 = vmul.f32 1.442695, %v1275_v49 }
 0x797   : > { %v1095_v50 = vsel %vm635_vm15, %v2418_v48, 0.0 }
 0x798   : > { %2419 = vpow2.f32 %v1190_v1  ;;  %1096 = vadd.xlane.f32.xlu2 %v1095_v50 }
 0x799   : > { %2421 = vpow2.f32 %v1277_v51 }
 0x79b   : > { %v1187_v52 = vpop.xlane.xlu0 %1186  ;;  %v1274_v12 = vpop.xlane.xlu1 %1273 }
 0x79c   : > { %v1189_v53 = vsub.f32 %v1179_v33, %v1187_v52  ;;  %v1276_v63 = vsub.f32 %v1266_v55, %v1274_v12 }
 0x79e   : > { %v2420_v61 = vpop.eup %2419  ;;  %v1192_v62 = vmul.f32 1.442695, %v1189_v53  ;;  %v1279_v29 = vmul.f32 1.442695, %v1276_v63  ;;  %v2474_v63 = vld [vmem:[%s2561_s19 + $0x10] sm:$0xff] }
 0x79f   : > { %v1194_v2 = vsel %vm635_vm15, %v2420_v61, 0.0  ;;  %v2422_v3 = vpop.eup %2421 }
 0x7a0   : > { %1195 = vadd.xlane.f32.xlu0 %v1194_v2  ;;  %2423 = vpow2.f32 %v1192_v62  ;;  %v1281_v4 = vsel %vm635_vm15, %v2422_v3, 0.0 }
 0x7a1   : > { %2425 = vpow2.f32 %v1279_v29 }
 0x7a6   : > { %v2424_v54 = vpop.eup %2423 }
 0x7a7   : > { %v1197_v5 = vsel %vm635_vm15, %v2424_v54, 0.0  ;;  %v2426_v6 = vpop.eup %2425 }
 0x7a8   : > { %1282 = vadd.xlane.f32.xlu0 %v1281_v4  ;;  %1198 = vadd.xlane.f32.xlu2 %v1197_v5  ;;  %v1284_v7 = vsel %vm635_vm15, %v2426_v6, 0.0 }
 0x7b0   : > { %1285 = vadd.xlane.f32.xlu2 %v1284_v7 }
 0x7b3   : > { %v1104_v9 = vpop.permute.xlu1 %1103 }
 0x7b4   : > { %1116 = vmatpush.bf16.msrb.mxu1 %v1104_v9 }
 0x7bc   : > { %1205 = vrot.lane.b32.xlu0 %v2741_v11, %s2487_s18 }
 0x7c8   : > { %1292 = vrot.lane.b32.xlu2 %v2741_v11, %s2488_s20 }
 0x7f1   : > { %1406 = vadd.xlane.f32.xlu2 %v1405_v24 }
 0x801   : > { %v1404_v53 = vpop.xlane.xlu1 %1403 }
 0x802   : > { %v1414_v62 = vmul.f32 %v1404_v53, %v2574_v14 }
 0x803   : > { %v1094_v25 = vpop.xlane.xlu0 %1093 }
 0x804   : > { %2427 = vrcp.f32 %v1094_v25  ;;  %v1418_v4 = vsub.f32 %v2808_v42, %v1414_v62 }
 0x806   : > { %v1422_v16 = vmul.f32 %v1418_v4, %v1418_v4 }
 0x808   : > { %v1426_v21 = vsel %vm370_vm0, %v1422_v16, 0.0 }
 0x80a   : > { %v2428_v11 = vpop.eup %2427 }
 0x80b   : > { %v1097_v27 = vpop.xlane.xlu2 %1096  ;;  %v1100_v58 = vmul.f32 %v2428_v11, %v2416_v26 }
 0x80c   : > { %2429 = vrcp.f32 %v1097_v27 }
 0x812   : > { %v2430_v28 = vpop.eup %2429 }
 0x813   : > { %v1101_v19 = vmul.f32 %v2430_v28, %v2418_v48  ;;  %v1196_v0 = vpop.xlane.xlu0 %1195 }
 0x815   : > { %v1102_v31 = vpack.c.bf16 %v1101_v19, %v1100_v58 }
 0x817   : > { %2252 = vmatmul.msk.bf16.vlgmr.msrb.gmra.mxu1 %vm635_vm15, %v1102_v31 }
 0x81b   : > { %v1199_v32 = vpop.xlane.xlu2 %1198  ;;  %v1283_v55 = vpop.xlane.xlu0 %1282 }
 0x81c   : > { %2431 = vrcp.f32 %v1283_v55 }
 0x81d   : > { %2433 = vrcp.f32 %v1199_v32  ;;  %v2342_v32 = vld [vmem:[%s3136_s7 + $0x18] sm:$0xff] }
 0x81e   : > { %2435 = vrcp.f32 %v1196_v0 }
 0x822   : > { %v2432_v34 = vpop.eup %2431 }
 0x823   : > { %v1286_v33 = vpop.xlane.xlu2 %1285  ;;  %v2434_v20 = vpop.eup %2433  ;;  %v1289_v30 = vmul.f32 %v2432_v34, %v2422_v3 }
 0x824   : > { %2437 = vrcp.f32 %v1286_v33  ;;  %v2436_v35 = vpop.eup %2435  ;;  %v1203_v37 = vmul.f32 %v2434_v20, %v2424_v54 }
 0x825   : > { %v1202_v57 = vmul.f32 %v2436_v35, %v2420_v61  ;;  %v2341_v35 = vld [vmem:[%s3136_s7 + $0x10] sm:$0xff] }
 0x827   : > { %v1204_v44 = vpack.c.bf16 %v1203_v37, %v1202_v57 }
 0x82a   : > { %v2438_v36 = vpop.eup %2437 }
 0x82b   : > { %v1290_v38 = vmul.f32 %v2438_v36, %v2426_v6  ;;  %v1293_v39 = vpop.permute.xlu2 %1292 }
 0x82c   : > { %1305 = vmatpush.bf16.msra.mxu0 %v1293_v39 }
 0x82d   : > { %v1291_v41 = vpack.c.bf16 %v1290_v38, %v1289_v30 }
 0x82e   : > { %v1206_v43 = vpop.permute.xlu0 %1205 }
 0x82f   : > { %1218 = vmatpush.bf16.msra.mxu1 %v1206_v43  ;;  %2259 = vmatmul.msk.bf16.vlgmr.msra.gmra.mxu0 %vm635_vm15, %v1291_v41 }
 0x832   : > { %2256 = vmatmul.msk.bf16.vlgmr.msra.gmra.mxu1 %vm635_vm15, %v1204_v44 }
 0x833   : > { %1323 = vmatpush.bf16.msrb.mxu1 %v2784_v13 }
 0x864   : > { %v1407_v6 = vpop.xlane.xlu2 %1406 }
 0x865   : > { %v1415_v10 = vmul.f32 %v1407_v6, %v2574_v14 }
 0x867   : > { %v1419_v17 = vsub.f32 %v2827_v22, %v1415_v10  ;;  %v2344_v10 = vld [vmem:[%s3136_s7 + $0x28] sm:$0xff] }
 0x868   : > { %1660 = vmatpush.bf16.msrb.mxu0 %v2344_v10 }
 0x869   : > { %v1423_v25 = vmul.f32 %v1419_v17, %v1419_v17 }
 0x86b   : > { %v1429_v27 = vsel %vm370_vm0, %v1423_v25, 0.0 }
 0x894   : > { %v1118_v56 = vpop.f32.mrf.mxu1 }
 0x89c   : > { %v1120_v26 = vpop.f32.mrf.mxu1 }
 0x89d   : > { %v1123_v45 = vpack.c.bf16 %v1120_v26, %v1118_v56 }
 0x89f   : > { %2253 = vmatmul.msk.bf16.vlgmr.msra.gmra.mxu2 %vm614_vm14, %v1123_v45 }
 0x8a0   : > { %1581 = vmatpush.bf16.msra.mxu2 %v2342_v32 }
 0x8a4   : > { %1582 = vmatpush.bf16.msra.mxu2 %v2341_v35 }
 0x8ac   : > { %v1307_v60 = vpop.f32.mrf.mxu0 }
 0x8af   : > { %v1220_v8 = vpop.f32.mrf.mxu1 }
 0x8b4   : > { %v1309_v46 = vpop.f32.mrf.mxu0 }
 0x8b5   : > { %v1312_v47 = vpack.c.bf16 %v1309_v46, %v1307_v60 }
 0x8b7   : > { %v1222_v48 = vpop.f32.mrf.mxu1  ;;  %2260 = vmatmul.msk.bf16.vlgmr.msrb.gmra.mxu1 %vm614_vm14, %v1312_v47  ;;  %v2476_v47 = vld [vmem:[%s3130_s1] sm:$0xff] }
 0x8b8   : > { %v1225_v1 = vpack.c.bf16 %v1222_v48, %v1220_v8  ;;  %v2883_v48 = vperm.slane %v2476_v47, 6 }
 0x8ba   : > { %2257 = vmatmul.msk.bf16.vlgmr.msrb.gmra.mxu2 %vm614_vm14, %v1225_v1 }
 0x922   : > { %v1136_v49 = vpop.f32.mrf.mxu2 }
 0x923   : > { %v1154_v50 = vadd.f32 %v2787_v18, %v1136_v49 }
 0x92a   : > { %v1138_v13 = vpop.f32.mrf.mxu2 }
 0x92b   : > { %v1156_v29 = vadd.f32 %v2791_v23, %v1138_v13 }
 0x934   : > { %v1325_v51 = vpop.f32.mrf.mxu1 }
 0x93c   : > { %v1327_v7 = vpop.f32.mrf.mxu1 }
 0x93d   : > { %v1238_v52 = vpop.f32.mrf.mxu2 }
 0x93e   : > { %v1243_v12 = vadd.f32 %v1238_v52, %v1154_v50  ;;  %v2885_v50 = vperm.slane %v2476_v47, 7 }
 0x940   : > { %v1330_v61 = vadd.f32 %v1325_v51, %v1243_v12  ;;  %v1341_v12 = vlaneseq }
 0x942   : > { %v1334_v2 = vadd.f32 %v2474_v63, %v1330_v61  ;;  %v2891_v63 = vshrl.u32 %v1341_v12, 7 }
 0x944   : > { %v2843_v3 = vadd.f32 %v2804_v40, %v1334_v2  ;;  %vm1525_vm8 = vcmp.lt.s32.totalorder %v2891_v63, 7  ;;  %vm1504_vm9 = vcmp.lt.s32.totalorder %v2891_v63, 1 }
 0x945   : > { %v1240_v54 = vpop.f32.mrf.mxu2 }
 0x946   : > { %v1244_v5 = vadd.f32 %v1240_v54, %v1156_v29  ;;  %v1408_v18 = vsel %vm370_vm0, %v2843_v3, 0.0 }
 0x947   : > { %1409 = vadd.xlane.f32.xlu1 %v1408_v18 }
 0x948   : > { %v1331_v9 = vadd.f32 %v1327_v7, %v1244_v5 }
 0x94a   : > { %v1335_v15 = vadd.f32 %v2475_v59, %v1331_v9  ;;  %v2343_v59 = vld [vmem:[%s3136_s7 + $0x20] sm:$0xff] }
 0x94b   : > { %1661 = vmatpush.bf16.msrb.mxu0 %v2343_v59 }
 0x94c   : > { %v2851_v23 = vadd.f32 %v2804_v40, %v1335_v15 }
 0x94e   : > { %v1411_v24 = vsel %vm370_vm0, %v2851_v23, 0.0 }
 0x94f   : > { %1427 = vadd.xlane.f32.xlu1 %v1426_v21  ;;  %1412 = vadd.xlane.f32.xlu0 %v1411_v24  ;;  %v2340_v21 = vld [vmem:[%s3136_s7 + $0x8] sm:$0xff]  ;;  %v2339_v24 = vld [vmem:[%s3136_s7] sm:$0xff] }
 0x950   : > { %1618 = vmatpush.bf16.msrb.mxu3 %v2340_v21  ;;  %v1982_v21 = vpack.c.bf16 %v2827_v22, %v2808_v42 }
 0x954   : > { %1619 = vmatpush.bf16.msrb.mxu3 %v2339_v24 }
 0x957   : > { %1430 = vadd.xlane.f32.xlu1 %v1429_v27 }
 0x9ba   : > { %v1410_v11 = vpop.xlane.xlu1 %1409 }
 0x9bb   : > { %v1416_v28 = vmul.f32 %v1410_v11, %v2574_v14 }
 0x9bd   : > { %v2860_v58 = vsub.f32 %v2843_v3, %v1416_v28 }
 0x9bf   : > { %v1424_v40 = vmul.f32 %v2860_v58, %v2860_v58 }
 0x9c1   : > { %v1432_v19 = vsel %vm370_vm0, %v1424_v40, 0.0 }
 0x9c2   : > { %1433 = vadd.xlane.f32.xlu2 %v1432_v19  ;;  %v1428_v31 = vpop.xlane.xlu1 %1427  ;;  %v1413_v0 = vpop.xlane.xlu0 %1412 }
 0x9c3   : > { %v1438_v55 = vmul.f32 %v1428_v31, %v2574_v14  ;;  %v1417_v33 = vmul.f32 %v1413_v0, %v2574_v14 }
 0x9c5   : > { %v1442_v34 = vadd.f32 1e-05, %v1438_v55  ;;  %v2871_v20 = vsub.f32 %v2851_v23, %v1417_v33 }
 0x9c7   : > { %2439 = vrsqrt.f32 %v1442_v34  ;;  %v1425_v36 = vmul.f32 %v2871_v20, %v2871_v20  ;;  %vm1452_vm3 = vweird.f32 %v1442_v34 }
 0x9c9   : > { %v1435_v37 = vsel %vm370_vm0, %v1425_v36, 0.0 }
 0x9ca   : > { %v1431_v30 = vpop.xlane.xlu1 %1430  ;;  %1436 = vadd.xlane.f32.xlu0 %v1435_v37 }
 0x9cb   : > { %v1439_v38 = vmul.f32 %v1431_v30, %v2574_v14 }
 0x9cd   : > { %v2440_v39 = vpop.eup %2439  ;;  %v1443_v57 = vadd.f32 1e-05, %v1439_v38 }
 0x9ce   : > { %v1447_v41 = vmul.f32 %v2440_v39, %v1442_v34  ;;  %vm1453_vm2 = vweird.f32 %v2440_v39  ;;  %v1343_v34 = vadd.s32 8, %v2891_v63 }
 0x9cf   : > { %2441 = vrsqrt.f32 %v1443_v57  ;;  %vm1454_vm4 = vmor %vm1452_vm3, %vm1453_vm2  ;;  %vm1462_vm6 = vweird.f32 %v1443_v57 }
 0x9d0   : > { %v1448_v43 = vmul.f32 %v2440_v39, %v1447_v41  ;;  %v1357_v38 = vand.u32 15, %v1343_v34  ;;  %v2349_v41 = vld [vmem:[%s3138_s9 + $0x8] sm:$0xff] }
 0x9d1   : > { %2013 = vmatpush.bf16.msra.mxu0 %v2349_v41 }
 0x9d2   : > { %v1449_v44 = vmul.f32 0.5, %v1448_v43  ;;  %vm2939_vm2 = vcmp.ne.s32.totalorder %v1357_v38, 15 }
 0x9d4   : > { %v1450_v56 = vsub.f32 1.5, %v1449_v44 }
 0x9d5   : > { %v2442_v26 = vpop.eup %2441 }
 0x9d6   : > { %v1451_v45 = vmul.f32 %v2440_v39, %v1450_v56  ;;  %v1457_v60 = vmul.f32 %v2442_v26, %v1443_v57  ;;  %vm1463_vm5 = vweird.f32 %v2442_v26 }
 0x9d7   : > { %vm1464_vm7 = vmor %vm1462_vm6, %vm1463_vm5 }
 0x9d8   : > { %v1455_v8 = vsel %vm1454_vm4, %v2440_v39, %v1451_v45  ;;  %v1458_v46 = vmul.f32 %v2442_v26, %v1457_v60  ;;  %v2348_v60 = vld [vmem:[%s3138_s9] sm:$0xff] }
 0x9d9   : > { %v1486_v1 = vmul.f32 %v1455_v8, %v1418_v4  ;;  %2014 = vmatpush.bf16.msra.mxu0 %v2348_v60 }
 0x9da   : > { %v1459_v49 = vmul.f32 0.5, %v1458_v46 }
 0x9db   : > { %v1491_v51 = vmul.f32 %v2883_v48, %v1486_v1  ;;  %v1350_v1 = vand.u32 15, %v2891_v63 }
 0x9dc   : > { %v1460_v13 = vsub.f32 1.5, %v1459_v49  ;;  %v1345_v49 = vadd.s32 24, %v2891_v63 }
 0x9dd   : > { %v2889_v62 = vadd.f32 %v2885_v50, %v1491_v51  ;;  %vm2956_vm3 = vcmp.ne.s32.totalorder %v1350_v1, 0 }
 0x9de   : > { %v1461_v52 = vmul.f32 %v2442_v26, %v1460_v13  ;;  %v1371_v12 = vand.u32 15, %v1345_v49 }
 0x9df   : > { %v1521_v54 = vrot.slane %v2889_v62, 1  ;;  %v1500_v18 = vrot.slane %v2889_v62, 7 }
 0x9e0   : > { %v1465_v53 = vsel %vm1464_vm7, %v2442_v26, %v1461_v52  ;;  %vm2969_vm4 = vcmp.ne.s32.totalorder %v1371_v12, 15 }
 0x9e1   : > { %v1487_v61 = vmul.f32 %v1465_v53, %v1419_v17 }
 0x9e3   : > { %v1492_v2 = vmul.f32 %v2883_v48, %v1487_v61 }
 0x9e5   : > { %v2895_v29 = vadd.f32 %v2885_v50, %v1492_v2 }
 0x9e7   : > { %v1550_v4 = vpack.c.bf16 %v2895_v29, %v2889_v62  ;;  %v1522_v5 = vrot.slane %v2895_v29, 1  ;;  %v1501_v6 = vrot.slane %v2895_v29, 7  ;;  %v1983_v29 = vpack.c.bf16 %v2851_v23, %v2843_v3 }
 0x9e9   : > { %2273 = vmatmul.msk.bf16.vlgmr.msra.gmra.mxu2 %vm370_vm0, %v1550_v4  ;;  %v1528_v7 = vsel %vm1525_vm8, %v1521_v54, %v1522_v5  ;;  %v2916_v9 = vsel %vm1504_vm9, %v1500_v18, %v1501_v6 }
 0xa35   : > { %v1434_v15 = vpop.xlane.xlu2 %1433 }
 0xa36   : > { %v1440_v16 = vmul.f32 %v1434_v15, %v2574_v14 }
 0xa38   : > { %v1444_v17 = vadd.f32 1e-05, %v1440_v16 }
 0xa3a   : > { %2443 = vrsqrt.f32 %v1444_v17  ;;  %vm1472_vm11 = vweird.f32 %v1444_v17 }
 0xa3d   : > { %v1437_v25 = vpop.xlane.xlu0 %1436 }
 0xa3e   : > { %v1441_v27 = vmul.f32 %v1437_v25, %v2574_v14  ;;  %v3005_v25 = vld [vmem:[%s3131_s2] sm:$0xff] }
 0xa40   : > { %v2444_v11 = vpop.eup %2443  ;;  %v1445_v28 = vadd.f32 1e-05, %v1441_v27 }
 0xa41   : > { %v1467_v40 = vmul.f32 %v2444_v11, %v1444_v17  ;;  %vm1473_vm10 = vweird.f32 %v2444_v11 }
 0xa42   : > { %2445 = vrsqrt.f32 %v1445_v28  ;;  %vm1474_vm12 = vmor %vm1472_vm11, %vm1473_vm10  ;;  %vm1482_vm14 = vweird.f32 %v1445_v28 }
 0xa43   : > { %v1468_v19 = vmul.f32 %v2444_v11, %v1467_v40 }
 0xa45   : > { %v1469_v31 = vmul.f32 0.5, %v1468_v19 }
 0xa47   : > { %v1470_v0 = vsub.f32 1.5, %v1469_v31 }
 0xa48   : > { %v2446_v32 = vpop.eup %2445 }
 0xa49   : > { %v1471_v55 = vmul.f32 %v2444_v11, %v1470_v0  ;;  %v1477_v33 = vmul.f32 %v2446_v32, %v1445_v28  ;;  %vm1483_vm13 = vweird.f32 %v2446_v32  ;;  %v1677_v28 = vperm.slane %v3005_v25, 0 }
 0xa4a   : > { %vm1484_vm1 = vmor %vm1482_vm14, %vm1483_vm13 }
 0xa4b   : > { %v1475_v35 = vsel %vm1474_vm12, %v2444_v11, %v1471_v55  ;;  %v1478_v36 = vmul.f32 %v2446_v32, %v1477_v33 }
 0xa4c   : > { %v1488_v14 = vmul.f32 %v1475_v35, %v2860_v58 }
 0xa4d   : > { %v1479_v37 = vmul.f32 0.5, %v1478_v36 }
 0xa4e   : > { %v1493_v30 = vmul.f32 %v2883_v48, %v1488_v14 }
 0xa4f   : > { %v1480_v39 = vsub.f32 1.5, %v1479_v37 }
 0xa50   : > { %v1498_v57 = vadd.f32 %v2885_v50, %v1493_v30 }
 0xa51   : > { %v1481_v43 = vmul.f32 %v2446_v32, %v1480_v39 }
 0xa52   : > { %v1523_v44 = vrot.slane %v1498_v57, 1  ;;  %v1502_v59 = vrot.slane %v1498_v57, 7 }
 0xa53   : > { %v1485_v58 = vsel %vm1484_vm1, %v2446_v32, %v1481_v43 }
 0xa54   : > { %v1489_v26 = vmul.f32 %v1485_v58, %v2871_v20  ;;  %v1527_v45 = vsel %vm1525_vm8, %v1522_v5, %v1523_v44  ;;  %v1344_v5 = vadd.s32 16, %v2891_v63  ;;  %v1506_v62 = vsel %vm1504_vm9, %v1501_v6, %v1502_v59 }
 0xa55   : > { %v1539_v8 = vsel %vm2939_vm2, %v1527_v45, 0.0 }
 0xa56   : > { %v1544_v46 = vpack.c.bf16 %v1539_v8, %v1528_v7  ;;  %v1494_v47 = vmul.f32 %v2883_v48, %v1489_v26  ;;  %v1364_v10 = vand.u32 15, %v1344_v5 }
 0xa58   : > { %2297 = vmatmul.msk.bf16.vlgmr.msrb.gmra.mxu0 %vm370_vm0, %v1544_v46  ;;  %v1499_v20 = vadd.f32 %v2885_v50, %v1494_v47  ;;  %vm2983_vm5 = vcmp.ne.s32.totalorder %v1364_v10, 0 }
 0xa59   : > { %v1519_v16 = vsel %vm2983_vm5, %v1506_v62, 0.0 }
 0xa5a   : > { %v1503_v13 = vrot.slane %v1499_v20, 7  ;;  %v1551_v51 = vpack.c.bf16 %v1499_v20, %v1498_v57  ;;  %v1524_v53 = vrot.slane %v1499_v20, 1 }
 0xa5c   : > { %2274 = vmatmul.msk.bf16.gmra.mxu2 %vm370_vm0, %v1551_v51  ;;  %v1508_v48 = vsel %vm1504_vm9, %v1503_v13, %v1500_v18  ;;  %v1529_v4 = vsel %vm1525_vm8, %v1524_v53, %v1521_v54  ;;  %v1526_v18 = vsel %vm1525_vm8, %v1523_v44, %v1524_v53  ;;  %v1505_v54 = vsel %vm1504_vm9, %v1502_v59, %v1503_v13 }
 0xa5d   : > { %v1517_v50 = vsel %vm2956_vm3, %v1508_v48, 0.0  ;;  %v1541_v7 = vsel %vm2969_vm4, %v1529_v4, 0.0  ;;  %v1543_v17 = vpack.c.bf16 %v1505_v54, %v1519_v16 }
 0xa5e   : > { %v1542_v61 = vpack.c.bf16 %v2916_v9, %v1517_v50  ;;  %v1545_v9 = vpack.c.bf16 %v1541_v7, %v1526_v18 }
 0xa60   : > { %2283 = vmatmul.msk.bf16.vlgmr.msrb.gmra.mxu3 %vm370_vm0, %v1542_v61 }
 0xa68   : > { %2298 = vmatmul.msk.bf16.gmra.mxu0 %vm370_vm0, %v1545_v9 }
 0xa6c   : > { %v1584_v6 = vpop.f32.mrf.mxu2 }
 0xa70   : > { %2284 = vmatmul.msk.bf16.gmra.mxu3 %vm370_vm0, %v1543_v17 }
 0xa74   : > { %v1586_v22 = vpop.f32.mrf.mxu2 }
 0xa78   : > { %2329 = vmatmul.msk.bf16.vlgmr.msra.gmra.mxu0 %vm370_vm0, %v1982_v21 }
 0xa88   : > { %2330 = vmatmul.msk.bf16.gmra.mxu0 %vm370_vm0, %v1983_v29 }
 0xad5   : > { %v1663_v24 = vpop.f32.mrf.mxu0 }
 0xadd   : > { %v1665_v19 = vpop.f32.mrf.mxu0 }
 0xadf   : > { %v1589_v35 = vpop.f32.mrf.mxu2 }
 0xae3   : > { %v1621_v27 = vpop.f32.mrf.mxu3 }
 0xae4   : > { %v1622_v11 = vadd.f32 %v1621_v27, %v1584_v6 }
 0xae5   : > { %v1668_v37 = vpop.f32.mrf.mxu0 }
 0xae6   : > { %v1673_v40 = vadd.f32 %v1663_v24, %v1622_v11 }
 0xae7   : > { %v1591_v46 = vpop.f32.mrf.mxu2 }
 0xae8   : > { %v3008_v42 = vadd.f32 %v1677_v28, %v1673_v40  ;;  %v2346_v40 = vld [vmem:[%s3137_s8 + $0x8] sm:$0xff] }
 0xae9   : > { %1896 = vmatpush.bf16.msra.mxu1 %v2346_v40 }
 0xaea   : > { %v3011_v3 = vmul.f32 0.70710677, %v3008_v42 }
 0xaeb   : > { %v1623_v23 = vpop.f32.mrf.mxu3 }
 0xaec   : > { %v1690_v31 = vand.u32 2147483647, %v3011_v3  ;;  %v1624_v0 = vadd.f32 %v1623_v23, %v1586_v22 }
 0xaed   : > { %v1670_v13 = vpop.f32.mrf.mxu0 }
 0xaee   : > { %v1694_v32 = vmul.f32 0.3275911, %v1690_v31  ;;  %v1674_v55 = vadd.f32 %v1665_v19, %v1624_v0  ;;  %v1798_v5 = vmul.f32 %v1690_v31, %v1690_v31 }
 0xaf0   : > { %v1698_v33 = vadd.f32 1.0, %v1694_v32  ;;  %v3014_v34 = vadd.f32 %v1677_v28, %v1674_v55  ;;  %v1802_v16 = vsub.f32 0.0, %v1798_v5 }
 0xaf2   : > { %2447 = vrcp.f32 %v1698_v33  ;;  %v3017_v36 = vmul.f32 0.70710677, %v3014_v34  ;;  %v1713_v8 = vand.u32 2147483648, %v1698_v33  ;;  %v1711_v20 = vand.u32 2147483647, %v1698_v33 }
 0xaf3   : > { %v1626_v14 = vpop.f32.mrf.mxu3  ;;  %vm1707_vm6 = vweird.f32 %v1698_v33  ;;  %v1806_v19 = vmul.f32 1.442695, %v1802_v16 }
 0xaf4   : > { %v1627_v30 = vadd.f32 %v1626_v14, %v1589_v35  ;;  %v1691_v38 = vand.u32 2147483647, %v3017_v36  ;;  %v1714_v53 = vor.u32 1.1754944e-38, %v1713_v8  ;;  %vm1712_vm10 = vcmp.eq.f32.partialorder %v1711_v20, 8.507059e+37 }
 0xaf6   : > { %v1675_v39 = vadd.f32 %v1668_v37, %v1627_v30  ;;  %v1695_v57 = vmul.f32 0.3275911, %v1691_v38  ;;  %v1799_v32 = vmul.f32 %v1691_v38, %v1691_v38 }
 0xaf8   : > { %v2448_v41 = vpop.eup %2447  ;;  %v3020_v43 = vadd.f32 %v1677_v28, %v1675_v39  ;;  %v1699_v58 = vadd.f32 1.0, %v1695_v57 }
 0xaf9   : > { %v1703_v44 = vmul.f32 %v2448_v41, %v1698_v33  ;;  %vm1708_vm0 = vweird.f32 %v2448_v41 }
 0xafa   : > { %v3023_v26 = vmul.f32 0.70710677, %v3020_v43  ;;  %2449 = vrcp.f32 %v1699_v58  ;;  %vm1709_vm7 = vmor %vm1707_vm6, %vm1708_vm0  ;;  %v1728_v17 = vand.u32 2147483648, %v1699_v58  ;;  %v1726_v29 = vand.u32 2147483647, %v1699_v58 }
 0xafb   : > { %v1704_v45 = vsub.f32 1.0, %v1703_v44  ;;  %v1628_v60 = vpop.f32.mrf.mxu3  ;;  %vm1722_vm12 = vweird.f32 %v1699_v58 }
 0xafc   : > { %v3026_v47 = vand.u32 2147483647, %v3023_v26  ;;  %v1629_v49 = vadd.f32 %v1628_v60, %v1591_v46  ;;  %v1729_v23 = vor.u32 1.1754944e-38, %v1728_v17  ;;  %vm1727_vm14 = vcmp.eq.f32.partialorder %v1726_v29, 8.507059e+37  ;;  %v2345_v46 = vld [vmem:[%s3137_s8] sm:$0xff] }
 0xafd   : > { %v1705_v1 = vmul.f32 %v2448_v41, %v1704_v45  ;;  %1927 = vmatpush.bf16.msrb.mxu2 %v2345_v46 }
 0xafe   : > { %v1696_v51 = vmul.f32 0.3275911, %v3026_v47  ;;  %v1676_v12 = vadd.f32 %v1670_v13, %v1629_v49 }
 0xaff   : > { %v1706_v48 = vadd.f32 %v2448_v41, %v1705_v1  ;;  %v2347_v1 = vld [vmem:[%s3137_s8 + $0x10] sm:$0xff] }
 0xb00   : > { %v1700_v50 = vadd.f32 1.0, %v1696_v51  ;;  %v2450_v61 = vpop.eup %2449  ;;  %v3029_v18 = vadd.f32 %v1677_v28, %v1676_v12  ;;  %1961 = vmatpush.bf16.msra.mxu3 %v2347_v1 }
 0xb01   : > { %v1710_v4 = vsel %vm1709_vm7, %v2448_v41, %v1706_v48  ;;  %v1718_v9 = vmul.f32 %v2450_v61, %v1699_v58  ;;  %vm1723_vm11 = vweird.f32 %v2450_v61  ;;  %v1803_v58 = vsub.f32 0.0, %v1799_v32 }
 0xb02   : > { %v1715_v7 = vsel %vm1712_vm10, %v1714_v53, %v1710_v4  ;;  %2451 = vrcp.f32 %v1700_v50  ;;  %v3032_v62 = vmul.f32 0.70710677, %v3029_v18  ;;  %vm1724_vm13 = vmor %vm1722_vm12, %vm1723_vm11  ;;  %v1743_v30 = vand.u32 2147483648, %v1700_v50 }
 0xb03   : > { %v1762_v10 = vmul.f32 1.0614054, %v1715_v7  ;;  %v1719_v59 = vsub.f32 1.0, %v1718_v9  ;;  %v1741_v41 = vand.u32 2147483647, %v1700_v50  ;;  %vm1737_vm0 = vweird.f32 %v1700_v50 }
 0xb04   : > { %v3035_v6 = vand.u32 2147483647, %v3032_v62  ;;  %v1744_v38 = vor.u32 1.1754944e-38, %v1743_v30  ;;  %v1808_v48 = vmul.f32 1.442695, %v1803_v58  ;;  %v1800_v53 = vmul.f32 %v3026_v47, %v3026_v47 }
 0xb05   : > { %v1766_v54 = vadd.f32 -1.4531521, %v1762_v10  ;;  %v1720_v21 = vmul.f32 %v2450_v61, %v1719_v59  ;;  %vm1742_vm7 = vcmp.eq.f32.partialorder %v1741_v41, 8.507059e+37 }
 0xb06   : > { %v1697_v28 = vmul.f32 0.3275911, %v3035_v6  ;;  %v1804_v17 = vsub.f32 0.0, %v1800_v53  ;;  %v1801_v30 = vmul.f32 %v3035_v6, %v3035_v6  ;;  %v1682_v6 = vmul.f32 0.5, %v3008_v42 }
 0xb07   : > { %v1770_v24 = vmul.f32 %v1766_v54, %v1715_v7  ;;  %v1721_v11 = vadd.f32 %v2450_v61, %v1720_v21  ;;  %v1684_v42 = vmul.f32 0.5, %v3020_v43 }
 0xb08   : > { %v2452_v27 = vpop.eup %2451  ;;  %v1701_v55 = vadd.f32 1.0, %v1697_v28 }
 0xb09   : > { %v1774_v22 = vadd.f32 1.4214138, %v1770_v24  ;;  %v1733_v31 = vmul.f32 %v2452_v27, %v1700_v50  ;;  %v1725_v0 = vsel %vm1724_vm13, %v2450_v61, %v1721_v11  ;;  %vm1738_vm1 = vweird.f32 %v2452_v27 }
 0xb0a   : > { %v1730_v35 = vsel %vm1727_vm14, %v1729_v23, %v1725_v0  ;;  %2453 = vrcp.f32 %v1701_v55  ;;  %vm1739_vm6 = vmor %vm1737_vm0, %vm1738_vm1  ;;  %v1758_v21 = vand.u32 2147483648, %v1701_v55  ;;  %vm1752_vm11 = vweird.f32 %v1701_v55 }
 0xb0b   : > { %v1778_v33 = vmul.f32 %v1774_v22, %v1715_v7  ;;  %v1734_v14 = vsub.f32 1.0, %v1733_v31  ;;  %v1763_v37 = vmul.f32 1.0614054, %v1730_v35  ;;  %2455 = vpow2.f32 %v1806_v19 }
 0xb0c   : > { %2457 = vpow2.f32 %v1808_v48  ;;  %v1810_v22 = vmul.f32 1.442695, %v1804_v17  ;;  %v1759_v19 = vor.u32 1.1754944e-38, %v1758_v21  ;;  %vm1822_vm14 = vcmp.lt.f32.partialorder %v3011_v3, 0.0 }
 0xb0d   : > { %v1782_v39 = vadd.f32 -0.28449672, %v1778_v33  ;;  %v1735_v57 = vmul.f32 %v2452_v27, %v1734_v14  ;;  %v1767_v44 = vadd.f32 -1.4531521, %v1763_v37  ;;  %vm1823_vm1 = vcmp.lt.f32.partialorder %v3017_v36, 0.0 }
 0xb0e   : > { %2459 = vpow2.f32 %v1810_v22  ;;  %vm1824_vm0 = vcmp.lt.f32.partialorder %v3023_v26, 0.0  ;;  %v1685_v22 = vmul.f32 0.5, %v3029_v18 }
 0xb0f   : > { %v1786_v45 = vmul.f32 %v1782_v39, %v1715_v7  ;;  %v1736_v60 = vadd.f32 %v2452_v27, %v1735_v57  ;;  %v1771_v8 = vmul.f32 %v1767_v44, %v1730_v35 }
 0xb10   : > { %v2454_v13 = vpop.eup %2453 }
 0xb11   : > { %v1790_v20 = vadd.f32 0.2548296, %v1786_v45  ;;  %v1740_v49 = vsel %vm1739_vm6, %v2452_v27, %v1736_v60  ;;  %v1775_v51 = vadd.f32 1.4214138, %v1771_v8  ;;  %v1748_v4 = vmul.f32 %v2454_v13, %v1701_v55  ;;  %v2456_v5 = vpop.eup %2455 }
 0xb12   : > { %v1745_v12 = vsel %vm1742_vm7, %v1744_v38, %v1740_v49  ;;  %vm1753_vm10 = vweird.f32 %v2454_v13  ;;  %v1756_v27 = vand.u32 2147483647, %v1701_v55  ;;  %v2458_v0 = vpop.eup %2457  ;;  %v1805_v60 = vsub.f32 0.0, %v1801_v30 }
 0xb13   : > { %v1794_v50 = vmul.f32 %v1790_v20, %v1715_v7  ;;  %v1764_v61 = vmul.f32 1.0614054, %v1745_v12  ;;  %v1779_v9 = vmul.f32 %v1775_v51, %v1730_v35  ;;  %v1749_v54 = vsub.f32 1.0, %v1748_v4  ;;  %vm1754_vm12 = vmor %vm1752_vm11, %vm1753_vm10 }
 0xb14   : > { %vm1757_vm13 = vcmp.eq.f32.partialorder %v1756_v27, 8.507059e+37  ;;  %v2460_v20 = vpop.eup %2459  ;;  %v1683_v49 = vmul.f32 0.5, %v3014_v34  ;;  %v1812_v48 = vmul.f32 1.442695, %v1805_v60  ;;  %vm1825_vm6 = vcmp.lt.f32.partialorder %v3032_v62, 0.0 }
 0xb15   : > { %v1814_v10 = vmul.f32 %v2456_v5, %v1794_v50  ;;  %v1768_v59 = vadd.f32 -1.4531521, %v1764_v61  ;;  %v1783_v16 = vadd.f32 -0.28449672, %v1779_v9  ;;  %v1750_v24 = vmul.f32 %v2454_v13, %v1749_v54 }
 0xb16   : > { %2461 = vpow2.f32 %v1812_v48 }
 0xb17   : > { %v1772_v29 = vmul.f32 %v1768_v59, %v1745_v12  ;;  %v1818_v11 = vsub.f32 1.0, %v1814_v10  ;;  %v1787_v47 = vmul.f32 %v1783_v16, %v1730_v35  ;;  %v1751_v40 = vadd.f32 %v2454_v13, %v1750_v24 }
 0xb19   : > { %v1776_v28 = vadd.f32 1.4214138, %v1772_v29  ;;  %v1791_v7 = vadd.f32 0.2548296, %v1787_v47  ;;  %v1755_v31 = vsel %vm1754_vm12, %v2454_v13, %v1751_v40  ;;  %v1826_v32 = vsub.f32 0.0, %v1818_v11 }
 0xb1a   : > { %v1760_v14 = vsel %vm1757_vm13, %v1759_v19, %v1755_v31 }
 0xb1b   : > { %v1780_v23 = vmul.f32 %v1776_v28, %v1745_v12  ;;  %v1795_v33 = vmul.f32 %v1791_v7, %v1730_v35  ;;  %v1765_v39 = vmul.f32 1.0614054, %v1760_v14  ;;  %v1830_v44 = vsel %vm1822_vm14, %v1826_v32, %v1818_v11 }
 0xb1c   : > { %v1834_v46 = vadd.f32 1.0, %v1830_v44  ;;  %v2462_v17 = vpop.eup %2461 }
 0xb1d   : > { %v1784_v37 = vadd.f32 -0.28449672, %v1780_v23  ;;  %v1815_v57 = vmul.f32 %v2458_v0, %v1795_v33  ;;  %v1769_v41 = vadd.f32 -1.4531521, %v1765_v39 }
 0xb1e   : > { %v1838_v50 = vmul.f32 %v1834_v46, %v1682_v6  ;;  %v1988_v46 = vperm.slane %v3005_v25, 2 }
 0xb1f   : > { %v1788_v55 = vmul.f32 %v1784_v37, %v1745_v12  ;;  %v1819_v58 = vsub.f32 1.0, %v1815_v57  ;;  %v1773_v8 = vmul.f32 %v1769_v41, %v1760_v14 }
 0xb20   : > { %v1854_v27 = vrot.slane %v1838_v50, 1  ;;  %v1842_v0 = vrot.slane %v1838_v50, 7 }
 0xb21   : > { %v1792_v45 = vadd.f32 0.2548296, %v1788_v55  ;;  %v1827_v38 = vsub.f32 0.0, %v1819_v58  ;;  %v1777_v1 = vadd.f32 1.4214138, %v1773_v8  ;;  %v2016_v8 = vpop.f32.mrf.mxu0 }
 0xb23   : > { %v1796_v35 = vmul.f32 %v1792_v45, %v1745_v12  ;;  %v1831_v13 = vsel %vm1823_vm1, %v1827_v38, %v1819_v58  ;;  %v1781_v53 = vmul.f32 %v1777_v1, %v1760_v14  ;;  %v1977_v1 = vperm.slane %v3005_v25, 1 }
 0xb24   : > { %v1835_v3 = vadd.f32 1.0, %v1831_v13 }
 0xb25   : > { %v1816_v51 = vmul.f32 %v2460_v20, %v1796_v35  ;;  %v1785_v5 = vadd.f32 -0.28449672, %v1781_v53 }
 0xb26   : > { %v1839_v61 = vmul.f32 %v1835_v3, %v1683_v49  ;;  %v2017_v49 = vadd.f32 %v2016_v8, %v1988_v46 }
 0xb27   : > { %v1820_v4 = vsub.f32 1.0, %v1816_v51  ;;  %v1789_v36 = vmul.f32 %v1785_v5, %v1760_v14 }
 0xb28   : > { %v1872_v10 = vpack.c.bf16 %v1839_v61, %v1838_v50  ;;  %v1855_v21 = vrot.slane %v1839_v61, 1  ;;  %v1843_v31 = vrot.slane %v1839_v61, 7 }
 0xb29   : > { %v1828_v9 = vsub.f32 0.0, %v1820_v4  ;;  %v1793_v59 = vadd.f32 0.2548296, %v1789_v36  ;;  %v2018_v63 = vpop.f32.mrf.mxu0 }
 0xb2a   : > { %2305 = vmatmul.msk.bf16.vlgmr.msra.gmra.mxu1 %vm635_vm15, %v1872_v10  ;;  %v1860_v26 = vsel %vm1525_vm8, %v1854_v27, %v1855_v21  ;;  %v1848_v62 = vsel %vm1504_vm9, %v1842_v0, %v1843_v31  ;;  %v2019_v61 = vadd.f32 %v2018_v63, %v1988_v46 }
 0xb2b   : > { %v1832_v12 = vsel %vm1824_vm0, %v1828_v9, %v1820_v4  ;;  %v1797_v16 = vmul.f32 %v1793_v59, %v1760_v14 }
 0xb2c   : > { %v1836_v34 = vadd.f32 1.0, %v1832_v12 }
 0xb2d   : > { %v1817_v24 = vmul.f32 %v2462_v17, %v1797_v16 }
 0xb2e   : > { %v1840_v54 = vmul.f32 %v1836_v34, %v1684_v42 }
 0xb2f   : > { %v1821_v47 = vsub.f32 1.0, %v1817_v24 }
 0xb30   : > { %v1856_v29 = vrot.slane %v1840_v54, 1  ;;  %v1844_v41 = vrot.slane %v1840_v54, 7 }
 0xb31   : > { %v1829_v40 = vsub.f32 0.0, %v1821_v47  ;;  %v2021_v9 = vpop.f32.mrf.mxu0 }
 0xb32   : > { %v1859_v11 = vsel %vm1525_vm8, %v1855_v21, %v1856_v29  ;;  %v1847_v52 = vsel %vm1504_vm9, %v1843_v31, %v1844_v41 }
 0xb33   : > { %v1863_v28 = vsel %vm2939_vm2, %v1859_v11, 0.0  ;;  %v1833_v7 = vsel %vm1825_vm6, %v1829_v40, %v1821_v47  ;;  %v1852_v58 = vsel %vm2983_vm5, %v1847_v52, 0.0 }
 0xb34   : > { %v1868_v43 = vpack.c.bf16 %v1863_v28, %v1860_v26  ;;  %v1837_v19 = vadd.f32 1.0, %v1833_v7 }
 0xb36   : > { %2319 = vmatmul.msk.bf16.vlgmr.msra.gmra.mxu3 %vm635_vm15, %v1868_v43  ;;  %v1841_v23 = vmul.f32 %v1837_v19, %v1685_v22  ;;  %v2489_v22 = vmov 16.0  }
 0xb37   : > { %2463 = vrcp.f32 %v2489_v22 }
 0xb38   : > { %v1845_v32 = vrot.slane %v1841_v23, 7  ;;  %v1873_v33 = vpack.c.bf16 %v1841_v23, %v1840_v54  ;;  %v1857_v14 = vrot.slane %v1841_v23, 1  ;;  %v2022_v54 = vadd.f32 %v2021_v9, %v1988_v46 }
 0xb39   : > { %v2023_v11 = vpop.f32.mrf.mxu0 }
 0xb3a   : > { %2306 = vmatmul.msk.bf16.gmra.mxu1 %vm635_vm15, %v1873_v33  ;;  %v1849_v56 = vsel %vm1504_vm9, %v1845_v32, %v1842_v0  ;;  %v1861_v18 = vsel %vm1525_vm8, %v1857_v14, %v1854_v27  ;;  %v1858_v39 = vsel %vm1525_vm8, %v1856_v29, %v1857_v14  ;;  %v1846_v44 = vsel %vm1504_vm9, %v1844_v41, %v1845_v32 }
 0xb3b   : > { %v1850_v37 = vsel %vm2956_vm3, %v1849_v56, 0.0  ;;  %v1865_v57 = vsel %vm2969_vm4, %v1861_v18, 0.0  ;;  %v1867_v45 = vpack.c.bf16 %v1846_v44, %v1852_v58  ;;  %v2024_v28 = vadd.f32 %v2023_v11, %v1988_v46 }
 0xb3c   : > { %v1866_v30 = vpack.c.bf16 %v1848_v62, %v1850_v37  ;;  %v1869_v55 = vpack.c.bf16 %v1865_v57, %v1858_v39 }
 0xb3d   : > { %v2464_v19 = vpop.eup %2463 }
 0xb3e   : > { %2311 = vmatmul.msk.bf16.vlgmr.msrb.gmra.mxu2 %vm635_vm15, %v1866_v30  ;;  %v2043_v23 = vmul.f32 16.0, %v2464_v19  ;;  %vm2047_vm8 = vweird.f32 %v2464_v19 }
 0xb40   : > { %v2044_v31 = vsub.f32 1.0, %v2043_v23 }
 0xb42   : > { %v2045_v0 = vmul.f32 %v2464_v19, %v2044_v31 }
 0xb44   : > { %v2046_v32 = vadd.f32 %v2464_v19, %v2045_v0 }
 0xb46   : > { %2320 = vmatmul.msk.bf16.gmra.mxu3 %vm635_vm15, %v1869_v55  ;;  %v2048_v33 = vsel %vm2047_vm8, %v2464_v19, %v2046_v32 }
 0xb4e   : > { %2312 = vmatmul.msk.bf16.gmra.mxu2 %vm635_vm15, %v1867_v45 }
 0xba7   : > { %v1898_v60 = vpop.f32.mrf.mxu1 }
 0xbaf   : > { %v1900_v6 = vpop.f32.mrf.mxu1 }
 0xbb7   : > { %v1903_v5 = vpop.f32.mrf.mxu1 }
 0xbb9   : > { %v1963_v2 = vpop.f32.mrf.mxu3 }
 0xbbf   : > { %v1905_v21 = vpop.f32.mrf.mxu1 }
 0xbc1   : > { %v1929_v38 = vpop.f32.mrf.mxu2  ;;  %v1965_v3 = vpop.f32.mrf.mxu3 }
 0xbc2   : > { %v1930_v35 = vadd.f32 %v1929_v38, %v1898_v60 }
 0xbc4   : > { %v1973_v20 = vadd.f32 %v1963_v2, %v1930_v35 }
 0xbc6   : > { %v1978_v13 = vadd.f32 %v1977_v1, %v1973_v20 }
 0xbc8   : > { %v2026_v15 = vadd.f32 %v2017_v49, %v1978_v13 }
 0xbc9   : > { %v1931_v51 = vpop.f32.mrf.mxu2  ;;  %v1968_v36 = vpop.f32.mrf.mxu3 }
 0xbca   : > { %v1932_v48 = vadd.f32 %v1931_v51, %v1900_v6  ;;  %v2030_v53 = vsel %vm635_vm15, %v2026_v15, 0.0 }
 0xbcb   : > { %2031 = vadd.xlane.f32.xlu0 %v2030_v53 }
 0xbcc   : > { %v1974_v50 = vadd.f32 %v1965_v3, %v1932_v48 }
 0xbce   : > { %v1979_v4 = vadd.f32 %v1977_v1, %v1974_v50 }
 0xbd0   : > { %v2027_v10 = vadd.f32 %v2019_v61, %v1979_v4 }
 0xbd1   : > { %v1934_v12 = vpop.f32.mrf.mxu2  ;;  %v1970_v47 = vpop.f32.mrf.mxu3 }
 0xbd2   : > { %v1935_v42 = vadd.f32 %v1934_v12, %v1903_v5  ;;  %v2033_v34 = vsel %vm635_vm15, %v2027_v10, 0.0 }
 0xbd3   : > { %2034 = vadd.xlane.f32.xlu1 %v2033_v34  ;;  %v2130_v34 = vperm.slane %v3005_v25, 4 }
 0xbd4   : > { %v1975_v59 = vadd.f32 %v1968_v36, %v1935_v42  ;;  %v2125_v36 = vperm.slane %v3005_v25, 3 }
 0xbd6   : > { %v1980_v16 = vadd.f32 %v1977_v1, %v1975_v59 }
 0xbd8   : > { %v2028_v17 = vadd.f32 %v2022_v54, %v1980_v16 }
 0xbd9   : > { %v1936_v29 = vpop.f32.mrf.mxu2 }
 0xbda   : > { %v1937_v24 = vadd.f32 %v1936_v29, %v1905_v21  ;;  %v2036_v27 = vsel %vm635_vm15, %v2028_v17, 0.0 }
 0xbdb   : > { %2037 = vadd.xlane.f32.xlu2 %v2036_v27 }
 0xbdc   : > { %v1976_v26 = vadd.f32 %v1970_v47, %v1937_v24 }
 0xbde   : > { %v1981_v43 = vadd.f32 %v1977_v1, %v1976_v26 }
 0xbe0   : > { %v2029_v40 = vadd.f32 %v2024_v28, %v1981_v43 }
 0xbe2   : > { %v2039_v7 = vsel %vm635_vm15, %v2029_v40, 0.0 }
 0xbe3   : > { %2040 = vadd.xlane.f32.xlu0 %v2039_v7 }
 0xc3e   : > { %v2032_v14 = vpop.xlane.xlu0 %2031 }
 0xc3f   : > { %v2049_v56 = vmul.f32 %v2048_v33, %v2032_v14 }
 0xc41   : > { %v2053_v62 = vsub.f32 %v2026_v15, %v2049_v56 }
 0xc43   : > { %v2057_v37 = vmul.f32 %v2053_v62, %v2053_v62 }
 0xc45   : > { %v2061_v18 = vsel %vm635_vm15, %v2057_v37, 0.0 }
 0xc46   : > { %2062 = vadd.xlane.f32.xlu1 %v2061_v18  ;;  %v2035_v30 = vpop.xlane.xlu1 %2034 }
 0xc47   : > { %v2050_v39 = vmul.f32 %v2048_v33, %v2035_v30 }
 0xc49   : > { %v2054_v57 = vsub.f32 %v2027_v10, %v2050_v39 }
 0xc4b   : > { %v2058_v55 = vmul.f32 %v2054_v57, %v2054_v57 }
 0xc4d   : > { %v2064_v41 = vsel %vm635_vm15, %v2058_v55, 0.0 }
 0xc4e   : > { %2065 = vadd.xlane.f32.xlu2 %v2064_v41  ;;  %v2038_v52 = vpop.xlane.xlu2 %2037 }
 0xc4f   : > { %v2051_v44 = vmul.f32 %v2048_v33, %v2038_v52 }
 0xc51   : > { %v3097_v58 = vsub.f32 %v2028_v17, %v2051_v44 }
 0xc53   : > { %v2059_v45 = vmul.f32 %v3097_v58, %v3097_v58 }
 0xc55   : > { %v2067_v60 = vsel %vm635_vm15, %v2059_v45, 0.0 }
 0xc56   : > { %v2041_v8 = vpop.xlane.xlu0 %2040  ;;  %2068 = vadd.xlane.f32.xlu0 %v2067_v60 }
 0xc57   : > { %v2052_v2 = vmul.f32 %v2048_v33, %v2041_v8 }
 0xc59   : > { %v3102_v38 = vsub.f32 %v2029_v40, %v2052_v2 }
 0xc5b   : > { %v2060_v46 = vmul.f32 %v3102_v38, %v3102_v38 }
 0xc5d   : > { %v2070_v35 = vsel %vm635_vm15, %v2060_v46, 0.0 }
 0xc5e   : > { %2071 = vadd.xlane.f32.xlu1 %v2070_v35 }
 0xcb9   : > { %v2063_v1 = vpop.xlane.xlu1 %2062 }
 0xcba   : > { %v2073_v20 = vmul.f32 %v2063_v1, %v2048_v33 }
 0xcbc   : > { %v2077_v6 = vadd.f32 1e-05, %v2073_v20 }
 0xcbe   : > { %2465 = vrsqrt.f32 %v2077_v6  ;;  %vm2087_vm2 = vweird.f32 %v2077_v6 }
 0xcc1   : > { %v2066_v49 = vpop.xlane.xlu2 %2065 }
 0xcc2   : > { %v2074_v63 = vmul.f32 %v2066_v49, %v2048_v33 }
 0xcc4   : > { %v2466_v13 = vpop.eup %2465  ;;  %v2078_v3 = vadd.f32 1e-05, %v2074_v63 }
 0xcc5   : > { %v2082_v15 = vmul.f32 %v2466_v13, %v2077_v6  ;;  %vm2088_vm9 = vweird.f32 %v2466_v13 }
 0xcc6   : > { %2467 = vrsqrt.f32 %v2078_v3  ;;  %vm2089_vm3 = vmor %vm2087_vm2, %vm2088_vm9  ;;  %vm2097_vm5 = vweird.f32 %v2078_v3 }
 0xcc7   : > { %v2083_v51 = vmul.f32 %v2466_v13, %v2082_v15 }
 0xcc9   : > { %v2084_v48 = vmul.f32 0.5, %v2083_v51  ;;  %v2069_v53 = vpop.xlane.xlu0 %2068 }
 0xcca   : > { %v2075_v50 = vmul.f32 %v2069_v53, %v2048_v33 }
 0xccb   : > { %v2085_v61 = vsub.f32 1.5, %v2084_v48 }
 0xccc   : > { %v2468_v4 = vpop.eup %2467  ;;  %v2079_v5 = vadd.f32 1e-05, %v2075_v50 }
 0xccd   : > { %v2086_v9 = vmul.f32 %v2466_v13, %v2085_v61  ;;  %v2092_v10 = vmul.f32 %v2468_v4, %v2078_v3  ;;  %vm2098_vm4 = vweird.f32 %v2468_v4 }
 0xcce   : > { %2469 = vrsqrt.f32 %v2079_v5  ;;  %vm2099_vm7 = vmor %vm2097_vm5, %vm2098_vm4  ;;  %vm2107_vm11 = vweird.f32 %v2079_v5 }
 0xccf   : > { %v2090_v12 = vsel %vm2089_vm3, %v2466_v13, %v2086_v9  ;;  %v2093_v42 = vmul.f32 %v2468_v4, %v2092_v10 }
 0xcd0   : > { %v2121_v59 = vmul.f32 %v2090_v12, %v2053_v62 }
 0xcd1   : > { %v2094_v54 = vmul.f32 0.5, %v2093_v42  ;;  %v2072_v16 = vpop.xlane.xlu1 %2071 }
 0xcd2   : > { %v2126_v17 = vmul.f32 %v2125_v36, %v2121_v59  ;;  %v2076_v21 = vmul.f32 %v2072_v16, %v2048_v33 }
 0xcd3   : > { %v2095_v29 = vsub.f32 1.5, %v2094_v54 }
 0xcd4   : > { %v2470_v24 = vpop.eup %2469  ;;  %v2131_v27 = vadd.f32 %v2130_v34, %v2126_v17  ;;  %v2080_v11 = vadd.f32 1e-05, %v2076_v21 }
 0xcd5   : > { %v2096_v47 = vmul.f32 %v2468_v4, %v2095_v29  ;;  %v2102_v25 = vmul.f32 %v2470_v24, %v2079_v5  ;;  %vm2108_vm10 = vweird.f32 %v2470_v24 }
 0xcd6   : > { %2135 = vst.msk [vmem:[%s3114_s23] sm:$0xff] %vm635_vm15, %v2131_v27  ;;  %2471 = vrsqrt.f32 %v2080_v11  ;;  %vm2109_vm12 = vmor %vm2107_vm11, %vm2108_vm10  ;;  %vm2117_vm14 = vweird.f32 %v2080_v11 }
 0xcd7   : > { %v2100_v26 = vsel %vm2099_vm7, %v2468_v4, %v2096_v47  ;;  %v2103_v28 = vmul.f32 %v2470_v24, %v2102_v25 }
 0xcd8   : > { %v2122_v43 = vmul.f32 %v2100_v26, %v2054_v57 }
 0xcd9   : > { %v2104_v40 = vmul.f32 0.5, %v2103_v28 }
 0xcda   : > { %v2127_v7 = vmul.f32 %v2125_v36, %v2122_v43 }
 0xcdb   : > { %v2105_v22 = vsub.f32 1.5, %v2104_v40 }
 0xcdc   : > { %v2472_v19 = vpop.eup %2471  ;;  %v2132_v23 = vadd.f32 %v2130_v34, %v2127_v7 }
 0xcdd   : > { %v2106_v31 = vmul.f32 %v2470_v24, %v2105_v22  ;;  %v2112_v0 = vmul.f32 %v2472_v19, %v2080_v11  ;;  %vm2118_vm13 = vweird.f32 %v2472_v19 }
 0xcde   : > { %2136 = vst.msk [vmem:[%s3114_s23 + $0x8] sm:$0xff] %vm635_vm15, %v2132_v23  ;;  %vm2119_vm1 = vmor %vm2117_vm14, %vm2118_vm13 }
 0xcdf   : > { %v2110_v32 = vsel %vm2109_vm12, %v2470_v24, %v2106_v31  ;;  %v2113_v33 = vmul.f32 %v2472_v19, %v2112_v0 }
 0xce0   : > { %v2123_v14 = vmul.f32 %v2110_v32, %v3097_v58 }
 0xce1   : > { %v2114_v56 = vmul.f32 0.5, %v2113_v33 }
 0xce2   : > { %v2128_v62 = vmul.f32 %v2125_v36, %v2123_v14 }
 0xce3   : > { %v2115_v37 = vsub.f32 1.5, %v2114_v56 }
 0xce4   : > { %v2133_v18 = vadd.f32 %v2130_v34, %v2128_v62 }
 0xce5   : > { %v2116_v30 = vmul.f32 %v2472_v19, %v2115_v37 }
 0xce6   : > { %2137 = vst.msk [vmem:[%s3114_s23 + $0x10] sm:$0xff] %vm635_vm15, %v2133_v18 }
 0xce7   : > { %v2120_v39 = vsel %vm2119_vm1, %v2472_v19, %v2116_v30 }
 0xce8   : > { %v2124_v57 = vmul.f32 %v2120_v39, %v3102_v38 }
 0xcea   : > { %v2129_v55 = vmul.f32 %v2125_v36, %v2124_v57 }
 0xcec   : > { %v2134_v41 = vadd.f32 %v2130_v34, %v2129_v55 }
 0xcee   : > { %2138 = vst.msk [vmem:[%s3114_s23 + $0x18] sm:$0xff] %vm635_vm15, %v2134_v41 }
 0xcef PF: > { %s20_s13 = sadd.s32 1, %s2483_s13  }
 0xcf0   : > { %p17_p4 = scmp.ge.s32.totalorder %s20_s13, 4  }
 0xcf2   :  { %19 = sbr.rel (!%p17_p4) target bundleno = 1 (0x1), region = 97 }

</bundles_post_ra>
